<compile_context>
chip_gen: v5e
topology: v5e:2x2
jax: 0.10.0
libtpu: 0.0.40
codegen_flags: <defaults>
</compile_context>

<pallas_src>
import math
import jax
import jax.numpy as jnp
from jax.experimental import pallas as pl
from jax.experimental.pallas import tpu as pltpu

# ---------------- small synthetic BERT config ----------------
VOCAB       = 100
TYPE_VOCAB  = 2
MAX_POS     = 32
HIDDEN      = 32
N_HEADS     = 4
HEAD_DIM    = HIDDEN // N_HEADS
INTER       = 64
N_LAYERS    = 2
NUM_CLASSES = 3
C_PAD       = 128            # lane-padded logits slab; sliced to NUM_CLASSES in the wrapper
LN_EPS      = 1e-12


def _layer_norm(x, gamma, beta):
    mean = jnp.mean(x, axis=-1, keepdims=True)
    var = jnp.mean(jnp.square(x - mean), axis=-1, keepdims=True)
    return (x - mean) * jax.lax.rsqrt(var + LN_EPS) * gamma + beta


# ---------------- the single fused BERT kernel ----------------
def _make_bert_kernel(B, S):
    def kernel(ids_ref, mask_ref, wemb_ref, pt_ref, elng_ref, elnb_ref,
               qkvw_ref, qkvb_ref, aow_ref, aob_ref, ln1g_ref, ln1b_ref,
               iw_ref, ib_ref, ow_ref, ob_ref, ln2g_ref, ln2b_ref,
               pw_ref, pb_ref, fw_ref, fb_ref, o_ref):
        # --- embeddings: token gather as a one-hot MXU dot + pos/type add + LayerNorm ---
        ids = ids_ref[...]                                             # (B*S, 1) int32
        vocab_iota = jax.lax.broadcasted_iota(jnp.int32, (1, VOCAB), 1)
        onehot = (ids == vocab_iota).astype(jnp.float32)               # (B*S, VOCAB)
        emb = jnp.dot(onehot, wemb_ref[...], preferred_element_type=jnp.float32)  # (B*S, H)
        pos_type = pt_ref[...][:S, :]                                  # (S, H) pos + type(id=0)
        emb = emb + jnp.concatenate([pos_type] * B, axis=0)            # broadcast over batch
        x = _layer_norm(emb, elng_ref[...], elnb_ref[...])             # (B*S, H)

        mask = mask_ref[...]                                           # (B, S) additive bias

        # --- encoder layers (N_LAYERS=2: fully unrolled, static weight-slab indexing) ---
        for l in range(N_LAYERS):
            # fused QKV projection for all B*S rows; 1/sqrt(dh) folded into the Q columns
            qkv = jnp.dot(x, qkvw_ref[l], preferred_element_type=jnp.float32) + qkvb_ref[l]
            ao_w = aow_ref[l]                                          # (H, H)

            attn_rows = []
            for b in range(B):
                qkv_b = qkv[b * S:(b + 1) * S, :]                      # (S, 3H)
                bias_b = mask[b:b + 1, :]                              # (1, S) over key positions
                attn_b = None
                for h in range(N_HEADS):
                    q_h = qkv_b[:, h * HEAD_DIM:(h + 1) * HEAD_DIM]
                    k_h = qkv_b[:, HIDDEN + h * HEAD_DIM:HIDDEN + (h + 1) * HEAD_DIM]
                    v_h = qkv_b[:, 2 * HIDDEN + h * HEAD_DIM:2 * HIDDEN + (h + 1) * HEAD_DIM]
                    # scores (S, S) = q_h @ k_h^T (contract head dim, no explicit transpose)
                    s = jax.lax.dot_general(q_h, k_h, (((1,), (1,)), ((), ())),
                                            preferred_element_type=jnp.float32)
                    s = s + bias_b
                    s = s - jnp.max(s, axis=-1, keepdims=True)         # stable softmax
                    p = jnp.exp(s)
                    p = p * pl.reciprocal(jnp.sum(p, axis=-1, keepdims=True), approx=True)
                    ctx_h = jnp.dot(p, v_h, preferred_element_type=jnp.float32)   # (S, dh)
                    # head merge folded into the output projection (sublane-aligned row slab)
                    part = jnp.dot(ctx_h, ao_w[h * HEAD_DIM:(h + 1) * HEAD_DIM, :],
                                   preferred_element_type=jnp.float32)            # (S, H)
                    attn_b = part if attn_b is None else attn_b + part
                attn_rows.append(attn_b)
            attn = jnp.concatenate(attn_rows, axis=0) + aob_ref[l]     # (B*S, H)
            h1 = _layer_norm(attn + x, ln1g_ref[l], ln1b_ref[l])

            # --- feed-forward block (intermediate stays in VMEM/vregs, never hits HBM) ---
            inter = jnp.dot(h1, iw_ref[l], preferred_element_type=jnp.float32) + ib_ref[l]
            # TODO(synk): HF BertModel default is exact erf GELU; tanh approximation used here.
            inter = jax.nn.gelu(inter, approximate=True)
            ffn = jnp.dot(inter, ow_ref[l], preferred_element_type=jnp.float32) + ob_ref[l]
            x = _layer_norm(ffn + h1, ln2g_ref[l], ln2b_ref[l])

        # --- pooler (tanh on [CLS]) + classifier fc, fused; lane-padded logits slab ---
        cls = jnp.concatenate([x[b * S:b * S + 1, :] for b in range(B)], axis=0)   # (B, H)
        pooled = jnp.tanh(jnp.dot(cls, pw_ref[...], preferred_element_type=jnp.float32)
                          + pb_ref[...])
        # TODO(synk): nn.Dropout on the pooled output treated as identity (eval mode).
        logits = jnp.dot(pooled, fw_ref[...], preferred_element_type=jnp.float32) + fb_ref[...]
        o_ref[...] = logits.astype(o_ref.dtype)                        # (B, C_PAD)

    return kernel


# ---------------- parameter init (deterministic, synthetic) ----------------
def init_params(key):
    def nrm(k, shape):
        return jax.random.normal(k, shape, jnp.float32) * 0.02

    keys = iter(jax.random.split(key, 64))
    scale = 1.0 / math.sqrt(HEAD_DIM)

    word_emb = nrm(next(keys), (VOCAB, HIDDEN))
    pos_emb = nrm(next(keys), (MAX_POS, HIDDEN))
    type_emb = nrm(next(keys), (TYPE_VOCAB, HIDDEN))

    qkv_w, qkv_b, ao_w, ao_b = [], [], [], []
    ln1_g, ln1_b, i_w, i_b = [], [], [], []
    o_w, o_b, ln2_g, ln2_b = [], [], [], []
    for _ in range(N_LAYERS):
        q = nrm(next(keys), (HIDDEN, HIDDEN))
        k = nrm(next(keys), (HIDDEN, HIDDEN))
        v = nrm(next(keys), (HIDDEN, HIDDEN))
        # fused QKV weight (H, 3H); 1/sqrt(dh) folded into the Q columns; zero biases
        qkv_w.append(jnp.concatenate([q * scale, k, v], axis=1))
        qkv_b.append(jnp.zeros((1, 3 * HIDDEN), jnp.float32))
        ao_w.append(nrm(next(keys), (HIDDEN, HIDDEN)))
        ao_b.append(jnp.zeros((1, HIDDEN), jnp.float32))
        ln1_g.append(jnp.ones((1, HIDDEN), jnp.float32))
        ln1_b.append(jnp.zeros((1, HIDDEN), jnp.float32))
        i_w.append(nrm(next(keys), (HIDDEN, INTER)))
        i_b.append(jnp.zeros((1, INTER), jnp.float32))
        o_w.append(nrm(next(keys), (INTER, HIDDEN)))
        o_b.append(jnp.zeros((1, HIDDEN), jnp.float32))
        ln2_g.append(jnp.ones((1, HIDDEN), jnp.float32))
        ln2_b.append(jnp.zeros((1, HIDDEN), jnp.float32))

    fc_w = nrm(next(keys), (HIDDEN, NUM_CLASSES))
    fc_w_pad = jnp.zeros((HIDDEN, C_PAD), jnp.float32).at[:, :NUM_CLASSES].set(fc_w)

    return {
        "word_emb": word_emb,
        # pos-emb + token-type-emb[0] (token_type_ids = 0), precomputed once at init
        "pos_type_emb": pos_emb + type_emb[0][None, :],
        "emb_ln_g": jnp.ones((1, HIDDEN), jnp.float32),
        "emb_ln_b": jnp.zeros((1, HIDDEN), jnp.float32),
        # per-layer weights stacked with a leading layer axis (VMEM-resident slabs)
        "qkv_w": jnp.stack(qkv_w), "qkv_b": jnp.stack(qkv_b),
        "ao_w": jnp.stack(ao_w),   "ao_b": jnp.stack(ao_b),
        "ln1_g": jnp.stack(ln1_g), "ln1_b": jnp.stack(ln1_b),
        "i_w": jnp.stack(i_w),     "i_b": jnp.stack(i_b),
        "o_w": jnp.stack(o_w),     "o_b": jnp.stack(o_b),
        "ln2_g": jnp.stack(ln2_g), "ln2_b": jnp.stack(ln2_b),
        "pool_w": nrm(next(keys), (HIDDEN, HIDDEN)),
        "pool_b": jnp.zeros((1, HIDDEN), jnp.float32),
        "fc_w_pad": fc_w_pad,
        "fc_b_pad": jnp.zeros((1, C_PAD), jnp.float32),
    }


# ---------------- full forward: ONE pallas_call ----------------
def bert_forward(params, X, attn_mask):
    B, S = X.shape
    ids_col = X.reshape(B * S, 1).astype(jnp.int32)                    # for in-kernel one-hot gather
    # Additive attention-mask bias, HF convention: (1 - mask) * -10000, shape (B, S)
    mask_bias = (1.0 - attn_mask.astype(jnp.float32)) * -10000.0

    inputs = (ids_col, mask_bias,
              params["word_emb"], params["pos_type_emb"],
              params["emb_ln_g"], params["emb_ln_b"],
              params["qkv_w"], params["qkv_b"], params["ao_w"], params["ao_b"],
              params["ln1_g"], params["ln1_b"], params["i_w"], params["i_b"],
              params["o_w"], params["o_b"], params["ln2_g"], params["ln2_b"],
              params["pool_w"], params["pool_b"], params["fc_w_pad"], params["fc_b_pad"])

    def full_spec(a):
        return pl.BlockSpec(a.shape, lambda i, _nd=a.ndim: (0,) * _nd)

    logits_pad = pl.pallas_call(
        _make_bert_kernel(B, S),
        out_shape=jax.ShapeDtypeStruct((B, C_PAD), jnp.float32),
        grid=(1,),
        in_specs=[full_spec(a) for a in inputs],
        out_specs=pl.BlockSpec((B, C_PAD), lambda i: (0, 0)),
        compiler_params=pltpu.CompilerParams(dimension_semantics=("arbitrary",)),
    )(*inputs)
    return logits_pad[:, :NUM_CLASSES]


if __name__ == "__main__":
    key = jax.random.PRNGKey(0)
    k_param, k_ids = jax.random.split(key)
    params = init_params(k_param)

    B, S = 2, 8
    X = jax.random.randint(k_ids, (B, S), 0, VOCAB, dtype=jnp.int32)
    attn_mask = jnp.array([[1, 1, 1, 1, 1, 1, 1, 1],
                           [1, 1, 1, 1, 1, 0, 0, 0]], dtype=jnp.int32)

    logits = jax.jit(bert_forward)(params, X, attn_mask)
    jax.block_until_ready(logits)
    assert logits.shape == (B, NUM_CLASSES)
    print("KERNEL_OK")
</pallas_src>

<mosaic_0001>
module attributes {stable_mosaic.version = 11 : i64} {
  func.func @kernel(%arg0: i32, %arg1: memref<16x1xi32, #tpu.memory_space<vmem>>, %arg2: memref<2x8xf32, #tpu.memory_space<vmem>>, %arg3: memref<100x32xf32, #tpu.memory_space<vmem>>, %arg4: memref<32x32xf32, #tpu.memory_space<vmem>>, %arg5: memref<1x32xf32, #tpu.memory_space<vmem>>, %arg6: memref<1x32xf32, #tpu.memory_space<vmem>>, %arg7: memref<2x32x96xf32, #tpu.memory_space<vmem>>, %arg8: memref<2x1x96xf32, #tpu.memory_space<vmem>>, %arg9: memref<2x32x32xf32, #tpu.memory_space<vmem>>, %arg10: memref<2x1x32xf32, #tpu.memory_space<vmem>>, %arg11: memref<2x1x32xf32, #tpu.memory_space<vmem>>, %arg12: memref<2x1x32xf32, #tpu.memory_space<vmem>>, %arg13: memref<2x32x64xf32, #tpu.memory_space<vmem>>, %arg14: memref<2x1x64xf32, #tpu.memory_space<vmem>>, %arg15: memref<2x64x32xf32, #tpu.memory_space<vmem>>, %arg16: memref<2x1x32xf32, #tpu.memory_space<vmem>>, %arg17: memref<2x1x32xf32, #tpu.memory_space<vmem>>, %arg18: memref<2x1x32xf32, #tpu.memory_space<vmem>>, %arg19: memref<32x32xf32, #tpu.memory_space<vmem>>, %arg20: memref<1x32xf32, #tpu.memory_space<vmem>>, %arg21: memref<32x128xf32, #tpu.memory_space<vmem>>, %arg22: memref<1x128xf32, #tpu.memory_space<vmem>>, %arg23: memref<2x128xf32, #tpu.memory_space<vmem>>) attributes {dimension_semantics = [#tpu.dimension_semantics<arbitrary>], iteration_bounds = array<i64: 1>, scalar_prefetch = 0 : i64, scratch_operands = 0 : i64, tpu.core_type = #tpu.core_type<tc>, window_params = [{pipeline_mode = #tpu.pipeline_mode<synchronous>, transform_indices = @transform_0, window_bounds = array<i64: 16, 1>}, {pipeline_mode = #tpu.pipeline_mode<synchronous>, transform_indices = @transform_1, window_bounds = array<i64: 2, 8>}, {pipeline_mode = #tpu.pipeline_mode<synchronous>, transform_indices = @transform_2, window_bounds = array<i64: 100, 32>}, {pipeline_mode = #tpu.pipeline_mode<synchronous>, transform_indices = @transform_3, window_bounds = array<i64: 32, 32>}, {pipeline_mode = #tpu.pipeline_mode<synchronous>, transform_indices = @transform_4, window_bounds = array<i64: 1, 32>}, {pipeline_mode = #tpu.pipeline_mode<synchronous>, transform_indices = @transform_5, window_bounds = array<i64: 1, 32>}, {pipeline_mode = #tpu.pipeline_mode<synchronous>, transform_indices = @transform_6, window_bounds = array<i64: 2, 32, 96>}, {pipeline_mode = #tpu.pipeline_mode<synchronous>, transform_indices = @transform_7, window_bounds = array<i64: 2, 1, 96>}, {pipeline_mode = #tpu.pipeline_mode<synchronous>, transform_indices = @transform_8, window_bounds = array<i64: 2, 32, 32>}, {pipeline_mode = #tpu.pipeline_mode<synchronous>, transform_indices = @transform_9, window_bounds = array<i64: 2, 1, 32>}, {pipeline_mode = #tpu.pipeline_mode<synchronous>, transform_indices = @transform_10, window_bounds = array<i64: 2, 1, 32>}, {pipeline_mode = #tpu.pipeline_mode<synchronous>, transform_indices = @transform_11, window_bounds = array<i64: 2, 1, 32>}, {pipeline_mode = #tpu.pipeline_mode<synchronous>, transform_indices = @transform_12, window_bounds = array<i64: 2, 32, 64>}, {pipeline_mode = #tpu.pipeline_mode<synchronous>, transform_indices = @transform_13, window_bounds = array<i64: 2, 1, 64>}, {pipeline_mode = #tpu.pipeline_mode<synchronous>, transform_indices = @transform_14, window_bounds = array<i64: 2, 64, 32>}, {pipeline_mode = #tpu.pipeline_mode<synchronous>, transform_indices = @transform_15, window_bounds = array<i64: 2, 1, 32>}, {pipeline_mode = #tpu.pipeline_mode<synchronous>, transform_indices = @transform_16, window_bounds = array<i64: 2, 1, 32>}, {pipeline_mode = #tpu.pipeline_mode<synchronous>, transform_indices = @transform_17, window_bounds = array<i64: 2, 1, 32>}, {pipeline_mode = #tpu.pipeline_mode<synchronous>, transform_indices = @transform_18, window_bounds = array<i64: 32, 32>}, {pipeline_mode = #tpu.pipeline_mode<synchronous>, transform_indices = @transform_19, window_bounds = array<i64: 1, 32>}, {pipeline_mode = #tpu.pipeline_mode<synchronous>, transform_indices = @transform_20, window_bounds = array<i64: 32, 128>}, {pipeline_mode = #tpu.pipeline_mode<synchronous>, transform_indices = @transform_21, window_bounds = array<i64: 1, 128>}, {pipeline_mode = #tpu.pipeline_mode<synchronous>, transform_indices = @transform_22, window_bounds = array<i64: 2, 128>}]} {
    %c0 = arith.constant 0 : index
    %c0_0 = arith.constant 0 : index
    %0 = vector.load %arg1[%c0, %c0_0] : memref<16x1xi32, #tpu.memory_space<vmem>>, vector<16x1xi32>
    %1 = tpu.iota {dimensions = array<i32: 1>} : vector<1x100xi32>
    %2 = vector.broadcast %0 : vector<16x1xi32> to vector<16x100xi32>
    %3 = vector.broadcast %1 : vector<1x100xi32> to vector<16x100xi32>
    %4 = arith.cmpi eq, %2, %3 : vector<16x100xi32>
    %5 = arith.extui %4 : vector<16x100xi1> to vector<16x100xi32>
    %6 = arith.sitofp %5 : vector<16x100xi32> to vector<16x100xf32>
    %c0_1 = arith.constant 0 : index
    %c0_2 = arith.constant 0 : index
    %7 = vector.load %arg3[%c0_1, %c0_2] : memref<100x32xf32, #tpu.memory_space<vmem>>, vector<100x32xf32>
    %cst = arith.constant dense<0.000000e+00> : vector<16x32xf32>
    %8 = tpu.matmul %6, %7, %cst {dimension_numbers = #tpu.dot_dimension_numbers<[1], [0], [0], [1], [0, 0, 1, 1], [], []>} : vector<16x100xf32>, vector<100x32xf32>, vector<16x32xf32> -> vector<16x32xf32>
    %c0_3 = arith.constant 0 : index
    %c0_4 = arith.constant 0 : index
    %9 = vector.load %arg4[%c0_3, %c0_4] : memref<32x32xf32, #tpu.memory_space<vmem>>, vector<32x32xf32>
    %10 = vector.extract_strided_slice %9 {offsets = [0, 0], sizes = [8, 32], strides = [1, 1]} : vector<32x32xf32> to vector<8x32xf32>
    %11 = tpu.concatenate %10, %10 in 0 : vector<8x32xf32>, vector<8x32xf32> -> vector<16x32xf32>
    %12 = arith.addf %8, %11 : vector<16x32xf32>
    %c0_5 = arith.constant 0 : index
    %c0_6 = arith.constant 0 : index
    %13 = vector.load %arg5[%c0_5, %c0_6] : memref<1x32xf32, #tpu.memory_space<vmem>>, vector<1x32xf32>
    %c0_7 = arith.constant 0 : index
    %c0_8 = arith.constant 0 : index
    %14 = vector.load %arg6[%c0_7, %c0_8] : memref<1x32xf32, #tpu.memory_space<vmem>>, vector<1x32xf32>
    %cst_9 = arith.constant dense<0.000000e+00> : vector<16xf32>
    %15 = vector.multi_reduction <add>, %12, %cst_9 [1] : vector<16x32xf32> to vector<16xf32>
    %16 = vector.shape_cast %15 : vector<16xf32> to vector<16x1xf32>
    %cst_10 = arith.constant 3.200000e+01 : f32
    %17 = vector.broadcast %cst_10 : f32 to vector<16x1xf32>
    %18 = arith.divf %16, %17 : vector<16x1xf32>
    %19 = vector.broadcast %18 : vector<16x1xf32> to vector<16x32xf32>
    %20 = arith.subf %12, %19 : vector<16x32xf32>
    %21 = arith.mulf %20, %20 : vector<16x32xf32>
    %cst_11 = arith.constant dense<0.000000e+00> : vector<16xf32>
    %22 = vector.multi_reduction <add>, %21, %cst_11 [1] : vector<16x32xf32> to vector<16xf32>
    %23 = vector.shape_cast %22 : vector<16xf32> to vector<16x1xf32>
    %cst_12 = arith.constant 3.200000e+01 : f32
    %24 = vector.broadcast %cst_12 : f32 to vector<16x1xf32>
    %25 = arith.divf %23, %24 : vector<16x1xf32>
    %26 = vector.broadcast %18 : vector<16x1xf32> to vector<16x32xf32>
    %27 = arith.subf %12, %26 : vector<16x32xf32>
    %cst_13 = arith.constant 9.99999996E-13 : f32
    %28 = vector.broadcast %cst_13 : f32 to vector<16x1xf32>
    %29 = arith.addf %25, %28 : vector<16x1xf32>
    %30 = math.rsqrt %29 : vector<16x1xf32>
    %31 = vector.broadcast %30 : vector<16x1xf32> to vector<16x32xf32>
    %32 = arith.mulf %27, %31 : vector<16x32xf32>
    %33 = vector.broadcast %13 : vector<1x32xf32> to vector<16x32xf32>
    %34 = arith.mulf %32, %33 : vector<16x32xf32>
    %35 = vector.broadcast %14 : vector<1x32xf32> to vector<16x32xf32>
    %36 = arith.addf %34, %35 : vector<16x32xf32>
    %c0_14 = arith.constant 0 : index
    %c0_15 = arith.constant 0 : index
    %37 = vector.load %arg2[%c0_14, %c0_15] : memref<2x8xf32, #tpu.memory_space<vmem>>, vector<2x8xf32>
    %c0_16 = arith.constant 0 : index
    %c0_17 = arith.constant 0 : index
    %c0_18 = arith.constant 0 : index
    %38 = vector.load %arg7[%c0_16, %c0_17, %c0_18] : memref<2x32x96xf32, #tpu.memory_space<vmem>>, vector<1x32x96xf32>
    %39 = vector.shape_cast %38 : vector<1x32x96xf32> to vector<32x96xf32>
    %cst_19 = arith.constant dense<0.000000e+00> : vector<16x96xf32>
    %40 = tpu.matmul %36, %39, %cst_19 {dimension_numbers = #tpu.dot_dimension_numbers<[1], [0], [0], [1], [0, 0, 1, 1], [], []>} : vector<16x32xf32>, vector<32x96xf32>, vector<16x96xf32> -> vector<16x96xf32>
    %c0_20 = arith.constant 0 : index
    %c0_21 = arith.constant 0 : index
    %c0_22 = arith.constant 0 : index
    %41 = vector.load %arg8[%c0_20, %c0_21, %c0_22] : memref<2x1x96xf32, #tpu.memory_space<vmem>>, vector<1x1x96xf32>
    %42 = vector.shape_cast %41 : vector<1x1x96xf32> to vector<1x96xf32>
    %43 = vector.broadcast %42 : vector<1x96xf32> to vector<16x96xf32>
    %44 = arith.addf %40, %43 : vector<16x96xf32>
    %c0_23 = arith.constant 0 : index
    %c0_24 = arith.constant 0 : index
    %c0_25 = arith.constant 0 : index
    %45 = vector.load %arg9[%c0_23, %c0_24, %c0_25] : memref<2x32x32xf32, #tpu.memory_space<vmem>>, vector<1x32x32xf32>
    %46 = vector.shape_cast %45 : vector<1x32x32xf32> to vector<32x32xf32>
    %47 = vector.extract_strided_slice %44 {offsets = [0, 0], sizes = [8, 96], strides = [1, 1]} : vector<16x96xf32> to vector<8x96xf32>
    %48 = vector.extract_strided_slice %37 {offsets = [0, 0], sizes = [1, 8], strides = [1, 1]} : vector<2x8xf32> to vector<1x8xf32>
    %49 = vector.extract_strided_slice %47 {offsets = [0, 0], sizes = [8, 8], strides = [1, 1]} : vector<8x96xf32> to vector<8x8xf32>
    %50 = vector.extract_strided_slice %47 {offsets = [0, 32], sizes = [8, 8], strides = [1, 1]} : vector<8x96xf32> to vector<8x8xf32>
    %51 = vector.extract_strided_slice %47 {offsets = [0, 64], sizes = [8, 8], strides = [1, 1]} : vector<8x96xf32> to vector<8x8xf32>
    %cst_26 = arith.constant dense<0.000000e+00> : vector<8x8xf32>
    %52 = tpu.matmul %49, %50, %cst_26 {dimension_numbers = #tpu.dot_dimension_numbers<[1], [1], [0], [0], [0, 0, 1, 0], [], []>} : vector<8x8xf32>, vector<8x8xf32>, vector<8x8xf32> -> vector<8x8xf32>
    %53 = vector.broadcast %48 : vector<1x8xf32> to vector<8x8xf32>
    %54 = arith.addf %52, %53 : vector<8x8xf32>
    %cst_27 = arith.constant dense<0xFF800000> : vector<8xf32>
    %55 = vector.multi_reduction <maximumf>, %54, %cst_27 [1] : vector<8x8xf32> to vector<8xf32>
    %56 = vector.shape_cast %55 : vector<8xf32> to vector<8x1xf32>
    %57 = vector.broadcast %56 : vector<8x1xf32> to vector<8x8xf32>
    %58 = arith.subf %54, %57 : vector<8x8xf32>
    %59 = math.exp %58 : vector<8x8xf32>
    %cst_28 = arith.constant dense<0.000000e+00> : vector<8xf32>
    %60 = vector.multi_reduction <add>, %59, %cst_28 [1] : vector<8x8xf32> to vector<8xf32>
    %61 = vector.shape_cast %60 : vector<8xf32> to vector<8x1xf32>
    %62 = tpu.reciprocal %61 {approx = true} : vector<8x1xf32> -> vector<8x1xf32>
    %63 = vector.broadcast %62 : vector<8x1xf32> to vector<8x8xf32>
    %64 = arith.mulf %59, %63 : vector<8x8xf32>
    %cst_29 = arith.constant dense<0.000000e+00> : vector<8x8xf32>
    %65 = tpu.matmul %64, %51, %cst_29 {dimension_numbers = #tpu.dot_dimension_numbers<[1], [0], [0], [1], [0, 0, 1, 1], [], []>} : vector<8x8xf32>, vector<8x8xf32>, vector<8x8xf32> -> vector<8x8xf32>
    %66 = vector.extract_strided_slice %46 {offsets = [0, 0], sizes = [8, 32], strides = [1, 1]} : vector<32x32xf32> to vector<8x32xf32>
    %cst_30 = arith.constant dense<0.000000e+00> : vector<8x32xf32>
    %67 = tpu.matmul %65, %66, %cst_30 {dimension_numbers = #tpu.dot_dimension_numbers<[1], [0], [0], [1], [0, 0, 1, 1], [], []>} : vector<8x8xf32>, vector<8x32xf32>, vector<8x32xf32> -> vector<8x32xf32>
    %68 = vector.extract_strided_slice %47 {offsets = [0, 8], sizes = [8, 8], strides = [1, 1]} : vector<8x96xf32> to vector<8x8xf32>
    %69 = vector.extract_strided_slice %47 {offsets = [0, 40], sizes = [8, 8], strides = [1, 1]} : vector<8x96xf32> to vector<8x8xf32>
    %70 = vector.extract_strided_slice %47 {offsets = [0, 72], sizes = [8, 8], strides = [1, 1]} : vector<8x96xf32> to vector<8x8xf32>
    %cst_31 = arith.constant dense<0.000000e+00> : vector<8x8xf32>
    %71 = tpu.matmul %68, %69, %cst_31 {dimension_numbers = #tpu.dot_dimension_numbers<[1], [1], [0], [0], [0, 0, 1, 0], [], []>} : vector<8x8xf32>, vector<8x8xf32>, vector<8x8xf32> -> vector<8x8xf32>
    %72 = vector.broadcast %48 : vector<1x8xf32> to vector<8x8xf32>
    %73 = arith.addf %71, %72 : vector<8x8xf32>
    %cst_32 = arith.constant dense<0xFF800000> : vector<8xf32>
    %74 = vector.multi_reduction <maximumf>, %73, %cst_32 [1] : vector<8x8xf32> to vector<8xf32>
    %75 = vector.shape_cast %74 : vector<8xf32> to vector<8x1xf32>
    %76 = vector.broadcast %75 : vector<8x1xf32> to vector<8x8xf32>
    %77 = arith.subf %73, %76 : vector<8x8xf32>
    %78 = math.exp %77 : vector<8x8xf32>
    %cst_33 = arith.constant dense<0.000000e+00> : vector<8xf32>
    %79 = vector.multi_reduction <add>, %78, %cst_33 [1] : vector<8x8xf32> to vector<8xf32>
    %80 = vector.shape_cast %79 : vector<8xf32> to vector<8x1xf32>
    %81 = tpu.reciprocal %80 {approx = true} : vector<8x1xf32> -> vector<8x1xf32>
    %82 = vector.broadcast %81 : vector<8x1xf32> to vector<8x8xf32>
    %83 = arith.mulf %78, %82 : vector<8x8xf32>
    %cst_34 = arith.constant dense<0.000000e+00> : vector<8x8xf32>
    %84 = tpu.matmul %83, %70, %cst_34 {dimension_numbers = #tpu.dot_dimension_numbers<[1], [0], [0], [1], [0, 0, 1, 1], [], []>} : vector<8x8xf32>, vector<8x8xf32>, vector<8x8xf32> -> vector<8x8xf32>
    %85 = vector.extract_strided_slice %46 {offsets = [8, 0], sizes = [8, 32], strides = [1, 1]} : vector<32x32xf32> to vector<8x32xf32>
    %cst_35 = arith.constant dense<0.000000e+00> : vector<8x32xf32>
    %86 = tpu.matmul %84, %85, %cst_35 {dimension_numbers = #tpu.dot_dimension_numbers<[1], [0], [0], [1], [0, 0, 1, 1], [], []>} : vector<8x8xf32>, vector<8x32xf32>, vector<8x32xf32> -> vector<8x32xf32>
    %87 = arith.addf %67, %86 : vector<8x32xf32>
    %88 = vector.extract_strided_slice %47 {offsets = [0, 16], sizes = [8, 8], strides = [1, 1]} : vector<8x96xf32> to vector<8x8xf32>
    %89 = vector.extract_strided_slice %47 {offsets = [0, 48], sizes = [8, 8], strides = [1, 1]} : vector<8x96xf32> to vector<8x8xf32>
    %90 = vector.extract_strided_slice %47 {offsets = [0, 80], sizes = [8, 8], strides = [1, 1]} : vector<8x96xf32> to vector<8x8xf32>
    %cst_36 = arith.constant dense<0.000000e+00> : vector<8x8xf32>
    %91 = tpu.matmul %88, %89, %cst_36 {dimension_numbers = #tpu.dot_dimension_numbers<[1], [1], [0], [0], [0, 0, 1, 0], [], []>} : vector<8x8xf32>, vector<8x8xf32>, vector<8x8xf32> -> vector<8x8xf32>
    %92 = vector.broadcast %48 : vector<1x8xf32> to vector<8x8xf32>
    %93 = arith.addf %91, %92 : vector<8x8xf32>
    %cst_37 = arith.constant dense<0xFF800000> : vector<8xf32>
    %94 = vector.multi_reduction <maximumf>, %93, %cst_37 [1] : vector<8x8xf32> to vector<8xf32>
    %95 = vector.shape_cast %94 : vector<8xf32> to vector<8x1xf32>
    %96 = vector.broadcast %95 : vector<8x1xf32> to vector<8x8xf32>
    %97 = arith.subf %93, %96 : vector<8x8xf32>
    %98 = math.exp %97 : vector<8x8xf32>
    %cst_38 = arith.constant dense<0.000000e+00> : vector<8xf32>
    %99 = vector.multi_reduction <add>, %98, %cst_38 [1] : vector<8x8xf32> to vector<8xf32>
    %100 = vector.shape_cast %99 : vector<8xf32> to vector<8x1xf32>
    %101 = tpu.reciprocal %100 {approx = true} : vector<8x1xf32> -> vector<8x1xf32>
    %102 = vector.broadcast %101 : vector<8x1xf32> to vector<8x8xf32>
    %103 = arith.mulf %98, %102 : vector<8x8xf32>
    %cst_39 = arith.constant dense<0.000000e+00> : vector<8x8xf32>
    %104 = tpu.matmul %103, %90, %cst_39 {dimension_numbers = #tpu.dot_dimension_numbers<[1], [0], [0], [1], [0, 0, 1, 1], [], []>} : vector<8x8xf32>, vector<8x8xf32>, vector<8x8xf32> -> vector<8x8xf32>
    %105 = vector.extract_strided_slice %46 {offsets = [16, 0], sizes = [8, 32], strides = [1, 1]} : vector<32x32xf32> to vector<8x32xf32>
    %cst_40 = arith.constant dense<0.000000e+00> : vector<8x32xf32>
    %106 = tpu.matmul %104, %105, %cst_40 {dimension_numbers = #tpu.dot_dimension_numbers<[1], [0], [0], [1], [0, 0, 1, 1], [], []>} : vector<8x8xf32>, vector<8x32xf32>, vector<8x32xf32> -> vector<8x32xf32>
    %107 = arith.addf %87, %106 : vector<8x32xf32>
    %108 = vector.extract_strided_slice %47 {offsets = [0, 24], sizes = [8, 8], strides = [1, 1]} : vector<8x96xf32> to vector<8x8xf32>
    %109 = vector.extract_strided_slice %47 {offsets = [0, 56], sizes = [8, 8], strides = [1, 1]} : vector<8x96xf32> to vector<8x8xf32>
    %110 = vector.extract_strided_slice %47 {offsets = [0, 88], sizes = [8, 8], strides = [1, 1]} : vector<8x96xf32> to vector<8x8xf32>
    %cst_41 = arith.constant dense<0.000000e+00> : vector<8x8xf32>
    %111 = tpu.matmul %108, %109, %cst_41 {dimension_numbers = #tpu.dot_dimension_numbers<[1], [1], [0], [0], [0, 0, 1, 0], [], []>} : vector<8x8xf32>, vector<8x8xf32>, vector<8x8xf32> -> vector<8x8xf32>
    %112 = vector.broadcast %48 : vector<1x8xf32> to vector<8x8xf32>
    %113 = arith.addf %111, %112 : vector<8x8xf32>
    %cst_42 = arith.constant dense<0xFF800000> : vector<8xf32>
    %114 = vector.multi_reduction <maximumf>, %113, %cst_42 [1] : vector<8x8xf32> to vector<8xf32>
    %115 = vector.shape_cast %114 : vector<8xf32> to vector<8x1xf32>
    %116 = vector.broadcast %115 : vector<8x1xf32> to vector<8x8xf32>
    %117 = arith.subf %113, %116 : vector<8x8xf32>
    %118 = math.exp %117 : vector<8x8xf32>
    %cst_43 = arith.constant dense<0.000000e+00> : vector<8xf32>
    %119 = vector.multi_reduction <add>, %118, %cst_43 [1] : vector<8x8xf32> to vector<8xf32>
    %120 = vector.shape_cast %119 : vector<8xf32> to vector<8x1xf32>
    %121 = tpu.reciprocal %120 {approx = true} : vector<8x1xf32> -> vector<8x1xf32>
    %122 = vector.broadcast %121 : vector<8x1xf32> to vector<8x8xf32>
    %123 = arith.mulf %118, %122 : vector<8x8xf32>
    %cst_44 = arith.constant dense<0.000000e+00> : vector<8x8xf32>
    %124 = tpu.matmul %123, %110, %cst_44 {dimension_numbers = #tpu.dot_dimension_numbers<[1], [0], [0], [1], [0, 0, 1, 1], [], []>} : vector<8x8xf32>, vector<8x8xf32>, vector<8x8xf32> -> vector<8x8xf32>
    %125 = vector.extract_strided_slice %46 {offsets = [24, 0], sizes = [8, 32], strides = [1, 1]} : vector<32x32xf32> to vector<8x32xf32>
    %cst_45 = arith.constant dense<0.000000e+00> : vector<8x32xf32>
    %126 = tpu.matmul %124, %125, %cst_45 {dimension_numbers = #tpu.dot_dimension_numbers<[1], [0], [0], [1], [0, 0, 1, 1], [], []>} : vector<8x8xf32>, vector<8x32xf32>, vector<8x32xf32> -> vector<8x32xf32>
    %127 = arith.addf %107, %126 : vector<8x32xf32>
    %128 = vector.extract_strided_slice %44 {offsets = [8, 0], sizes = [8, 96], strides = [1, 1]} : vector<16x96xf32> to vector<8x96xf32>
    %129 = vector.extract_strided_slice %37 {offsets = [1, 0], sizes = [1, 8], strides = [1, 1]} : vector<2x8xf32> to vector<1x8xf32>
    %130 = vector.extract_strided_slice %128 {offsets = [0, 0], sizes = [8, 8], strides = [1, 1]} : vector<8x96xf32> to vector<8x8xf32>
    %131 = vector.extract_strided_slice %128 {offsets = [0, 32], sizes = [8, 8], strides = [1, 1]} : vector<8x96xf32> to vector<8x8xf32>
    %132 = vector.extract_strided_slice %128 {offsets = [0, 64], sizes = [8, 8], strides = [1, 1]} : vector<8x96xf32> to vector<8x8xf32>
    %cst_46 = arith.constant dense<0.000000e+00> : vector<8x8xf32>
    %133 = tpu.matmul %130, %131, %cst_46 {dimension_numbers = #tpu.dot_dimension_numbers<[1], [1], [0], [0], [0, 0, 1, 0], [], []>} : vector<8x8xf32>, vector<8x8xf32>, vector<8x8xf32> -> vector<8x8xf32>
    %134 = vector.broadcast %129 : vector<1x8xf32> to vector<8x8xf32>
    %135 = arith.addf %133, %134 : vector<8x8xf32>
    %cst_47 = arith.constant dense<0xFF800000> : vector<8xf32>
    %136 = vector.multi_reduction <maximumf>, %135, %cst_47 [1] : vector<8x8xf32> to vector<8xf32>
    %137 = vector.shape_cast %136 : vector<8xf32> to vector<8x1xf32>
    %138 = vector.broadcast %137 : vector<8x1xf32> to vector<8x8xf32>
    %139 = arith.subf %135, %138 : vector<8x8xf32>
    %140 = math.exp %139 : vector<8x8xf32>
    %cst_48 = arith.constant dense<0.000000e+00> : vector<8xf32>
    %141 = vector.multi_reduction <add>, %140, %cst_48 [1] : vector<8x8xf32> to vector<8xf32>
    %142 = vector.shape_cast %141 : vector<8xf32> to vector<8x1xf32>
    %143 = tpu.reciprocal %142 {approx = true} : vector<8x1xf32> -> vector<8x1xf32>
    %144 = vector.broadcast %143 : vector<8x1xf32> to vector<8x8xf32>
    %145 = arith.mulf %140, %144 : vector<8x8xf32>
    %cst_49 = arith.constant dense<0.000000e+00> : vector<8x8xf32>
    %146 = tpu.matmul %145, %132, %cst_49 {dimension_numbers = #tpu.dot_dimension_numbers<[1], [0], [0], [1], [0, 0, 1, 1], [], []>} : vector<8x8xf32>, vector<8x8xf32>, vector<8x8xf32> -> vector<8x8xf32>
    %147 = vector.extract_strided_slice %46 {offsets = [0, 0], sizes = [8, 32], strides = [1, 1]} : vector<32x32xf32> to vector<8x32xf32>
    %cst_50 = arith.constant dense<0.000000e+00> : vector<8x32xf32>
    %148 = tpu.matmul %146, %147, %cst_50 {dimension_numbers = #tpu.dot_dimension_numbers<[1], [0], [0], [1], [0, 0, 1, 1], [], []>} : vector<8x8xf32>, vector<8x32xf32>, vector<8x32xf32> -> vector<8x32xf32>
    %149 = vector.extract_strided_slice %128 {offsets = [0, 8], sizes = [8, 8], strides = [1, 1]} : vector<8x96xf32> to vector<8x8xf32>
    %150 = vector.extract_strided_slice %128 {offsets = [0, 40], sizes = [8, 8], strides = [1, 1]} : vector<8x96xf32> to vector<8x8xf32>
    %151 = vector.extract_strided_slice %128 {offsets = [0, 72], sizes = [8, 8], strides = [1, 1]} : vector<8x96xf32> to vector<8x8xf32>
    %cst_51 = arith.constant dense<0.000000e+00> : vector<8x8xf32>
    %152 = tpu.matmul %149, %150, %cst_51 {dimension_numbers = #tpu.dot_dimension_numbers<[1], [1], [0], [0], [0, 0, 1, 0], [], []>} : vector<8x8xf32>, vector<8x8xf32>, vector<8x8xf32> -> vector<8x8xf32>
    %153 = vector.broadcast %129 : vector<1x8xf32> to vector<8x8xf32>
    %154 = arith.addf %152, %153 : vector<8x8xf32>
    %cst_52 = arith.constant dense<0xFF800000> : vector<8xf32>
    %155 = vector.multi_reduction <maximumf>, %154, %cst_52 [1] : vector<8x8xf32> to vector<8xf32>
    %156 = vector.shape_cast %155 : vector<8xf32> to vector<8x1xf32>
    %157 = vector.broadcast %156 : vector<8x1xf32> to vector<8x8xf32>
    %158 = arith.subf %154, %157 : vector<8x8xf32>
    %159 = math.exp %158 : vector<8x8xf32>
    %cst_53 = arith.constant dense<0.000000e+00> : vector<8xf32>
    %160 = vector.multi_reduction <add>, %159, %cst_53 [1] : vector<8x8xf32> to vector<8xf32>
    %161 = vector.shape_cast %160 : vector<8xf32> to vector<8x1xf32>
    %162 = tpu.reciprocal %161 {approx = true} : vector<8x1xf32> -> vector<8x1xf32>
    %163 = vector.broadcast %162 : vector<8x1xf32> to vector<8x8xf32>
    %164 = arith.mulf %159, %163 : vector<8x8xf32>
    %cst_54 = arith.constant dense<0.000000e+00> : vector<8x8xf32>
    %165 = tpu.matmul %164, %151, %cst_54 {dimension_numbers = #tpu.dot_dimension_numbers<[1], [0], [0], [1], [0, 0, 1, 1], [], []>} : vector<8x8xf32>, vector<8x8xf32>, vector<8x8xf32> -> vector<8x8xf32>
    %166 = vector.extract_strided_slice %46 {offsets = [8, 0], sizes = [8, 32], strides = [1, 1]} : vector<32x32xf32> to vector<8x32xf32>
    %cst_55 = arith.constant dense<0.000000e+00> : vector<8x32xf32>
    %167 = tpu.matmul %165, %166, %cst_55 {dimension_numbers = #tpu.dot_dimension_numbers<[1], [0], [0], [1], [0, 0, 1, 1], [], []>} : vector<8x8xf32>, vector<8x32xf32>, vector<8x32xf32> -> vector<8x32xf32>
    %168 = arith.addf %148, %167 : vector<8x32xf32>
    %169 = vector.extract_strided_slice %128 {offsets = [0, 16], sizes = [8, 8], strides = [1, 1]} : vector<8x96xf32> to vector<8x8xf32>
    %170 = vector.extract_strided_slice %128 {offsets = [0, 48], sizes = [8, 8], strides = [1, 1]} : vector<8x96xf32> to vector<8x8xf32>
    %171 = vector.extract_strided_slice %128 {offsets = [0, 80], sizes = [8, 8], strides = [1, 1]} : vector<8x96xf32> to vector<8x8xf32>
    %cst_56 = arith.constant dense<0.000000e+00> : vector<8x8xf32>
    %172 = tpu.matmul %169, %170, %cst_56 {dimension_numbers = #tpu.dot_dimension_numbers<[1], [1], [0], [0], [0, 0, 1, 0], [], []>} : vector<8x8xf32>, vector<8x8xf32>, vector<8x8xf32> -> vector<8x8xf32>
    %173 = vector.broadcast %129 : vector<1x8xf32> to vector<8x8xf32>
    %174 = arith.addf %172, %173 : vector<8x8xf32>
    %cst_57 = arith.constant dense<0xFF800000> : vector<8xf32>
    %175 = vector.multi_reduction <maximumf>, %174, %cst_57 [1] : vector<8x8xf32> to vector<8xf32>
    %176 = vector.shape_cast %175 : vector<8xf32> to vector<8x1xf32>
    %177 = vector.broadcast %176 : vector<8x1xf32> to vector<8x8xf32>
    %178 = arith.subf %174, %177 : vector<8x8xf32>
    %179 = math.exp %178 : vector<8x8xf32>
    %cst_58 = arith.constant dense<0.000000e+00> : vector<8xf32>
    %180 = vector.multi_reduction <add>, %179, %cst_58 [1] : vector<8x8xf32> to vector<8xf32>
    %181 = vector.shape_cast %180 : vector<8xf32> to vector<8x1xf32>
    %182 = tpu.reciprocal %181 {approx = true} : vector<8x1xf32> -> vector<8x1xf32>
    %183 = vector.broadcast %182 : vector<8x1xf32> to vector<8x8xf32>
    %184 = arith.mulf %179, %183 : vector<8x8xf32>
    %cst_59 = arith.constant dense<0.000000e+00> : vector<8x8xf32>
    %185 = tpu.matmul %184, %171, %cst_59 {dimension_numbers = #tpu.dot_dimension_numbers<[1], [0], [0], [1], [0, 0, 1, 1], [], []>} : vector<8x8xf32>, vector<8x8xf32>, vector<8x8xf32> -> vector<8x8xf32>
    %186 = vector.extract_strided_slice %46 {offsets = [16, 0], sizes = [8, 32], strides = [1, 1]} : vector<32x32xf32> to vector<8x32xf32>
    %cst_60 = arith.constant dense<0.000000e+00> : vector<8x32xf32>
    %187 = tpu.matmul %185, %186, %cst_60 {dimension_numbers = #tpu.dot_dimension_numbers<[1], [0], [0], [1], [0, 0, 1, 1], [], []>} : vector<8x8xf32>, vector<8x32xf32>, vector<8x32xf32> -> vector<8x32xf32>
    %188 = arith.addf %168, %187 : vector<8x32xf32>
    %189 = vector.extract_strided_slice %128 {offsets = [0, 24], sizes = [8, 8], strides = [1, 1]} : vector<8x96xf32> to vector<8x8xf32>
    %190 = vector.extract_strided_slice %128 {offsets = [0, 56], sizes = [8, 8], strides = [1, 1]} : vector<8x96xf32> to vector<8x8xf32>
    %191 = vector.extract_strided_slice %128 {offsets = [0, 88], sizes = [8, 8], strides = [1, 1]} : vector<8x96xf32> to vector<8x8xf32>
    %cst_61 = arith.constant dense<0.000000e+00> : vector<8x8xf32>
    %192 = tpu.matmul %189, %190, %cst_61 {dimension_numbers = #tpu.dot_dimension_numbers<[1], [1], [0], [0], [0, 0, 1, 0], [], []>} : vector<8x8xf32>, vector<8x8xf32>, vector<8x8xf32> -> vector<8x8xf32>
    %193 = vector.broadcast %129 : vector<1x8xf32> to vector<8x8xf32>
    %194 = arith.addf %192, %193 : vector<8x8xf32>
    %cst_62 = arith.constant dense<0xFF800000> : vector<8xf32>
    %195 = vector.multi_reduction <maximumf>, %194, %cst_62 [1] : vector<8x8xf32> to vector<8xf32>
    %196 = vector.shape_cast %195 : vector<8xf32> to vector<8x1xf32>
    %197 = vector.broadcast %196 : vector<8x1xf32> to vector<8x8xf32>
    %198 = arith.subf %194, %197 : vector<8x8xf32>
    %199 = math.exp %198 : vector<8x8xf32>
    %cst_63 = arith.constant dense<0.000000e+00> : vector<8xf32>
    %200 = vector.multi_reduction <add>, %199, %cst_63 [1] : vector<8x8xf32> to vector<8xf32>
    %201 = vector.shape_cast %200 : vector<8xf32> to vector<8x1xf32>
    %202 = tpu.reciprocal %201 {approx = true} : vector<8x1xf32> -> vector<8x1xf32>
    %203 = vector.broadcast %202 : vector<8x1xf32> to vector<8x8xf32>
    %204 = arith.mulf %199, %203 : vector<8x8xf32>
    %cst_64 = arith.constant dense<0.000000e+00> : vector<8x8xf32>
    %205 = tpu.matmul %204, %191, %cst_64 {dimension_numbers = #tpu.dot_dimension_numbers<[1], [0], [0], [1], [0, 0, 1, 1], [], []>} : vector<8x8xf32>, vector<8x8xf32>, vector<8x8xf32> -> vector<8x8xf32>
    %206 = vector.extract_strided_slice %46 {offsets = [24, 0], sizes = [8, 32], strides = [1, 1]} : vector<32x32xf32> to vector<8x32xf32>
    %cst_65 = arith.constant dense<0.000000e+00> : vector<8x32xf32>
    %207 = tpu.matmul %205, %206, %cst_65 {dimension_numbers = #tpu.dot_dimension_numbers<[1], [0], [0], [1], [0, 0, 1, 1], [], []>} : vector<8x8xf32>, vector<8x32xf32>, vector<8x32xf32> -> vector<8x32xf32>
    %208 = arith.addf %188, %207 : vector<8x32xf32>
    %209 = tpu.concatenate %127, %208 in 0 : vector<8x32xf32>, vector<8x32xf32> -> vector<16x32xf32>
    %c0_66 = arith.constant 0 : index
    %c0_67 = arith.constant 0 : index
    %c0_68 = arith.constant 0 : index
    %210 = vector.load %arg10[%c0_66, %c0_67, %c0_68] : memref<2x1x32xf32, #tpu.memory_space<vmem>>, vector<1x1x32xf32>
    %211 = vector.shape_cast %210 : vector<1x1x32xf32> to vector<1x32xf32>
    %212 = vector.broadcast %211 : vector<1x32xf32> to vector<16x32xf32>
    %213 = arith.addf %209, %212 : vector<16x32xf32>
    %214 = arith.addf %213, %36 : vector<16x32xf32>
    %c0_69 = arith.constant 0 : index
    %c0_70 = arith.constant 0 : index
    %c0_71 = arith.constant 0 : index
    %215 = vector.load %arg11[%c0_69, %c0_70, %c0_71] : memref<2x1x32xf32, #tpu.memory_space<vmem>>, vector<1x1x32xf32>
    %216 = vector.shape_cast %215 : vector<1x1x32xf32> to vector<1x32xf32>
    %c0_72 = arith.constant 0 : index
    %c0_73 = arith.constant 0 : index
    %c0_74 = arith.constant 0 : index
    %217 = vector.load %arg12[%c0_72, %c0_73, %c0_74] : memref<2x1x32xf32, #tpu.memory_space<vmem>>, vector<1x1x32xf32>
    %218 = vector.shape_cast %217 : vector<1x1x32xf32> to vector<1x32xf32>
    %cst_75 = arith.constant dense<0.000000e+00> : vector<16xf32>
    %219 = vector.multi_reduction <add>, %214, %cst_75 [1] : vector<16x32xf32> to vector<16xf32>
    %220 = vector.shape_cast %219 : vector<16xf32> to vector<16x1xf32>
    %cst_76 = arith.constant 3.200000e+01 : f32
    %221 = vector.broadcast %cst_76 : f32 to vector<16x1xf32>
    %222 = arith.divf %220, %221 : vector<16x1xf32>
    %223 = vector.broadcast %222 : vector<16x1xf32> to vector<16x32xf32>
    %224 = arith.subf %214, %223 : vector<16x32xf32>
    %225 = arith.mulf %224, %224 : vector<16x32xf32>
    %cst_77 = arith.constant dense<0.000000e+00> : vector<16xf32>
    %226 = vector.multi_reduction <add>, %225, %cst_77 [1] : vector<16x32xf32> to vector<16xf32>
    %227 = vector.shape_cast %226 : vector<16xf32> to vector<16x1xf32>
    %cst_78 = arith.constant 3.200000e+01 : f32
    %228 = vector.broadcast %cst_78 : f32 to vector<16x1xf32>
    %229 = arith.divf %227, %228 : vector<16x1xf32>
    %230 = vector.broadcast %222 : vector<16x1xf32> to vector<16x32xf32>
    %231 = arith.subf %214, %230 : vector<16x32xf32>
    %cst_79 = arith.constant 9.99999996E-13 : f32
    %232 = vector.broadcast %cst_79 : f32 to vector<16x1xf32>
    %233 = arith.addf %229, %232 : vector<16x1xf32>
    %234 = math.rsqrt %233 : vector<16x1xf32>
    %235 = vector.broadcast %234 : vector<16x1xf32> to vector<16x32xf32>
    %236 = arith.mulf %231, %235 : vector<16x32xf32>
    %237 = vector.broadcast %216 : vector<1x32xf32> to vector<16x32xf32>
    %238 = arith.mulf %236, %237 : vector<16x32xf32>
    %239 = vector.broadcast %218 : vector<1x32xf32> to vector<16x32xf32>
    %240 = arith.addf %238, %239 : vector<16x32xf32>
    %c0_80 = arith.constant 0 : index
    %c0_81 = arith.constant 0 : index
    %c0_82 = arith.constant 0 : index
    %241 = vector.load %arg13[%c0_80, %c0_81, %c0_82] : memref<2x32x64xf32, #tpu.memory_space<vmem>>, vector<1x32x64xf32>
    %242 = vector.shape_cast %241 : vector<1x32x64xf32> to vector<32x64xf32>
    %cst_83 = arith.constant dense<0.000000e+00> : vector<16x64xf32>
    %243 = tpu.matmul %240, %242, %cst_83 {dimension_numbers = #tpu.dot_dimension_numbers<[1], [0], [0], [1], [0, 0, 1, 1], [], []>} : vector<16x32xf32>, vector<32x64xf32>, vector<16x64xf32> -> vector<16x64xf32>
    %c0_84 = arith.constant 0 : index
    %c0_85 = arith.constant 0 : index
    %c0_86 = arith.constant 0 : index
    %244 = vector.load %arg14[%c0_84, %c0_85, %c0_86] : memref<2x1x64xf32, #tpu.memory_space<vmem>>, vector<1x1x64xf32>
    %245 = vector.shape_cast %244 : vector<1x1x64xf32> to vector<1x64xf32>
    %246 = vector.broadcast %245 : vector<1x64xf32> to vector<16x64xf32>
    %247 = arith.addf %243, %246 : vector<16x64xf32>
    %248 = arith.mulf %247, %247 : vector<16x64xf32>
    %249 = arith.mulf %247, %248 : vector<16x64xf32>
    %cst_87 = arith.constant 4.471500e-02 : f32
    %250 = vector.broadcast %cst_87 : f32 to vector<16x64xf32>
    %251 = arith.mulf %250, %249 : vector<16x64xf32>
    %252 = arith.addf %247, %251 : vector<16x64xf32>
    %cst_88 = arith.constant 0.797884583 : f32
    %253 = vector.broadcast %cst_88 : f32 to vector<16x64xf32>
    %254 = arith.mulf %253, %252 : vector<16x64xf32>
    %255 = math.tanh %254 : vector<16x64xf32>
    %cst_89 = arith.constant 1.000000e+00 : f32
    %256 = vector.broadcast %cst_89 : f32 to vector<16x64xf32>
    %257 = arith.addf %256, %255 : vector<16x64xf32>
    %cst_90 = arith.constant 5.000000e-01 : f32
    %258 = vector.broadcast %cst_90 : f32 to vector<16x64xf32>
    %259 = arith.mulf %258, %257 : vector<16x64xf32>
    %260 = arith.mulf %247, %259 : vector<16x64xf32>
    %c0_91 = arith.constant 0 : index
    %c0_92 = arith.constant 0 : index
    %c0_93 = arith.constant 0 : index
    %261 = vector.load %arg15[%c0_91, %c0_92, %c0_93] : memref<2x64x32xf32, #tpu.memory_space<vmem>>, vector<1x64x32xf32>
    %262 = vector.shape_cast %261 : vector<1x64x32xf32> to vector<64x32xf32>
    %cst_94 = arith.constant dense<0.000000e+00> : vector<16x32xf32>
    %263 = tpu.matmul %260, %262, %cst_94 {dimension_numbers = #tpu.dot_dimension_numbers<[1], [0], [0], [1], [0, 0, 1, 1], [], []>} : vector<16x64xf32>, vector<64x32xf32>, vector<16x32xf32> -> vector<16x32xf32>
    %c0_95 = arith.constant 0 : index
    %c0_96 = arith.constant 0 : index
    %c0_97 = arith.constant 0 : index
    %264 = vector.load %arg16[%c0_95, %c0_96, %c0_97] : memref<2x1x32xf32, #tpu.memory_space<vmem>>, vector<1x1x32xf32>
    %265 = vector.shape_cast %264 : vector<1x1x32xf32> to vector<1x32xf32>
    %266 = vector.broadcast %265 : vector<1x32xf32> to vector<16x32xf32>
    %267 = arith.addf %263, %266 : vector<16x32xf32>
    %268 = arith.addf %267, %240 : vector<16x32xf32>
    %c0_98 = arith.constant 0 : index
    %c0_99 = arith.constant 0 : index
    %c0_100 = arith.constant 0 : index
    %269 = vector.load %arg17[%c0_98, %c0_99, %c0_100] : memref<2x1x32xf32, #tpu.memory_space<vmem>>, vector<1x1x32xf32>
    %270 = vector.shape_cast %269 : vector<1x1x32xf32> to vector<1x32xf32>
    %c0_101 = arith.constant 0 : index
    %c0_102 = arith.constant 0 : index
    %c0_103 = arith.constant 0 : index
    %271 = vector.load %arg18[%c0_101, %c0_102, %c0_103] : memref<2x1x32xf32, #tpu.memory_space<vmem>>, vector<1x1x32xf32>
    %272 = vector.shape_cast %271 : vector<1x1x32xf32> to vector<1x32xf32>
    %cst_104 = arith.constant dense<0.000000e+00> : vector<16xf32>
    %273 = vector.multi_reduction <add>, %268, %cst_104 [1] : vector<16x32xf32> to vector<16xf32>
    %274 = vector.shape_cast %273 : vector<16xf32> to vector<16x1xf32>
    %cst_105 = arith.constant 3.200000e+01 : f32
    %275 = vector.broadcast %cst_105 : f32 to vector<16x1xf32>
    %276 = arith.divf %274, %275 : vector<16x1xf32>
    %277 = vector.broadcast %276 : vector<16x1xf32> to vector<16x32xf32>
    %278 = arith.subf %268, %277 : vector<16x32xf32>
    %279 = arith.mulf %278, %278 : vector<16x32xf32>
    %cst_106 = arith.constant dense<0.000000e+00> : vector<16xf32>
    %280 = vector.multi_reduction <add>, %279, %cst_106 [1] : vector<16x32xf32> to vector<16xf32>
    %281 = vector.shape_cast %280 : vector<16xf32> to vector<16x1xf32>
    %cst_107 = arith.constant 3.200000e+01 : f32
    %282 = vector.broadcast %cst_107 : f32 to vector<16x1xf32>
    %283 = arith.divf %281, %282 : vector<16x1xf32>
    %284 = vector.broadcast %276 : vector<16x1xf32> to vector<16x32xf32>
    %285 = arith.subf %268, %284 : vector<16x32xf32>
    %cst_108 = arith.constant 9.99999996E-13 : f32
    %286 = vector.broadcast %cst_108 : f32 to vector<16x1xf32>
    %287 = arith.addf %283, %286 : vector<16x1xf32>
    %288 = math.rsqrt %287 : vector<16x1xf32>
    %289 = vector.broadcast %288 : vector<16x1xf32> to vector<16x32xf32>
    %290 = arith.mulf %285, %289 : vector<16x32xf32>
    %291 = vector.broadcast %270 : vector<1x32xf32> to vector<16x32xf32>
    %292 = arith.mulf %290, %291 : vector<16x32xf32>
    %293 = vector.broadcast %272 : vector<1x32xf32> to vector<16x32xf32>
    %294 = arith.addf %292, %293 : vector<16x32xf32>
    %c1 = arith.constant 1 : index
    %c0_109 = arith.constant 0 : index
    %c0_110 = arith.constant 0 : index
    %295 = vector.load %arg7[%c1, %c0_109, %c0_110] : memref<2x32x96xf32, #tpu.memory_space<vmem>>, vector<1x32x96xf32>
    %296 = vector.shape_cast %295 : vector<1x32x96xf32> to vector<32x96xf32>
    %cst_111 = arith.constant dense<0.000000e+00> : vector<16x96xf32>
    %297 = tpu.matmul %294, %296, %cst_111 {dimension_numbers = #tpu.dot_dimension_numbers<[1], [0], [0], [1], [0, 0, 1, 1], [], []>} : vector<16x32xf32>, vector<32x96xf32>, vector<16x96xf32> -> vector<16x96xf32>
    %c1_112 = arith.constant 1 : index
    %c0_113 = arith.constant 0 : index
    %c0_114 = arith.constant 0 : index
    %298 = vector.load %arg8[%c1_112, %c0_113, %c0_114] : memref<2x1x96xf32, #tpu.memory_space<vmem>>, vector<1x1x96xf32>
    %299 = vector.shape_cast %298 : vector<1x1x96xf32> to vector<1x96xf32>
    %300 = vector.broadcast %299 : vector<1x96xf32> to vector<16x96xf32>
    %301 = arith.addf %297, %300 : vector<16x96xf32>
    %c1_115 = arith.constant 1 : index
    %c0_116 = arith.constant 0 : index
    %c0_117 = arith.constant 0 : index
    %302 = vector.load %arg9[%c1_115, %c0_116, %c0_117] : memref<2x32x32xf32, #tpu.memory_space<vmem>>, vector<1x32x32xf32>
    %303 = vector.shape_cast %302 : vector<1x32x32xf32> to vector<32x32xf32>
    %304 = vector.extract_strided_slice %301 {offsets = [0, 0], sizes = [8, 96], strides = [1, 1]} : vector<16x96xf32> to vector<8x96xf32>
    %305 = vector.extract_strided_slice %37 {offsets = [0, 0], sizes = [1, 8], strides = [1, 1]} : vector<2x8xf32> to vector<1x8xf32>
    %306 = vector.extract_strided_slice %304 {offsets = [0, 0], sizes = [8, 8], strides = [1, 1]} : vector<8x96xf32> to vector<8x8xf32>
    %307 = vector.extract_strided_slice %304 {offsets = [0, 32], sizes = [8, 8], strides = [1, 1]} : vector<8x96xf32> to vector<8x8xf32>
    %308 = vector.extract_strided_slice %304 {offsets = [0, 64], sizes = [8, 8], strides = [1, 1]} : vector<8x96xf32> to vector<8x8xf32>
    %cst_118 = arith.constant dense<0.000000e+00> : vector<8x8xf32>
    %309 = tpu.matmul %306, %307, %cst_118 {dimension_numbers = #tpu.dot_dimension_numbers<[1], [1], [0], [0], [0, 0, 1, 0], [], []>} : vector<8x8xf32>, vector<8x8xf32>, vector<8x8xf32> -> vector<8x8xf32>
    %310 = vector.broadcast %305 : vector<1x8xf32> to vector<8x8xf32>
    %311 = arith.addf %309, %310 : vector<8x8xf32>
    %cst_119 = arith.constant dense<0xFF800000> : vector<8xf32>
    %312 = vector.multi_reduction <maximumf>, %311, %cst_119 [1] : vector<8x8xf32> to vector<8xf32>
    %313 = vector.shape_cast %312 : vector<8xf32> to vector<8x1xf32>
    %314 = vector.broadcast %313 : vector<8x1xf32> to vector<8x8xf32>
    %315 = arith.subf %311, %314 : vector<8x8xf32>
    %316 = math.exp %315 : vector<8x8xf32>
    %cst_120 = arith.constant dense<0.000000e+00> : vector<8xf32>
    %317 = vector.multi_reduction <add>, %316, %cst_120 [1] : vector<8x8xf32> to vector<8xf32>
    %318 = vector.shape_cast %317 : vector<8xf32> to vector<8x1xf32>
    %319 = tpu.reciprocal %318 {approx = true} : vector<8x1xf32> -> vector<8x1xf32>
    %320 = vector.broadcast %319 : vector<8x1xf32> to vector<8x8xf32>
    %321 = arith.mulf %316, %320 : vector<8x8xf32>
    %cst_121 = arith.constant dense<0.000000e+00> : vector<8x8xf32>
    %322 = tpu.matmul %321, %308, %cst_121 {dimension_numbers = #tpu.dot_dimension_numbers<[1], [0], [0], [1], [0, 0, 1, 1], [], []>} : vector<8x8xf32>, vector<8x8xf32>, vector<8x8xf32> -> vector<8x8xf32>
    %323 = vector.extract_strided_slice %303 {offsets = [0, 0], sizes = [8, 32], strides = [1, 1]} : vector<32x32xf32> to vector<8x32xf32>
    %cst_122 = arith.constant dense<0.000000e+00> : vector<8x32xf32>
    %324 = tpu.matmul %322, %323, %cst_122 {dimension_numbers = #tpu.dot_dimension_numbers<[1], [0], [0], [1], [0, 0, 1, 1], [], []>} : vector<8x8xf32>, vector<8x32xf32>, vector<8x32xf32> -> vector<8x32xf32>
    %325 = vector.extract_strided_slice %304 {offsets = [0, 8], sizes = [8, 8], strides = [1, 1]} : vector<8x96xf32> to vector<8x8xf32>
    %326 = vector.extract_strided_slice %304 {offsets = [0, 40], sizes = [8, 8], strides = [1, 1]} : vector<8x96xf32> to vector<8x8xf32>
    %327 = vector.extract_strided_slice %304 {offsets = [0, 72], sizes = [8, 8], strides = [1, 1]} : vector<8x96xf32> to vector<8x8xf32>
    %cst_123 = arith.constant dense<0.000000e+00> : vector<8x8xf32>
    %328 = tpu.matmul %325, %326, %cst_123 {dimension_numbers = #tpu.dot_dimension_numbers<[1], [1], [0], [0], [0, 0, 1, 0], [], []>} : vector<8x8xf32>, vector<8x8xf32>, vector<8x8xf32> -> vector<8x8xf32>
    %329 = vector.broadcast %305 : vector<1x8xf32> to vector<8x8xf32>
    %330 = arith.addf %328, %329 : vector<8x8xf32>
    %cst_124 = arith.constant dense<0xFF800000> : vector<8xf32>
    %331 = vector.multi_reduction <maximumf>, %330, %cst_124 [1] : vector<8x8xf32> to vector<8xf32>
    %332 = vector.shape_cast %331 : vector<8xf32> to vector<8x1xf32>
    %333 = vector.broadcast %332 : vector<8x1xf32> to vector<8x8xf32>
    %334 = arith.subf %330, %333 : vector<8x8xf32>
    %335 = math.exp %334 : vector<8x8xf32>
    %cst_125 = arith.constant dense<0.000000e+00> : vector<8xf32>
    %336 = vector.multi_reduction <add>, %335, %cst_125 [1] : vector<8x8xf32> to vector<8xf32>
    %337 = vector.shape_cast %336 : vector<8xf32> to vector<8x1xf32>
    %338 = tpu.reciprocal %337 {approx = true} : vector<8x1xf32> -> vector<8x1xf32>
    %339 = vector.broadcast %338 : vector<8x1xf32> to vector<8x8xf32>
    %340 = arith.mulf %335, %339 : vector<8x8xf32>
    %cst_126 = arith.constant dense<0.000000e+00> : vector<8x8xf32>
    %341 = tpu.matmul %340, %327, %cst_126 {dimension_numbers = #tpu.dot_dimension_numbers<[1], [0], [0], [1], [0, 0, 1, 1], [], []>} : vector<8x8xf32>, vector<8x8xf32>, vector<8x8xf32> -> vector<8x8xf32>
    %342 = vector.extract_strided_slice %303 {offsets = [8, 0], sizes = [8, 32], strides = [1, 1]} : vector<32x32xf32> to vector<8x32xf32>
    %cst_127 = arith.constant dense<0.000000e+00> : vector<8x32xf32>
    %343 = tpu.matmul %341, %342, %cst_127 {dimension_numbers = #tpu.dot_dimension_numbers<[1], [0], [0], [1], [0, 0, 1, 1], [], []>} : vector<8x8xf32>, vector<8x32xf32>, vector<8x32xf32> -> vector<8x32xf32>
    %344 = arith.addf %324, %343 : vector<8x32xf32>
    %345 = vector.extract_strided_slice %304 {offsets = [0, 16], sizes = [8, 8], strides = [1, 1]} : vector<8x96xf32> to vector<8x8xf32>
    %346 = vector.extract_strided_slice %304 {offsets = [0, 48], sizes = [8, 8], strides = [1, 1]} : vector<8x96xf32> to vector<8x8xf32>
    %347 = vector.extract_strided_slice %304 {offsets = [0, 80], sizes = [8, 8], strides = [1, 1]} : vector<8x96xf32> to vector<8x8xf32>
    %cst_128 = arith.constant dense<0.000000e+00> : vector<8x8xf32>
    %348 = tpu.matmul %345, %346, %cst_128 {dimension_numbers = #tpu.dot_dimension_numbers<[1], [1], [0], [0], [0, 0, 1, 0], [], []>} : vector<8x8xf32>, vector<8x8xf32>, vector<8x8xf32> -> vector<8x8xf32>
    %349 = vector.broadcast %305 : vector<1x8xf32> to vector<8x8xf32>
    %350 = arith.addf %348, %349 : vector<8x8xf32>
    %cst_129 = arith.constant dense<0xFF800000> : vector<8xf32>
    %351 = vector.multi_reduction <maximumf>, %350, %cst_129 [1] : vector<8x8xf32> to vector<8xf32>
    %352 = vector.shape_cast %351 : vector<8xf32> to vector<8x1xf32>
    %353 = vector.broadcast %352 : vector<8x1xf32> to vector<8x8xf32>
    %354 = arith.subf %350, %353 : vector<8x8xf32>
    %355 = math.exp %354 : vector<8x8xf32>
    %cst_130 = arith.constant dense<0.000000e+00> : vector<8xf32>
    %356 = vector.multi_reduction <add>, %355, %cst_130 [1] : vector<8x8xf32> to vector<8xf32>
    %357 = vector.shape_cast %356 : vector<8xf32> to vector<8x1xf32>
    %358 = tpu.reciprocal %357 {approx = true} : vector<8x1xf32> -> vector<8x1xf32>
    %359 = vector.broadcast %358 : vector<8x1xf32> to vector<8x8xf32>
    %360 = arith.mulf %355, %359 : vector<8x8xf32>
    %cst_131 = arith.constant dense<0.000000e+00> : vector<8x8xf32>
    %361 = tpu.matmul %360, %347, %cst_131 {dimension_numbers = #tpu.dot_dimension_numbers<[1], [0], [0], [1], [0, 0, 1, 1], [], []>} : vector<8x8xf32>, vector<8x8xf32>, vector<8x8xf32> -> vector<8x8xf32>
    %362 = vector.extract_strided_slice %303 {offsets = [16, 0], sizes = [8, 32], strides = [1, 1]} : vector<32x32xf32> to vector<8x32xf32>
    %cst_132 = arith.constant dense<0.000000e+00> : vector<8x32xf32>
    %363 = tpu.matmul %361, %362, %cst_132 {dimension_numbers = #tpu.dot_dimension_numbers<[1], [0], [0], [1], [0, 0, 1, 1], [], []>} : vector<8x8xf32>, vector<8x32xf32>, vector<8x32xf32> -> vector<8x32xf32>
    %364 = arith.addf %344, %363 : vector<8x32xf32>
    %365 = vector.extract_strided_slice %304 {offsets = [0, 24], sizes = [8, 8], strides = [1, 1]} : vector<8x96xf32> to vector<8x8xf32>
    %366 = vector.extract_strided_slice %304 {offsets = [0, 56], sizes = [8, 8], strides = [1, 1]} : vector<8x96xf32> to vector<8x8xf32>
    %367 = vector.extract_strided_slice %304 {offsets = [0, 88], sizes = [8, 8], strides = [1, 1]} : vector<8x96xf32> to vector<8x8xf32>
    %cst_133 = arith.constant dense<0.000000e+00> : vector<8x8xf32>
    %368 = tpu.matmul %365, %366, %cst_133 {dimension_numbers = #tpu.dot_dimension_numbers<[1], [1], [0], [0], [0, 0, 1, 0], [], []>} : vector<8x8xf32>, vector<8x8xf32>, vector<8x8xf32> -> vector<8x8xf32>
    %369 = vector.broadcast %305 : vector<1x8xf32> to vector<8x8xf32>
    %370 = arith.addf %368, %369 : vector<8x8xf32>
    %cst_134 = arith.constant dense<0xFF800000> : vector<8xf32>
    %371 = vector.multi_reduction <maximumf>, %370, %cst_134 [1] : vector<8x8xf32> to vector<8xf32>
    %372 = vector.shape_cast %371 : vector<8xf32> to vector<8x1xf32>
    %373 = vector.broadcast %372 : vector<8x1xf32> to vector<8x8xf32>
    %374 = arith.subf %370, %373 : vector<8x8xf32>
    %375 = math.exp %374 : vector<8x8xf32>
    %cst_135 = arith.constant dense<0.000000e+00> : vector<8xf32>
    %376 = vector.multi_reduction <add>, %375, %cst_135 [1] : vector<8x8xf32> to vector<8xf32>
    %377 = vector.shape_cast %376 : vector<8xf32> to vector<8x1xf32>
    %378 = tpu.reciprocal %377 {approx = true} : vector<8x1xf32> -> vector<8x1xf32>
    %379 = vector.broadcast %378 : vector<8x1xf32> to vector<8x8xf32>
    %380 = arith.mulf %375, %379 : vector<8x8xf32>
    %cst_136 = arith.constant dense<0.000000e+00> : vector<8x8xf32>
    %381 = tpu.matmul %380, %367, %cst_136 {dimension_numbers = #tpu.dot_dimension_numbers<[1], [0], [0], [1], [0, 0, 1, 1], [], []>} : vector<8x8xf32>, vector<8x8xf32>, vector<8x8xf32> -> vector<8x8xf32>
    %382 = vector.extract_strided_slice %303 {offsets = [24, 0], sizes = [8, 32], strides = [1, 1]} : vector<32x32xf32> to vector<8x32xf32>
    %cst_137 = arith.constant dense<0.000000e+00> : vector<8x32xf32>
    %383 = tpu.matmul %381, %382, %cst_137 {dimension_numbers = #tpu.dot_dimension_numbers<[1], [0], [0], [1], [0, 0, 1, 1], [], []>} : vector<8x8xf32>, vector<8x32xf32>, vector<8x32xf32> -> vector<8x32xf32>
    %384 = arith.addf %364, %383 : vector<8x32xf32>
    %385 = vector.extract_strided_slice %301 {offsets = [8, 0], sizes = [8, 96], strides = [1, 1]} : vector<16x96xf32> to vector<8x96xf32>
    %386 = vector.extract_strided_slice %37 {offsets = [1, 0], sizes = [1, 8], strides = [1, 1]} : vector<2x8xf32> to vector<1x8xf32>
    %387 = vector.extract_strided_slice %385 {offsets = [0, 0], sizes = [8, 8], strides = [1, 1]} : vector<8x96xf32> to vector<8x8xf32>
    %388 = vector.extract_strided_slice %385 {offsets = [0, 32], sizes = [8, 8], strides = [1, 1]} : vector<8x96xf32> to vector<8x8xf32>
    %389 = vector.extract_strided_slice %385 {offsets = [0, 64], sizes = [8, 8], strides = [1, 1]} : vector<8x96xf32> to vector<8x8xf32>
    %cst_138 = arith.constant dense<0.000000e+00> : vector<8x8xf32>
    %390 = tpu.matmul %387, %388, %cst_138 {dimension_numbers = #tpu.dot_dimension_numbers<[1], [1], [0], [0], [0, 0, 1, 0], [], []>} : vector<8x8xf32>, vector<8x8xf32>, vector<8x8xf32> -> vector<8x8xf32>
    %391 = vector.broadcast %386 : vector<1x8xf32> to vector<8x8xf32>
    %392 = arith.addf %390, %391 : vector<8x8xf32>
    %cst_139 = arith.constant dense<0xFF800000> : vector<8xf32>
    %393 = vector.multi_reduction <maximumf>, %392, %cst_139 [1] : vector<8x8xf32> to vector<8xf32>
    %394 = vector.shape_cast %393 : vector<8xf32> to vector<8x1xf32>
    %395 = vector.broadcast %394 : vector<8x1xf32> to vector<8x8xf32>
    %396 = arith.subf %392, %395 : vector<8x8xf32>
    %397 = math.exp %396 : vector<8x8xf32>
    %cst_140 = arith.constant dense<0.000000e+00> : vector<8xf32>
    %398 = vector.multi_reduction <add>, %397, %cst_140 [1] : vector<8x8xf32> to vector<8xf32>
    %399 = vector.shape_cast %398 : vector<8xf32> to vector<8x1xf32>
    %400 = tpu.reciprocal %399 {approx = true} : vector<8x1xf32> -> vector<8x1xf32>
    %401 = vector.broadcast %400 : vector<8x1xf32> to vector<8x8xf32>
    %402 = arith.mulf %397, %401 : vector<8x8xf32>
    %cst_141 = arith.constant dense<0.000000e+00> : vector<8x8xf32>
    %403 = tpu.matmul %402, %389, %cst_141 {dimension_numbers = #tpu.dot_dimension_numbers<[1], [0], [0], [1], [0, 0, 1, 1], [], []>} : vector<8x8xf32>, vector<8x8xf32>, vector<8x8xf32> -> vector<8x8xf32>
    %404 = vector.extract_strided_slice %303 {offsets = [0, 0], sizes = [8, 32], strides = [1, 1]} : vector<32x32xf32> to vector<8x32xf32>
    %cst_142 = arith.constant dense<0.000000e+00> : vector<8x32xf32>
    %405 = tpu.matmul %403, %404, %cst_142 {dimension_numbers = #tpu.dot_dimension_numbers<[1], [0], [0], [1], [0, 0, 1, 1], [], []>} : vector<8x8xf32>, vector<8x32xf32>, vector<8x32xf32> -> vector<8x32xf32>
    %406 = vector.extract_strided_slice %385 {offsets = [0, 8], sizes = [8, 8], strides = [1, 1]} : vector<8x96xf32> to vector<8x8xf32>
    %407 = vector.extract_strided_slice %385 {offsets = [0, 40], sizes = [8, 8], strides = [1, 1]} : vector<8x96xf32> to vector<8x8xf32>
    %408 = vector.extract_strided_slice %385 {offsets = [0, 72], sizes = [8, 8], strides = [1, 1]} : vector<8x96xf32> to vector<8x8xf32>
    %cst_143 = arith.constant dense<0.000000e+00> : vector<8x8xf32>
    %409 = tpu.matmul %406, %407, %cst_143 {dimension_numbers = #tpu.dot_dimension_numbers<[1], [1], [0], [0], [0, 0, 1, 0], [], []>} : vector<8x8xf32>, vector<8x8xf32>, vector<8x8xf32> -> vector<8x8xf32>
    %410 = vector.broadcast %386 : vector<1x8xf32> to vector<8x8xf32>
    %411 = arith.addf %409, %410 : vector<8x8xf32>
    %cst_144 = arith.constant dense<0xFF800000> : vector<8xf32>
    %412 = vector.multi_reduction <maximumf>, %411, %cst_144 [1] : vector<8x8xf32> to vector<8xf32>
    %413 = vector.shape_cast %412 : vector<8xf32> to vector<8x1xf32>
    %414 = vector.broadcast %413 : vector<8x1xf32> to vector<8x8xf32>
    %415 = arith.subf %411, %414 : vector<8x8xf32>
    %416 = math.exp %415 : vector<8x8xf32>
    %cst_145 = arith.constant dense<0.000000e+00> : vector<8xf32>
    %417 = vector.multi_reduction <add>, %416, %cst_145 [1] : vector<8x8xf32> to vector<8xf32>
    %418 = vector.shape_cast %417 : vector<8xf32> to vector<8x1xf32>
    %419 = tpu.reciprocal %418 {approx = true} : vector<8x1xf32> -> vector<8x1xf32>
    %420 = vector.broadcast %419 : vector<8x1xf32> to vector<8x8xf32>
    %421 = arith.mulf %416, %420 : vector<8x8xf32>
    %cst_146 = arith.constant dense<0.000000e+00> : vector<8x8xf32>
    %422 = tpu.matmul %421, %408, %cst_146 {dimension_numbers = #tpu.dot_dimension_numbers<[1], [0], [0], [1], [0, 0, 1, 1], [], []>} : vector<8x8xf32>, vector<8x8xf32>, vector<8x8xf32> -> vector<8x8xf32>
    %423 = vector.extract_strided_slice %303 {offsets = [8, 0], sizes = [8, 32], strides = [1, 1]} : vector<32x32xf32> to vector<8x32xf32>
    %cst_147 = arith.constant dense<0.000000e+00> : vector<8x32xf32>
    %424 = tpu.matmul %422, %423, %cst_147 {dimension_numbers = #tpu.dot_dimension_numbers<[1], [0], [0], [1], [0, 0, 1, 1], [], []>} : vector<8x8xf32>, vector<8x32xf32>, vector<8x32xf32> -> vector<8x32xf32>
    %425 = arith.addf %405, %424 : vector<8x32xf32>
    %426 = vector.extract_strided_slice %385 {offsets = [0, 16], sizes = [8, 8], strides = [1, 1]} : vector<8x96xf32> to vector<8x8xf32>
    %427 = vector.extract_strided_slice %385 {offsets = [0, 48], sizes = [8, 8], strides = [1, 1]} : vector<8x96xf32> to vector<8x8xf32>
    %428 = vector.extract_strided_slice %385 {offsets = [0, 80], sizes = [8, 8], strides = [1, 1]} : vector<8x96xf32> to vector<8x8xf32>
    %cst_148 = arith.constant dense<0.000000e+00> : vector<8x8xf32>
    %429 = tpu.matmul %426, %427, %cst_148 {dimension_numbers = #tpu.dot_dimension_numbers<[1], [1], [0], [0], [0, 0, 1, 0], [], []>} : vector<8x8xf32>, vector<8x8xf32>, vector<8x8xf32> -> vector<8x8xf32>
    %430 = vector.broadcast %386 : vector<1x8xf32> to vector<8x8xf32>
    %431 = arith.addf %429, %430 : vector<8x8xf32>
    %cst_149 = arith.constant dense<0xFF800000> : vector<8xf32>
    %432 = vector.multi_reduction <maximumf>, %431, %cst_149 [1] : vector<8x8xf32> to vector<8xf32>
    %433 = vector.shape_cast %432 : vector<8xf32> to vector<8x1xf32>
    %434 = vector.broadcast %433 : vector<8x1xf32> to vector<8x8xf32>
    %435 = arith.subf %431, %434 : vector<8x8xf32>
    %436 = math.exp %435 : vector<8x8xf32>
    %cst_150 = arith.constant dense<0.000000e+00> : vector<8xf32>
    %437 = vector.multi_reduction <add>, %436, %cst_150 [1] : vector<8x8xf32> to vector<8xf32>
    %438 = vector.shape_cast %437 : vector<8xf32> to vector<8x1xf32>
    %439 = tpu.reciprocal %438 {approx = true} : vector<8x1xf32> -> vector<8x1xf32>
    %440 = vector.broadcast %439 : vector<8x1xf32> to vector<8x8xf32>
    %441 = arith.mulf %436, %440 : vector<8x8xf32>
    %cst_151 = arith.constant dense<0.000000e+00> : vector<8x8xf32>
    %442 = tpu.matmul %441, %428, %cst_151 {dimension_numbers = #tpu.dot_dimension_numbers<[1], [0], [0], [1], [0, 0, 1, 1], [], []>} : vector<8x8xf32>, vector<8x8xf32>, vector<8x8xf32> -> vector<8x8xf32>
    %443 = vector.extract_strided_slice %303 {offsets = [16, 0], sizes = [8, 32], strides = [1, 1]} : vector<32x32xf32> to vector<8x32xf32>
    %cst_152 = arith.constant dense<0.000000e+00> : vector<8x32xf32>
    %444 = tpu.matmul %442, %443, %cst_152 {dimension_numbers = #tpu.dot_dimension_numbers<[1], [0], [0], [1], [0, 0, 1, 1], [], []>} : vector<8x8xf32>, vector<8x32xf32>, vector<8x32xf32> -> vector<8x32xf32>
    %445 = arith.addf %425, %444 : vector<8x32xf32>
    %446 = vector.extract_strided_slice %385 {offsets = [0, 24], sizes = [8, 8], strides = [1, 1]} : vector<8x96xf32> to vector<8x8xf32>
    %447 = vector.extract_strided_slice %385 {offsets = [0, 56], sizes = [8, 8], strides = [1, 1]} : vector<8x96xf32> to vector<8x8xf32>
    %448 = vector.extract_strided_slice %385 {offsets = [0, 88], sizes = [8, 8], strides = [1, 1]} : vector<8x96xf32> to vector<8x8xf32>
    %cst_153 = arith.constant dense<0.000000e+00> : vector<8x8xf32>
    %449 = tpu.matmul %446, %447, %cst_153 {dimension_numbers = #tpu.dot_dimension_numbers<[1], [1], [0], [0], [0, 0, 1, 0], [], []>} : vector<8x8xf32>, vector<8x8xf32>, vector<8x8xf32> -> vector<8x8xf32>
    %450 = vector.broadcast %386 : vector<1x8xf32> to vector<8x8xf32>
    %451 = arith.addf %449, %450 : vector<8x8xf32>
    %cst_154 = arith.constant dense<0xFF800000> : vector<8xf32>
    %452 = vector.multi_reduction <maximumf>, %451, %cst_154 [1] : vector<8x8xf32> to vector<8xf32>
    %453 = vector.shape_cast %452 : vector<8xf32> to vector<8x1xf32>
    %454 = vector.broadcast %453 : vector<8x1xf32> to vector<8x8xf32>
    %455 = arith.subf %451, %454 : vector<8x8xf32>
    %456 = math.exp %455 : vector<8x8xf32>
    %cst_155 = arith.constant dense<0.000000e+00> : vector<8xf32>
    %457 = vector.multi_reduction <add>, %456, %cst_155 [1] : vector<8x8xf32> to vector<8xf32>
    %458 = vector.shape_cast %457 : vector<8xf32> to vector<8x1xf32>
    %459 = tpu.reciprocal %458 {approx = true} : vector<8x1xf32> -> vector<8x1xf32>
    %460 = vector.broadcast %459 : vector<8x1xf32> to vector<8x8xf32>
    %461 = arith.mulf %456, %460 : vector<8x8xf32>
    %cst_156 = arith.constant dense<0.000000e+00> : vector<8x8xf32>
    %462 = tpu.matmul %461, %448, %cst_156 {dimension_numbers = #tpu.dot_dimension_numbers<[1], [0], [0], [1], [0, 0, 1, 1], [], []>} : vector<8x8xf32>, vector<8x8xf32>, vector<8x8xf32> -> vector<8x8xf32>
    %463 = vector.extract_strided_slice %303 {offsets = [24, 0], sizes = [8, 32], strides = [1, 1]} : vector<32x32xf32> to vector<8x32xf32>
    %cst_157 = arith.constant dense<0.000000e+00> : vector<8x32xf32>
    %464 = tpu.matmul %462, %463, %cst_157 {dimension_numbers = #tpu.dot_dimension_numbers<[1], [0], [0], [1], [0, 0, 1, 1], [], []>} : vector<8x8xf32>, vector<8x32xf32>, vector<8x32xf32> -> vector<8x32xf32>
    %465 = arith.addf %445, %464 : vector<8x32xf32>
    %466 = tpu.concatenate %384, %465 in 0 : vector<8x32xf32>, vector<8x32xf32> -> vector<16x32xf32>
    %c1_158 = arith.constant 1 : index
    %c0_159 = arith.constant 0 : index
    %c0_160 = arith.constant 0 : index
    %467 = vector.load %arg10[%c1_158, %c0_159, %c0_160] : memref<2x1x32xf32, #tpu.memory_space<vmem>>, vector<1x1x32xf32>
    %468 = vector.shape_cast %467 : vector<1x1x32xf32> to vector<1x32xf32>
    %469 = vector.broadcast %468 : vector<1x32xf32> to vector<16x32xf32>
    %470 = arith.addf %466, %469 : vector<16x32xf32>
    %471 = arith.addf %470, %294 : vector<16x32xf32>
    %c1_161 = arith.constant 1 : index
    %c0_162 = arith.constant 0 : index
    %c0_163 = arith.constant 0 : index
    %472 = vector.load %arg11[%c1_161, %c0_162, %c0_163] : memref<2x1x32xf32, #tpu.memory_space<vmem>>, vector<1x1x32xf32>
    %473 = vector.shape_cast %472 : vector<1x1x32xf32> to vector<1x32xf32>
    %c1_164 = arith.constant 1 : index
    %c0_165 = arith.constant 0 : index
    %c0_166 = arith.constant 0 : index
    %474 = vector.load %arg12[%c1_164, %c0_165, %c0_166] : memref<2x1x32xf32, #tpu.memory_space<vmem>>, vector<1x1x32xf32>
    %475 = vector.shape_cast %474 : vector<1x1x32xf32> to vector<1x32xf32>
    %cst_167 = arith.constant dense<0.000000e+00> : vector<16xf32>
    %476 = vector.multi_reduction <add>, %471, %cst_167 [1] : vector<16x32xf32> to vector<16xf32>
    %477 = vector.shape_cast %476 : vector<16xf32> to vector<16x1xf32>
    %cst_168 = arith.constant 3.200000e+01 : f32
    %478 = vector.broadcast %cst_168 : f32 to vector<16x1xf32>
    %479 = arith.divf %477, %478 : vector<16x1xf32>
    %480 = vector.broadcast %479 : vector<16x1xf32> to vector<16x32xf32>
    %481 = arith.subf %471, %480 : vector<16x32xf32>
    %482 = arith.mulf %481, %481 : vector<16x32xf32>
    %cst_169 = arith.constant dense<0.000000e+00> : vector<16xf32>
    %483 = vector.multi_reduction <add>, %482, %cst_169 [1] : vector<16x32xf32> to vector<16xf32>
    %484 = vector.shape_cast %483 : vector<16xf32> to vector<16x1xf32>
    %cst_170 = arith.constant 3.200000e+01 : f32
    %485 = vector.broadcast %cst_170 : f32 to vector<16x1xf32>
    %486 = arith.divf %484, %485 : vector<16x1xf32>
    %487 = vector.broadcast %479 : vector<16x1xf32> to vector<16x32xf32>
    %488 = arith.subf %471, %487 : vector<16x32xf32>
    %cst_171 = arith.constant 9.99999996E-13 : f32
    %489 = vector.broadcast %cst_171 : f32 to vector<16x1xf32>
    %490 = arith.addf %486, %489 : vector<16x1xf32>
    %491 = math.rsqrt %490 : vector<16x1xf32>
    %492 = vector.broadcast %491 : vector<16x1xf32> to vector<16x32xf32>
    %493 = arith.mulf %488, %492 : vector<16x32xf32>
    %494 = vector.broadcast %473 : vector<1x32xf32> to vector<16x32xf32>
    %495 = arith.mulf %493, %494 : vector<16x32xf32>
    %496 = vector.broadcast %475 : vector<1x32xf32> to vector<16x32xf32>
    %497 = arith.addf %495, %496 : vector<16x32xf32>
    %c1_172 = arith.constant 1 : index
    %c0_173 = arith.constant 0 : index
    %c0_174 = arith.constant 0 : index
    %498 = vector.load %arg13[%c1_172, %c0_173, %c0_174] : memref<2x32x64xf32, #tpu.memory_space<vmem>>, vector<1x32x64xf32>
    %499 = vector.shape_cast %498 : vector<1x32x64xf32> to vector<32x64xf32>
    %cst_175 = arith.constant dense<0.000000e+00> : vector<16x64xf32>
    %500 = tpu.matmul %497, %499, %cst_175 {dimension_numbers = #tpu.dot_dimension_numbers<[1], [0], [0], [1], [0, 0, 1, 1], [], []>} : vector<16x32xf32>, vector<32x64xf32>, vector<16x64xf32> -> vector<16x64xf32>
    %c1_176 = arith.constant 1 : index
    %c0_177 = arith.constant 0 : index
    %c0_178 = arith.constant 0 : index
    %501 = vector.load %arg14[%c1_176, %c0_177, %c0_178] : memref<2x1x64xf32, #tpu.memory_space<vmem>>, vector<1x1x64xf32>
    %502 = vector.shape_cast %501 : vector<1x1x64xf32> to vector<1x64xf32>
    %503 = vector.broadcast %502 : vector<1x64xf32> to vector<16x64xf32>
    %504 = arith.addf %500, %503 : vector<16x64xf32>
    %505 = arith.mulf %504, %504 : vector<16x64xf32>
    %506 = arith.mulf %504, %505 : vector<16x64xf32>
    %cst_179 = arith.constant 4.471500e-02 : f32
    %507 = vector.broadcast %cst_179 : f32 to vector<16x64xf32>
    %508 = arith.mulf %507, %506 : vector<16x64xf32>
    %509 = arith.addf %504, %508 : vector<16x64xf32>
    %cst_180 = arith.constant 0.797884583 : f32
    %510 = vector.broadcast %cst_180 : f32 to vector<16x64xf32>
    %511 = arith.mulf %510, %509 : vector<16x64xf32>
    %512 = math.tanh %511 : vector<16x64xf32>
    %cst_181 = arith.constant 1.000000e+00 : f32
    %513 = vector.broadcast %cst_181 : f32 to vector<16x64xf32>
    %514 = arith.addf %513, %512 : vector<16x64xf32>
    %cst_182 = arith.constant 5.000000e-01 : f32
    %515 = vector.broadcast %cst_182 : f32 to vector<16x64xf32>
    %516 = arith.mulf %515, %514 : vector<16x64xf32>
    %517 = arith.mulf %504, %516 : vector<16x64xf32>
    %c1_183 = arith.constant 1 : index
    %c0_184 = arith.constant 0 : index
    %c0_185 = arith.constant 0 : index
    %518 = vector.load %arg15[%c1_183, %c0_184, %c0_185] : memref<2x64x32xf32, #tpu.memory_space<vmem>>, vector<1x64x32xf32>
    %519 = vector.shape_cast %518 : vector<1x64x32xf32> to vector<64x32xf32>
    %cst_186 = arith.constant dense<0.000000e+00> : vector<16x32xf32>
    %520 = tpu.matmul %517, %519, %cst_186 {dimension_numbers = #tpu.dot_dimension_numbers<[1], [0], [0], [1], [0, 0, 1, 1], [], []>} : vector<16x64xf32>, vector<64x32xf32>, vector<16x32xf32> -> vector<16x32xf32>
    %c1_187 = arith.constant 1 : index
    %c0_188 = arith.constant 0 : index
    %c0_189 = arith.constant 0 : index
    %521 = vector.load %arg16[%c1_187, %c0_188, %c0_189] : memref<2x1x32xf32, #tpu.memory_space<vmem>>, vector<1x1x32xf32>
    %522 = vector.shape_cast %521 : vector<1x1x32xf32> to vector<1x32xf32>
    %523 = vector.broadcast %522 : vector<1x32xf32> to vector<16x32xf32>
    %524 = arith.addf %520, %523 : vector<16x32xf32>
    %525 = arith.addf %524, %497 : vector<16x32xf32>
    %c1_190 = arith.constant 1 : index
    %c0_191 = arith.constant 0 : index
    %c0_192 = arith.constant 0 : index
    %526 = vector.load %arg17[%c1_190, %c0_191, %c0_192] : memref<2x1x32xf32, #tpu.memory_space<vmem>>, vector<1x1x32xf32>
    %527 = vector.shape_cast %526 : vector<1x1x32xf32> to vector<1x32xf32>
    %c1_193 = arith.constant 1 : index
    %c0_194 = arith.constant 0 : index
    %c0_195 = arith.constant 0 : index
    %528 = vector.load %arg18[%c1_193, %c0_194, %c0_195] : memref<2x1x32xf32, #tpu.memory_space<vmem>>, vector<1x1x32xf32>
    %529 = vector.shape_cast %528 : vector<1x1x32xf32> to vector<1x32xf32>
    %cst_196 = arith.constant dense<0.000000e+00> : vector<16xf32>
    %530 = vector.multi_reduction <add>, %525, %cst_196 [1] : vector<16x32xf32> to vector<16xf32>
    %531 = vector.shape_cast %530 : vector<16xf32> to vector<16x1xf32>
    %cst_197 = arith.constant 3.200000e+01 : f32
    %532 = vector.broadcast %cst_197 : f32 to vector<16x1xf32>
    %533 = arith.divf %531, %532 : vector<16x1xf32>
    %534 = vector.broadcast %533 : vector<16x1xf32> to vector<16x32xf32>
    %535 = arith.subf %525, %534 : vector<16x32xf32>
    %536 = arith.mulf %535, %535 : vector<16x32xf32>
    %cst_198 = arith.constant dense<0.000000e+00> : vector<16xf32>
    %537 = vector.multi_reduction <add>, %536, %cst_198 [1] : vector<16x32xf32> to vector<16xf32>
    %538 = vector.shape_cast %537 : vector<16xf32> to vector<16x1xf32>
    %cst_199 = arith.constant 3.200000e+01 : f32
    %539 = vector.broadcast %cst_199 : f32 to vector<16x1xf32>
    %540 = arith.divf %538, %539 : vector<16x1xf32>
    %541 = vector.broadcast %533 : vector<16x1xf32> to vector<16x32xf32>
    %542 = arith.subf %525, %541 : vector<16x32xf32>
    %cst_200 = arith.constant 9.99999996E-13 : f32
    %543 = vector.broadcast %cst_200 : f32 to vector<16x1xf32>
    %544 = arith.addf %540, %543 : vector<16x1xf32>
    %545 = math.rsqrt %544 : vector<16x1xf32>
    %546 = vector.broadcast %545 : vector<16x1xf32> to vector<16x32xf32>
    %547 = arith.mulf %542, %546 : vector<16x32xf32>
    %548 = vector.broadcast %527 : vector<1x32xf32> to vector<16x32xf32>
    %549 = arith.mulf %547, %548 : vector<16x32xf32>
    %550 = vector.broadcast %529 : vector<1x32xf32> to vector<16x32xf32>
    %551 = arith.addf %549, %550 : vector<16x32xf32>
    %552 = vector.extract_strided_slice %551 {offsets = [0, 0], sizes = [1, 32], strides = [1, 1]} : vector<16x32xf32> to vector<1x32xf32>
    %553 = vector.extract_strided_slice %551 {offsets = [8, 0], sizes = [1, 32], strides = [1, 1]} : vector<16x32xf32> to vector<1x32xf32>
    %554 = tpu.concatenate %552, %553 in 0 : vector<1x32xf32>, vector<1x32xf32> -> vector<2x32xf32>
    %c0_201 = arith.constant 0 : index
    %c0_202 = arith.constant 0 : index
    %555 = vector.load %arg19[%c0_201, %c0_202] : memref<32x32xf32, #tpu.memory_space<vmem>>, vector<32x32xf32>
    %cst_203 = arith.constant dense<0.000000e+00> : vector<2x32xf32>
    %556 = tpu.matmul %554, %555, %cst_203 {dimension_numbers = #tpu.dot_dimension_numbers<[1], [0], [0], [1], [0, 0, 1, 1], [], []>} : vector<2x32xf32>, vector<32x32xf32>, vector<2x32xf32> -> vector<2x32xf32>
    %c0_204 = arith.constant 0 : index
    %c0_205 = arith.constant 0 : index
    %557 = vector.load %arg20[%c0_204, %c0_205] : memref<1x32xf32, #tpu.memory_space<vmem>>, vector<1x32xf32>
    %558 = vector.broadcast %557 : vector<1x32xf32> to vector<2x32xf32>
    %559 = arith.addf %556, %558 : vector<2x32xf32>
    %560 = math.tanh %559 : vector<2x32xf32>
    %c0_206 = arith.constant 0 : index
    %c0_207 = arith.constant 0 : index
    %561 = vector.load %arg21[%c0_206, %c0_207] : memref<32x128xf32, #tpu.memory_space<vmem>>, vector<32x128xf32>
    %cst_208 = arith.constant dense<0.000000e+00> : vector<2x128xf32>
    %562 = tpu.matmul %560, %561, %cst_208 {dimension_numbers = #tpu.dot_dimension_numbers<[1], [0], [0], [1], [0, 0, 1, 1], [], []>} : vector<2x32xf32>, vector<32x128xf32>, vector<2x128xf32> -> vector<2x128xf32>
    %c0_209 = arith.constant 0 : index
    %c0_210 = arith.constant 0 : index
    %563 = vector.load %arg22[%c0_209, %c0_210] : memref<1x128xf32, #tpu.memory_space<vmem>>, vector<1x128xf32>
    %564 = vector.broadcast %563 : vector<1x128xf32> to vector<2x128xf32>
    %565 = arith.addf %562, %564 : vector<2x128xf32>
    %c0_211 = arith.constant 0 : index
    %c0_212 = arith.constant 0 : index
    %566 = vector.load %arg23[%c0_211, %c0_212] : memref<2x128xf32, #tpu.memory_space<vmem>>, vector<2x128xf32>
    tpu.vector_store %arg23[%c0_211, %c0_212], %565 {strides = array<i32>} : memref<2x128xf32, #tpu.memory_space<vmem>>, vector<2x128xf32>,
    return
  }
  func.func @transform_0(%arg0: i32) -> (i32, i32) {
    %c0_i32 = arith.constant 0 : i32
    %c0_i32_0 = arith.constant 0 : i32
    %c0_i32_1 = arith.constant 0 : i32
    return %c0_i32, %c0_i32_0 : i32, i32
  }
  func.func @transform_1(%arg0: i32) -> (i32, i32) {
    %c0_i32 = arith.constant 0 : i32
    %c0_i32_0 = arith.constant 0 : i32
    %c0_i32_1 = arith.constant 0 : i32
    return %c0_i32, %c0_i32_0 : i32, i32
  }
  func.func @transform_2(%arg0: i32) -> (i32, i32) {
    %c0_i32 = arith.constant 0 : i32
    %c0_i32_0 = arith.constant 0 : i32
    %c0_i32_1 = arith.constant 0 : i32
    return %c0_i32, %c0_i32_0 : i32, i32
  }
  func.func @transform_3(%arg0: i32) -> (i32, i32) {
    %c0_i32 = arith.constant 0 : i32
    %c0_i32_0 = arith.constant 0 : i32
    %c0_i32_1 = arith.constant 0 : i32
    return %c0_i32, %c0_i32_0 : i32, i32
  }
  func.func @transform_4(%arg0: i32) -> (i32, i32) {
    %c0_i32 = arith.constant 0 : i32
    %c0_i32_0 = arith.constant 0 : i32
    %c0_i32_1 = arith.constant 0 : i32
    return %c0_i32, %c0_i32_0 : i32, i32
  }
  func.func @transform_5(%arg0: i32) -> (i32, i32) {
    %c0_i32 = arith.constant 0 : i32
    %c0_i32_0 = arith.constant 0 : i32
    %c0_i32_1 = arith.constant 0 : i32
    return %c0_i32, %c0_i32_0 : i32, i32
  }
  func.func @transform_6(%arg0: i32) -> (i32, i32, i32) {
    %c0_i32 = arith.constant 0 : i32
    %c0_i32_0 = arith.constant 0 : i32
    %c0_i32_1 = arith.constant 0 : i32
    %c0_i32_2 = arith.constant 0 : i32
    return %c0_i32, %c0_i32_0, %c0_i32_1 : i32, i32, i32
  }
  func.func @transform_7(%arg0: i32) -> (i32, i32, i32) {
    %c0_i32 = arith.constant 0 : i32
    %c0_i32_0 = arith.constant 0 : i32
    %c0_i32_1 = arith.constant 0 : i32
    %c0_i32_2 = arith.constant 0 : i32
    return %c0_i32, %c0_i32_0, %c0_i32_1 : i32, i32, i32
  }
  func.func @transform_8(%arg0: i32) -> (i32, i32, i32) {
    %c0_i32 = arith.constant 0 : i32
    %c0_i32_0 = arith.constant 0 : i32
    %c0_i32_1 = arith.constant 0 : i32
    %c0_i32_2 = arith.constant 0 : i32
    return %c0_i32, %c0_i32_0, %c0_i32_1 : i32, i32, i32
  }
  func.func @transform_9(%arg0: i32) -> (i32, i32, i32) {
    %c0_i32 = arith.constant 0 : i32
    %c0_i32_0 = arith.constant 0 : i32
    %c0_i32_1 = arith.constant 0 : i32
    %c0_i32_2 = arith.constant 0 : i32
    return %c0_i32, %c0_i32_0, %c0_i32_1 : i32, i32, i32
  }
  func.func @transform_10(%arg0: i32) -> (i32, i32, i32) {
    %c0_i32 = arith.constant 0 : i32
    %c0_i32_0 = arith.constant 0 : i32
    %c0_i32_1 = arith.constant 0 : i32
    %c0_i32_2 = arith.constant 0 : i32
    return %c0_i32, %c0_i32_0, %c0_i32_1 : i32, i32, i32
  }
  func.func @transform_11(%arg0: i32) -> (i32, i32, i32) {
    %c0_i32 = arith.constant 0 : i32
    %c0_i32_0 = arith.constant 0 : i32
    %c0_i32_1 = arith.constant 0 : i32
    %c0_i32_2 = arith.constant 0 : i32
    return %c0_i32, %c0_i32_0, %c0_i32_1 : i32, i32, i32
  }
  func.func @transform_12(%arg0: i32) -> (i32, i32, i32) {
    %c0_i32 = arith.constant 0 : i32
    %c0_i32_0 = arith.constant 0 : i32
    %c0_i32_1 = arith.constant 0 : i32
    %c0_i32_2 = arith.constant 0 : i32
    return %c0_i32, %c0_i32_0, %c0_i32_1 : i32, i32, i32
  }
  func.func @transform_13(%arg0: i32) -> (i32, i32, i32) {
    %c0_i32 = arith.constant 0 : i32
    %c0_i32_0 = arith.constant 0 : i32
    %c0_i32_1 = arith.constant 0 : i32
    %c0_i32_2 = arith.constant 0 : i32
    return %c0_i32, %c0_i32_0, %c0_i32_1 : i32, i32, i32
  }
  func.func @transform_14(%arg0: i32) -> (i32, i32, i32) {
    %c0_i32 = arith.constant 0 : i32
    %c0_i32_0 = arith.constant 0 : i32
    %c0_i32_1 = arith.constant 0 : i32
    %c0_i32_2 = arith.constant 0 : i32
    return %c0_i32, %c0_i32_0, %c0_i32_1 : i32, i32, i32
  }
  func.func @transform_15(%arg0: i32) -> (i32, i32, i32) {
    %c0_i32 = arith.constant 0 : i32
    %c0_i32_0 = arith.constant 0 : i32
    %c0_i32_1 = arith.constant 0 : i32
    %c0_i32_2 = arith.constant 0 : i32
    return %c0_i32, %c0_i32_0, %c0_i32_1 : i32, i32, i32
  }
  func.func @transform_16(%arg0: i32) -> (i32, i32, i32) {
    %c0_i32 = arith.constant 0 : i32
    %c0_i32_0 = arith.constant 0 : i32
    %c0_i32_1 = arith.constant 0 : i32
    %c0_i32_2 = arith.constant 0 : i32
    return %c0_i32, %c0_i32_0, %c0_i32_1 : i32, i32, i32
  }
  func.func @transform_17(%arg0: i32) -> (i32, i32, i32) {
    %c0_i32 = arith.constant 0 : i32
    %c0_i32_0 = arith.constant 0 : i32
    %c0_i32_1 = arith.constant 0 : i32
    %c0_i32_2 = arith.constant 0 : i32
    return %c0_i32, %c0_i32_0, %c0_i32_1 : i32, i32, i32
  }
  func.func @transform_18(%arg0: i32) -> (i32, i32) {
    %c0_i32 = arith.constant 0 : i32
    %c0_i32_0 = arith.constant 0 : i32
    %c0_i32_1 = arith.constant 0 : i32
    return %c0_i32, %c0_i32_0 : i32, i32
  }
  func.func @transform_19(%arg0: i32) -> (i32, i32) {
    %c0_i32 = arith.constant 0 : i32
    %c0_i32_0 = arith.constant 0 : i32
    %c0_i32_1 = arith.constant 0 : i32
    return %c0_i32, %c0_i32_0 : i32, i32
  }
  func.func @transform_20(%arg0: i32) -> (i32, i32) {
    %c0_i32 = arith.constant 0 : i32
    %c0_i32_0 = arith.constant 0 : i32
    %c0_i32_1 = arith.constant 0 : i32
    return %c0_i32, %c0_i32_0 : i32, i32
  }
  func.func @transform_21(%arg0: i32) -> (i32, i32) {
    %c0_i32 = arith.constant 0 : i32
    %c0_i32_0 = arith.constant 0 : i32
    %c0_i32_1 = arith.constant 0 : i32
    return %c0_i32, %c0_i32_0 : i32, i32
  }
  func.func @transform_22(%arg0: i32) -> (i32, i32) {
    %c0_i32 = arith.constant 0 : i32
    %c0_i32_0 = arith.constant 0 : i32
    %c0_i32_1 = arith.constant 0 : i32
    return %c0_i32, %c0_i32_0 : i32, i32
  }
}

</mosaic_0001>

<bundles_post_ra>
// kernel: bert_forward.1
= control target key start
LH: loop header
LB: loop body
LE: loop exit
PB: predicated region body
PF: predicated region fallthrough
CT: control target
= control target key end

     0   :  { %s3507_s0 = inlined_call_operand.vmem [shape: s32[16,1], index: 0, kind: input, shape index: {}]   ;;  %s3508_s1 = inlined_call_operand.vmem [shape: f32[2,8], index: 1, kind: input, shape index: {}]   ;;  %s3509_s2 = inlined_call_operand.vmem [shape: f32[100,32], index: 2, kind: input, shape index: {}]   ;;  %s3510_s3 = inlined_call_operand.vmem [shape: f32[32,32], index: 3, kind: input, shape index: {}]   ;;  %s3511_s4 = inlined_call_operand.vmem [shape: f32[1,32], index: 4, kind: input, shape index: {}]   ;;  %s3512_s5 = inlined_call_operand.hbm [shape: f32[1,32], index: 5, kind: input, shape index: {}]   ;;  %s3513_s6 = inlined_call_operand.vmem [shape: f32[2,32,96], index: 6, kind: input, shape index: {}]   ;;  %s3514_s7 = inlined_call_operand.vmem [shape: f32[2,1,96], index: 7, kind: input, shape index: {}]   ;;  %s3515_s8 = inlined_call_operand.vmem [shape: f32[2,32,32], index: 8, kind: input, shape index: {}]   ;;  %s3516_s9 = inlined_call_operand.vmem [shape: f32[2,1,32], index: 9, kind: input, shape index: {}]   ;;  %s3517_s10 = inlined_call_operand.vmem [shape: f32[2,1,32], index: 10, kind: input, shape index: {}]   ;;  %s3518_s11 = inlined_call_operand.vmem [shape: f32[2,1,32], index: 11, kind: input, shape index: {}]   ;;  %s3519_s12 = inlined_call_operand.vmem [shape: f32[2,32,64], index: 12, kind: input, shape index: {}]   ;;  %s3520_s13 = inlined_call_operand.vmem [shape: f32[2,1,64], index: 13, kind: input, shape index: {}]   ;;  %s3521_s14 = inlined_call_operand.vmem [shape: f32[2,64,32], index: 14, kind: input, shape index: {}]   ;;  %s3522_s15 = inlined_call_operand.vmem [shape: f32[2,1,32], index: 15, kind: input, shape index: {}]   ;;  %s3523_s16 = inlined_call_operand.hbm [shape: f32[2,1,32], index: 16, kind: input, shape index: {}]   ;;  %s3524_s17 = inlined_call_operand.hbm [shape: f32[2,1,32], index: 17, kind: input, shape index: {}]   ;;  %s3525_s18 = inlined_call_operand.vmem [shape: f32[32,32], index: 18, kind: input, shape index: {}]   ;;  %s3526_s19 = inlined_call_operand.hbm [shape: f32[1,32], index: 19, kind: input, shape index: {}]   ;;  %s3527_s20 = inlined_call_operand.hbm [shape: f32[32,128], index: 20, kind: input, shape index: {}]   ;;  %s3528_s21 = inlined_call_operand.hbm [shape: f32[1,128], index: 21, kind: input, shape index: {}]   ;;  %s3529_s22 = inlined_call_operand.hbm [shape: f32[2,128], index: 22, kind: output, shape index: {}]  }
   0x1   :  { %3533 = sst [smem:[#allocation19_spill]] %s3507_s0 }
   0x2   :  { %3534 = sst [smem:[#allocation20_spill]] %s3508_s1 }
   0x3   :  { %3535 = sst [smem:[#allocation21_spill]] %s3509_s2 }
   0x4   :  { %3536 = sst [smem:[#allocation22_spill]] %s3510_s3 }
   0x5   :  { %3537 = sst [smem:[#allocation23_spill]] %s3511_s4 }
   0x6   :  { %3538 = sst [smem:[#allocation24_spill]] %s3512_s5 }
   0x7   :  { %3539 = sst [smem:[#allocation25_spill]] %s3513_s6 }
   0x8   :  { %3540 = sst [smem:[#allocation26_spill]] %s3529_s22 }
   0x9   :  { %27 = vsyncpa [#allocation3], 0 }
   0xa   :  { %28 = vsyncpa [#allocation6], 0 }
   0xb   :  { %29 = vsyncpa [#allocation9], 0 }
   0xc   :  { %30 = vsyncpa [#allocation12], 0  ;;  %s77_s29 = sshll.u32 %s3523_s16, 4  ;;  %s78_s29 = int_to_ptr.hbm [resolvable:$true] %s77_s29 }
   0xd   :  { %31 = vsyncpa [#allocation4], 0  ;;  %s2758_s30 = smov [#allocation5]   ;;  %s106_s1 = sshll.u32 %s3526_s19, 4  ;;  %s107_s1 = int_to_ptr.hbm [resolvable:$true] %s106_s1 }
   0xe   :  { %s79_s4 = sshll.u32 %s2758_s30, 4  ;;  %s2759_s5 = smov 16   ;;  %s80_s4 = int_to_ptr.vmem [resolvable:$true] %s79_s4 }
   0xf   :  { %s2760_s24 = smov 1   ;;  %s2761_s6 = smov [#allocation8]  }
  0x10   :  { %85 = dma.hbm_to_vmem [thread:$0]  %s78_s29, 32, %s80_s4, [#allocation6], %s2759_s5, %s2759_s5, %s2760_s24  }
  0x11   :  { %s108_s25 = sshll.u32 %s2761_s6, 4  ;;  %s3541_s27 = sld [smem:[#allocation24_spill]]  ;;  %s109_s25 = int_to_ptr.vmem [resolvable:$true] %s108_s25 }
  0x12   :  { %111 = dma.hbm_to_vmem [thread:$0]  %s107_s1, 16, %s109_s25, [#allocation9]  }
  0x13   :  { %s90_s30 = sshll.u32 %s3524_s17, 4  ;;  %s2762_s22 = smov [#allocation2]   ;;  %s91_s30 = int_to_ptr.hbm [resolvable:$true] %s90_s30 }
  0x14   :  { %s49_s0 = sshll.u32 %s2762_s22, 4  ;;  %s2763_s19 = smov [#allocation7]   ;;  %s50_s0 = int_to_ptr.vmem [resolvable:$true] %s49_s0 }
  0x15   :  { %s92_s29 = sshll.u32 %s2763_s19, 4  ;;  %s116_s6 = sshll.u32 %s3527_s20, 4  ;;  %s93_s29 = int_to_ptr.vmem [resolvable:$true] %s92_s29  ;;  %s117_s6 = int_to_ptr.hbm [resolvable:$true] %s116_s6 }
  0x16   :  { %98 = dma.hbm_to_vmem [thread:$0]  %s91_s30, 32, %s93_s29, [#allocation6], %s2759_s5, %s2759_s5, %s2760_s24  }
  0x17   :  { %s47_s3 = sshll.u32 %s3541_s27, 4  ;;  %s2764_s26 = smov [#allocation10]   ;;  %s48_s3 = int_to_ptr.hbm [resolvable:$true] %s47_s3 }
  0x18   :  { %52 = dma.hbm_to_vmem [thread:$0]  %s48_s3, 16, %s50_s0, [#allocation3]  }
  0x19   :  { %s118_s1 = sshll.u32 %s2764_s26, 4  ;;  %s130_s17 = sshll.u32 %s3528_s21, 4  ;;  %s119_s1 = int_to_ptr.vmem [resolvable:$true] %s118_s1  ;;  %s131_s17 = int_to_ptr.hbm [resolvable:$true] %s130_s17 }
  0x1a   :  { %s2765_s22 = smov 128   ;;  %s2766_s27 = smov 8  }
  0x1b   :  { %124 = dma.hbm_to_vmem [thread:$0]  %s117_s6, 512, %s119_s1, [#allocation9], %s2765_s22, %s2765_s22, %s2766_s27  }
  0x1c   :  { %s2767_s3 = smov [#allocation11]  }
  0x1d   :  { %s132_s16 = sshll.u32 %s2767_s3, 4  ;;  %s133_s16 = int_to_ptr.vmem [resolvable:$true] %s132_s16 }
  0x1e   :  { %135 = dma.hbm_to_vmem [thread:$0]  %s131_s17, 16, %s133_s16, [#allocation12]  }
  0x1f   :  { %2748 = dma.done.wait [#allocation3], 16  }
  0x20   :  { %2749 = vsyncadd [#allocation3], 4294967280 }
  0x21   :  { %2750 = dma.done.wait [#allocation6], 64  }
  0x22   :  { %2751 = vsyncadd [#allocation6], 4294967232 }
  0x23   :  { %2752 = dma.done.wait [#allocation9], 528  }
  0x24   :  { %2753 = vsyncadd [#allocation9], 4294966768 }
  0x25   :  { %2754 = dma.done.wait [#allocation12], 16  }
  0x26   :  { %2755 = vsyncadd [#allocation12], 4294967280  ;;  %v2768_v0 = vmov 0   ;;  %vm197_vm0 = vcmask 1043456   ;;  %s3542_s5 = sld [smem:[#allocation19_spill]]  ;;  %v162_v15 = vlaneseq  ;;  %vm190_vm1 = vcmask 818176  }
  0x27   :  { %2462 = vset.pattern.permute.xlu0 %v2768_v0  ;;  %2463 = vset.pattern.permute.xlu1 %v2768_v0  ;;  %s3543_s30 = sld [smem:[#allocation21_spill]]  ;;  %v2769_v18 = vmov 0.0   ;;  %vm226_vm3 = vcmask 261120   ;;  %v2770_v24 = vmov 32.0   ;;  %v2465_v56 = vld [vmem:[#allocation2] ss:$0 sm:$0xff] }
  0x28   :  { %v163_v16 = vand.u32 127, %v162_v15  ;;  %s3544_s1 = sld [smem:[#allocation22_spill]]  ;;  %2484 = vrcp.f32 %v2770_v24  ;;  %v2997_v59 = vld [vmem:[%s3514_s7] ss:$0 sm:$0xff]  ;;  %s2771_s4 = smov 96   ;;  %vm334_vm9 = vcmask 64512  }
  0x29   :  { %s3545_s22 = sld [smem:[#allocation25_spill]]  ;;  %s2772_s23 = smov 64  }
  0x2a   :  { %s3546_s0 = sld [smem:[#allocation23_spill]]  ;;  %s2773_s6 = smov 112  }
  0x2b   :  { %s2774_s26 = smov 104   ;;  %s3547_s25 = sld [smem:[#allocation20_spill]] }
  0x2c   :  { %v160_v1 = vld [vmem:[%s3542_s5] sm:$0xff]  ;;  %v161_v36 = vld [vmem:[%s3542_s5 + $0x8] sm:$0xff]  ;;  %s2775_s2 = smov 120   ;;  %s2776_s17 = smov 88  }
  0x2d   :  { %v188_v2 = vld [vmem:[%s3543_s30 + $0x60] sm:$0xf]  ;;  %v187_v3 = vld [vmem:[%s3543_s30 + $0x58] sm:$0xff]  ;;  %165 = vperm.xlu0 %2462, %v160_v1   ;;  %v186_v4 = vld [vmem:[%s3543_s30 + $0x50] sm:$0xff]  ;;  %s2777_s27 = smov 80   ;;  %s2778_s3 = smov 72  }
  0x2e   :  { %2326 = vmatpush.msk.msra.mxu0 %vm197_vm0, %v188_v2  ;;  %v185_v5 = vld [vmem:[%s3543_s30 + $0x48] sm:$0xff]  ;;  %v184_v6 = vld [vmem:[%s3543_s30 + $0x40] sm:$0xff]  ;;  %v183_v7 = vld [vmem:[%s3543_s30 + $0x38] sm:$0xff]  ;;  %v2485_v25 = vpop.eup %2484  ;;  %s2779_s16 = smov 56   ;;  %s2780_s20 = smov 48   ;;  %vm1170_vm0 = vcmask 523264  }
  0x2f   :  { %v182_v8 = vld [vmem:[%s3543_s30 + $0x30] sm:$0xff]  ;;  %v181_v9 = vld [vmem:[%s3543_s30 + $0x28] sm:$0xff]  ;;  %v180_v10 = vld [vmem:[%s3543_s30 + $0x20] sm:$0xff]  ;;  %v234_v26 = vmul.f32 32.0, %v2485_v25  ;;  %vm238_vm4 = vweird.f32 %v2485_v25  ;;  %s2781_s5 = smov 40  }
  0x30   :  { %205 = vmatpush.msra.mxu0 %v187_v3  ;;  %v179_v11 = vld [vmem:[%s3543_s30 + $0x18] sm:$0xff]  ;;  %v178_v12 = vld [vmem:[%s3543_s30 + $0x10] sm:$0xff]  ;;  %v177_v13 = vld [vmem:[%s3543_s30 + $0x8] sm:$0xff] }
  0x31   :  { %v176_v14 = vld [vmem:[%s3543_s30] sm:$0xff]  ;;  %v235_v27 = vsub.f32 1.0, %v234_v26  ;;  %v292_v37 = vld [vmem:[%s3545_s22 + $0x18] sm:$0xff]  ;;  %v291_v38 = vld [vmem:[%s3545_s22 + $0x10] sm:$0xff] }
  0x32   :  { %206 = vmatpush.msra.mxu0 %v186_v4  ;;  %v2962_v20 = vld [vmem:[%s3544_s1] sm:$0xff]  ;;  %2433 = vmatpush.msra.mxu1 %v292_v37  ;;  %v290_v39 = vld [vmem:[%s3545_s22 + $0x8] sm:$0xff] }
  0x33   :  { %v236_v28 = vmul.f32 %v2485_v25, %v235_v27  ;;  %v289_v40 = vld [vmem:[%s3545_s22] sm:$0xff] }
  0x34   :  { %207 = vmatpush.msra.mxu0 %v185_v5  ;;  %2434 = vmatpush.msra.mxu1 %v291_v38  ;;  %v2464_v53 = vld [vmem:[%s3546_s0] ss:$0 sm:$0xff] }
  0x35   :  { %v237_v29 = vadd.f32 %v2485_v25, %v236_v28 }
  0x36   :  { %208 = vmatpush.msra.mxu0 %v184_v6  ;;  %2435 = vmatpush.msra.mxu1 %v290_v39  ;;  %v3020_v6 = vld [vmem:[%s3547_s25] sm:$0x3] }
  0x37   :  { %v2966_v30 = vsel %vm238_vm4, %v2485_v25, %v237_v29 }
  0x38   :  { %209 = vmatpush.msra.mxu0 %v183_v7  ;;  %2436 = vmatpush.msra.mxu1 %v289_v40  ;;  %v3023_v7 = vperm.slane %v3020_v6, 0 }
  0x3a   :  { %210 = vmatpush.msra.mxu0 %v182_v8 }
  0x3c   :  { %211 = vmatpush.msra.mxu0 %v181_v9 }
  0x3e   :  { %212 = vmatpush.msra.mxu0 %v180_v10 }
  0x40   :  { %213 = vmatpush.msra.mxu0 %v179_v11 }
  0x42   :  { %214 = vmatpush.msra.mxu0 %v178_v12 }
  0x44   :  { %215 = vmatpush.msra.mxu0 %v177_v13 }
  0x46   :  { %216 = vmatpush.msra.mxu0 %v176_v14 }
  0x48   :  { %315 = vmatpush.msrb.mxu0 %v292_v37 }
  0x4a   :  { %316 = vmatpush.msrb.mxu0 %v291_v38 }
  0x4c   :  { %317 = vmatpush.msrb.mxu0 %v290_v39 }
  0x4e   :  { %318 = vmatpush.msrb.mxu0 %v289_v40 }
  0x9f   :  { %v166_v17 = vpop.permute.xlu0 %165 }
  0xa0   :  { %vm170_vm2 = vcmp.eq.s32.totalorder %v166_v17, %v163_v16 }
  0xa1   :  { %v2324_v19 = vsel %vm170_vm2, 1.0, %v2769_v18 }
  0xa2   :  { %2327 = vmatmul.msk.f32.vlgmr.msra.gmra.mxu0 %vm190_vm1, %v2324_v19 }
 0x11f   :  { %v218_v21 = vpop.f32.mrf.mxu0 }
 0x120   :  { %v219_v22 = vadd.f32 %v218_v21, %v2962_v20 }
 0x122   :  { %v227_v23 = vsel %vm226_vm3, %v219_v22, 0.0 }
 0x123   :  { %228 = vadd.xlane.f32.xlu0 %v227_v23 }
 0x196   :  { %v229_v31 = vpop.xlane.xlu0 %228 }
 0x197   :  { %v240_v32 = vmul.f32 %v2966_v30, %v229_v31 }
 0x199   :  { %v242_v33 = vsub.f32 %v219_v22, %v240_v32 }
 0x19b   :  { %v244_v34 = vmul.f32 %v242_v33, %v242_v33 }
 0x19d   :  { %v246_v35 = vsel %vm226_vm3, %v244_v34, 0.0 }
 0x19e   :  { %247 = vadd.xlane.f32.xlu1 %v246_v35 }
 0x1b7   :  { %168 = vperm.xlu1 %2463, %v161_v36  }
 0x211   :  { %v248_v41 = vpop.xlane.xlu1 %247 }
 0x212   :  { %v252_v42 = vmul.f32 %v248_v41, %v2966_v30 }
 0x214   :  { %v254_v43 = vadd.f32 1e-12, %v252_v42 }
 0x216   :  { %2486 = vrsqrt.f32 %v254_v43  ;;  %vm262_vm6 = vweird.f32 %v254_v43 }
 0x21c   :  { %v2487_v44 = vpop.eup %2486 }
 0x21d   :  { %v257_v45 = vmul.f32 %v2487_v44, %v254_v43  ;;  %vm263_vm5 = vweird.f32 %v2487_v44 }
 0x21e   :  { %vm264_vm7 = vmor %vm262_vm6, %vm263_vm5 }
 0x21f   :  { %v258_v46 = vmul.f32 %v2487_v44, %v257_v45 }
 0x221   :  { %v259_v47 = vmul.f32 0.5, %v258_v46 }
 0x223   :  { %v260_v48 = vsub.f32 1.5, %v259_v47 }
 0x225   :  { %v261_v49 = vmul.f32 %v2487_v44, %v260_v48 }
 0x227   :  { %v265_v50 = vsel %vm264_vm7, %v2487_v44, %v261_v49 }
 0x228   :  { %v276_v52 = vmul.f32 %v265_v50, %v242_v33 }
 0x229   :  { %v169_v51 = vpop.permute.xlu1 %168 }
 0x22a   :  { %vm171_vm8 = vcmp.eq.s32.totalorder %v169_v51, %v163_v16  ;;  %v281_v55 = vmul.f32 %v2464_v53, %v276_v52 }
 0x22b   :  { %v2325_v54 = vsel %vm171_vm8, 1.0, %v2769_v18 }
 0x22c   :  { %2328 = vmatmul.msk.f32.gmra.mxu0 %vm190_vm1, %v2325_v54  ;;  %v2990_v57 = vadd.f32 %v2465_v56, %v281_v55  ;;  %v327_v54 = vld [vmem:[%s3515_s8 + $0x8] sm:$0xff] }
 0x234   :  { %2329 = vmatmul.msk.f32.vlgmr.msrb.gmra.mxu0 %vm226_vm3, %v2990_v57 }
 0x2a9   :  { %v221_v58 = vpop.f32.mrf.mxu0 }
 0x2aa   :  { %v222_v62 = vadd.f32 %v221_v58, %v2962_v20 }
 0x2ac   :  { %v230_v63 = vsel %vm226_vm3, %v222_v62, 0.0 }
 0x2b1   :  { %v320_v60 = vpop.f32.mrf.mxu0 }
 0x2b2   :  { %v3000_v61 = vadd.f32 %v2997_v59, %v320_v60 }
 0x2b4   :  { %332 = vrot.lane.b32.xlu2 %v3000_v61, %s2771_s4 }
 0x2dd   :  { %231 = vadd.xlane.f32.xlu2 %v230_v63 }
 0x30e   :  { %v333_v0 = vpop.permute.xlu2 %332 }
 0x30f   :  { %2331 = vmatpush.xpose.msk.msra.mxu2 %vm334_vm9, %v333_v0 }
 0x312   :  { %2332 = vmatmul.msk.f32.vlgmr.msra.gmra.mxu2 %vm334_vm9, %v3000_v61 }
 0x350   :  { %v232_v1 = vpop.xlane.xlu2 %231 }
 0x351   :  { %v241_v2 = vmul.f32 %v2966_v30, %v232_v1 }
 0x353   :  { %v243_v3 = vsub.f32 %v222_v62, %v241_v2  ;;  %v3080_v2 = vperm.slane %v3020_v6, 1 }
 0x355   :  { %v245_v4 = vmul.f32 %v243_v3, %v243_v3 }
 0x357   :  { %v249_v5 = vsel %vm226_vm3, %v245_v4, 0.0 }
 0x358   :  { %250 = vadd.xlane.f32.xlu2 %v249_v5 }
 0x370   :  { %370 = vrot.lane.b32.xlu2 %v3000_v61, %s2772_s23 }
 0x378   :  { %507 = vrot.lane.b32.xlu2 %v3000_v61, %s2773_s6 }
 0x380   :  { %596 = vrot.lane.b32.xlu2 %v3000_v61, %s2774_s26 }
 0x395   :  { %v356_v8 = vpop.f32.mrf.mxu2 }
 0x396   :  { %v357_v9 = vadd.f32 %v356_v8, %v3023_v7 }
 0x398   :  { %v359_v10 = vsel %vm334_vm9, %v357_v9, -inf }
 0x399   :  { %360 = vmax.xlane.f32.xlu1 %v359_v10 }
 0x3b2   :  { %396 = vrot.lane.b32.xlu1 %v3000_v61, %s2775_s2 }
 0x3cb   :  { %v251_v11 = vpop.xlane.xlu2 %250 }
 0x3cc   :  { %v253_v12 = vmul.f32 %v251_v11, %v2966_v30 }
 0x3ce   :  { %v255_v13 = vadd.f32 1e-12, %v253_v12 }
 0x3d0   :  { %2488 = vrsqrt.f32 %v255_v13  ;;  %vm272_vm11 = vweird.f32 %v255_v13 }
 0x3d3   :  { %v371_v14 = vpop.permute.xlu2 %370 }
 0x3d4   :  { %391 = vmatpush.msra.mxu3 %v371_v14 }
 0x3d6   :  { %v2489_v15 = vpop.eup %2488 }
 0x3d7   :  { %v267_v16 = vmul.f32 %v2489_v15, %v255_v13  ;;  %vm273_vm10 = vweird.f32 %v2489_v15 }
 0x3d8   :  { %vm274_vm12 = vmor %vm272_vm11, %vm273_vm10 }
 0x3d9   :  { %v268_v17 = vmul.f32 %v2489_v15, %v267_v16 }
 0x3db   :  { %v269_v18 = vmul.f32 0.5, %v268_v17  ;;  %v508_v39 = vpop.permute.xlu2 %507  ;;  %v326_v17 = vld [vmem:[%s3515_s8] sm:$0xff] }
 0x3dd   :  { %v270_v19 = vsub.f32 1.5, %v269_v18 }
 0x3df   :  { %v271_v20 = vmul.f32 %v2489_v15, %v270_v19 }
 0x3e1   :  { %v275_v21 = vsel %vm274_vm12, %v2489_v15, %v271_v20 }
 0x3e2   :  { %v277_v22 = vmul.f32 %v275_v21, %v243_v3 }
 0x3e3   :  { %v597_v41 = vpop.permute.xlu2 %596 }
 0x3e4   :  { %v282_v23 = vmul.f32 %v2464_v53, %v277_v22 }
 0x3e6   :  { %v3030_v24 = vadd.f32 %v2465_v56, %v282_v23 }
 0x3e8   :  { %2330 = vmatmul.msk.f32.vlgmr.msra.gmra.mxu1 %vm226_vm3, %v3030_v24 }
 0x40c   :  { %v361_v25 = vpop.xlane.xlu1 %360 }
 0x40d   :  { %v362_v26 = vsub.f32 %v357_v9, %v361_v25 }
 0x40f   :  { %v363_v27 = vmul.f32 1.442695, %v362_v26 }
 0x411   :  { %2490 = vpow2.f32 %v363_v27 }
 0x417   :  { %v2491_v28 = vpop.eup %2490 }
 0x418   :  { %v365_v29 = vsel %vm334_vm9, %v2491_v28, 0.0 }
 0x419   :  { %366 = vadd.xlane.f32.xlu0 %v365_v29 }
 0x424   :  { %v397_v37 = vpop.permute.xlu1 %396 }
 0x42d   :  { %398 = vrot.lane.b32.xlu0 %v3000_v61, %s2776_s17 }
 0x435   :  { %509 = vrot.lane.b32.xlu0 %v3000_v61, %s2777_s27 }
 0x43d   :  { %598 = vrot.lane.b32.xlu0 %v3000_v61, %s2778_s3 }
 0x465   :  { %v323_v31 = vpop.f32.mrf.mxu1 }
 0x466   :  { %v3042_v32 = vadd.f32 %v2997_v59, %v323_v31 }
 0x468   :  { %687 = vrot.lane.b32.xlu0 %v3042_v32, %s2771_s4 }
 0x470   :  { %435 = vrot.lane.b32.xlu0 %v3000_v61, %s2779_s16 }
 0x48c   :  { %v367_v33 = vpop.xlane.xlu0 %366 }
 0x48d   :  { %2492 = vrcp.f32 %v367_v33 }
 0x493   :  { %v2493_v34 = vpop.eup %2492 }
 0x494   :  { %v369_v35 = vmul.f32 %v2493_v34, %v2491_v28 }
 0x496   :  { %2333 = vmatmul.msk.f32.vlgmr.msra.gmra.mxu3 %vm334_vm9, %v369_v35 }
 0x49f   :  { %v399_v36 = vpop.permute.xlu0 %398 }
 0x4a0   :  { %2334 = vmatpush.xpose.msk.msrb.mxu3 %vm334_vm9, %v399_v36 }
 0x4a3   :  { %2335 = vmatmul.msk.f32.vlgmr.msrb.gmra.mxu3 %vm334_vm9, %v397_v37 }
 0x4a4   :  { %479 = vmatpush.msra.mxu3 %v327_v54 }
 0x4a7   :  { %v510_v38 = vpop.permute.xlu0 %509 }
 0x4a8   :  { %2339 = vmatpush.xpose.msk.msrb.mxu1 %vm334_vm9, %v510_v38 }
 0x4ab   :  { %2340 = vmatmul.msk.f32.vlgmr.msrb.gmra.mxu1 %vm334_vm9, %v508_v39 }
 0x4af   :  { %v599_v40 = vpop.permute.xlu0 %598 }
 0x4b0   :  { %2343 = vmatpush.xpose.msk.msra.mxu1 %vm334_vm9, %v599_v40 }
 0x4b3   :  { %2344 = vmatmul.msk.f32.vlgmr.msra.gmra.mxu1 %vm334_vm9, %v597_v41 }
 0x4da   :  { %v688_v42 = vpop.permute.xlu0 %687 }
 0x4db   :  { %2347 = vmatpush.xpose.msk.msrb.mxu1 %vm334_vm9, %v688_v42  ;;  %v328_v42 = vld [vmem:[%s3515_s8 + $0x10] sm:$0xff] }
 0x4de   :  { %2348 = vmatmul.msk.f32.vlgmr.msrb.gmra.mxu1 %vm334_vm9, %v3042_v32 }
 0x4df   :  { %833 = vmatpush.msra.mxu1 %v327_v54 }
 0x4e1   :  { %944 = vmatpush.msrb.mxu1 %v328_v42 }
 0x4e2   :  { %v436_v43 = vpop.permute.xlu0 %435 }
 0x4e3   :  { %456 = vmatpush.msrb.mxu2 %v436_v43  ;;  %v3117_v43 = vld [vmem:[%s3515_s8 + $0x18] sm:$0xff] }
 0x4e5   :  { %502 = vmatpush.msra.mxu2 %v326_v17 }
 0x519   :  { %v3058_v44 = vpop.f32.mrf.mxu3 }
 0x526   :  { %v421_v45 = vpop.f32.mrf.mxu3 }
 0x527   :  { %v422_v46 = vadd.f32 %v421_v45, %v3023_v7 }
 0x528   :  { %v532_v47 = vpop.f32.mrf.mxu1 }
 0x529   :  { %v533_v48 = vadd.f32 %v532_v47, %v3023_v7  ;;  %v424_v49 = vsel %vm334_vm9, %v422_v46, -inf }
 0x52a   :  { %425 = vmax.xlane.f32.xlu2 %v424_v49 }
 0x52b   :  { %v535_v50 = vsel %vm334_vm9, %v533_v48, -inf }
 0x52c   :  { %536 = vmax.xlane.f32.xlu0 %v535_v50 }
 0x530   :  { %v621_v51 = vpop.f32.mrf.mxu1 }
 0x531   :  { %v622_v52 = vadd.f32 %v621_v51, %v3023_v7 }
 0x533   :  { %v624_v53 = vsel %vm334_vm9, %v622_v52, -inf }
 0x534   :  { %625 = vmax.xlane.f32.xlu2 %v624_v53 }
 0x540   :  { %546 = vrot.lane.b32.xlu0 %v3000_v61, %s2780_s20 }
 0x548   :  { %750 = vrot.lane.b32.xlu0 %v3042_v32, %s2775_s2 }
 0x550   :  { %863 = vrot.lane.b32.xlu0 %v3042_v32, %s2777_s27 }
 0x558   :  { %724 = vrot.lane.b32.xlu0 %v3042_v32, %s2772_s23 }
 0x55b   :  { %v710_v5 = vpop.f32.mrf.mxu1 }
 0x55c   :  { %v711_v10 = vadd.f32 %v710_v5, %v3080_v2 }
 0x55e   :  { %v713_v11 = vsel %vm334_vm9, %v711_v10, -inf }
 0x560   :  { %950 = vrot.lane.b32.xlu0 %v3042_v32, %s2774_s26 }
 0x59d   :  { %v426_v55 = vpop.xlane.xlu2 %425 }
 0x59e   :  { %v427_v56 = vsub.f32 %v422_v46, %v426_v55 }
 0x59f   :  { %v537_v58 = vpop.xlane.xlu0 %536 }
 0x5a0   :  { %v428_v59 = vmul.f32 1.442695, %v427_v56  ;;  %v538_v60 = vsub.f32 %v533_v48, %v537_v58 }
 0x5a2   :  { %2494 = vpow2.f32 %v428_v59  ;;  %v539_v62 = vmul.f32 1.442695, %v538_v60 }
 0x5a4   :  { %2496 = vpow2.f32 %v539_v62 }
 0x5a7   :  { %v626_v63 = vpop.xlane.xlu2 %625 }
 0x5a8   :  { %v2495_v0 = vpop.eup %2494  ;;  %v627_v1 = vsub.f32 %v622_v52, %v626_v63 }
 0x5a9   :  { %v430_v3 = vsel %vm334_vm9, %v2495_v0, 0.0 }
 0x5aa   :  { %v2497_v4 = vpop.eup %2496  ;;  %431 = vadd.xlane.f32.xlu1 %v430_v3  ;;  %v628_v9 = vmul.f32 1.442695, %v627_v1  ;;  %v3137_v1 = vld [vmem:[%s3516_s9] ss:$0 sm:$0xff] }
 0x5ab   :  { %v541_v8 = vsel %vm334_vm9, %v2497_v4, 0.0 }
 0x5ac   :  { %542 = vadd.xlane.f32.xlu2 %v541_v8  ;;  %2498 = vpow2.f32 %v628_v9 }
 0x5b2   :  { %v547_v12 = vpop.permute.xlu0 %546  ;;  %714 = vmax.xlane.f32.xlu1 %v713_v11  ;;  %v2499_v13 = vpop.eup %2498 }
 0x5b3   :  { %567 = vmatpush.msrb.mxu3 %v547_v12  ;;  %v630_v6 = vsel %vm334_vm9, %v2499_v13, 0.0 }
 0x5ba   :  { %v751_v14 = vpop.permute.xlu0 %750  ;;  %631 = vadd.xlane.f32.xlu1 %v630_v6 }
 0x5c2   :  { %v864_v15 = vpop.permute.xlu0 %863 }
 0x5c4   :  { %635 = vrot.lane.b32.xlu2 %v3000_v61, %s2781_s5 }
 0x5ca   :  { %v725_v16 = vpop.permute.xlu0 %724 }
 0x5cb   :  { %745 = vmatpush.msra.mxu0 %v725_v16 }
 0x5cd   :  { %856 = vmatpush.msrb.mxu0 %v326_v17 }
 0x5d2   :  { %v951_v46 = vpop.permute.xlu0 %950 }
 0x5d3   :  { %752 = vrot.lane.b32.xlu1 %v3042_v32, %s2776_s17 }
 0x5db   :  { %861 = vrot.lane.b32.xlu1 %v3042_v32, %s2773_s6 }
 0x5e3   :  { %952 = vrot.lane.b32.xlu1 %v3042_v32, %s2778_s3 }
 0x61d   :  { %v432_v18 = vpop.xlane.xlu1 %431 }
 0x61e   :  { %2500 = vrcp.f32 %v432_v18 }
 0x61f   :  { %v543_v26 = vpop.xlane.xlu2 %542 }
 0x624   :  { %v2501_v61 = vpop.eup %2500 }
 0x625   :  { %v715_v19 = vpop.xlane.xlu1 %714  ;;  %v434_v20 = vmul.f32 %v2501_v61, %v2495_v0 }
 0x626   :  { %v716_v21 = vsub.f32 %v711_v10, %v715_v19 }
 0x627   :  { %2336 = vmatmul.msk.f32.vlgmr.msrb.gmra.mxu2 %vm334_vm9, %v434_v20  ;;  %v636_v29 = vpop.permute.xlu2 %635 }
 0x628   :  { %v717_v22 = vmul.f32 1.442695, %v716_v21  ;;  %590 = vmatpush.msrb.mxu2 %v328_v42 }
 0x62a   :  { %2502 = vpow2.f32 %v717_v22 }
 0x62d   :  { %v632_v27 = vpop.xlane.xlu1 %631 }
 0x62f   :  { %2338 = vmatmul.msk.f32.vlgmr.msra.gmra.mxu2 %vm334_vm9, %v3058_v44 }
 0x630   :  { %v2503_v23 = vpop.eup %2502  ;;  %679 = vmatpush.msra.mxu2 %v3117_v43 }
 0x631   :  { %v719_v25 = vsel %vm334_vm9, %v2503_v23, 0.0 }
 0x632   :  { %720 = vadd.xlane.f32.xlu2 %v719_v25 }
 0x645   :  { %v753_v28 = vpop.permute.xlu1 %752 }
 0x64d   :  { %v862_v31 = vpop.permute.xlu1 %861 }
 0x655   :  { %v953_v38 = vpop.permute.xlu1 %952 }
 0x6a5   :  { %v721_v33 = vpop.xlane.xlu2 %720 }
 0x6a6   :  { %2504 = vrcp.f32 %v721_v33 }
 0x6a7   :  { %2506 = vrcp.f32 %v543_v26 }
 0x6a8   :  { %2508 = vrcp.f32 %v632_v27 }
 0x6aa   :  { %v458_v34 = vpop.f32.mrf.mxu2 }
 0x6ab   :  { %2337 = vmatmul.msk.f32.vlgmr.msra.gmra.mxu3 %vm334_vm9, %v458_v34 }
 0x6ac   :  { %v2505_v35 = vpop.eup %2504  ;;  %656 = vmatpush.msra.mxu3 %v636_v29 }
 0x6ad   :  { %v723_v36 = vmul.f32 %v2505_v35, %v2503_v23  ;;  %v2507_v37 = vpop.eup %2506 }
 0x6ae   :  { %v545_v39 = vmul.f32 %v2507_v37, %v2497_v4  ;;  %v2509_v40 = vpop.eup %2508 }
 0x6af   :  { %2349 = vmatmul.msk.f32.vlgmr.msra.gmra.mxu0 %vm334_vm9, %v723_v36  ;;  %v634_v41 = vmul.f32 %v2509_v40, %v2499_v13 }
 0x6b0   :  { %2359 = vmatpush.xpose.msk.msra.mxu0 %vm334_vm9, %v953_v38 }
 0x6b2   :  { %v504_v55 = vpop.f32.mrf.mxu2 }
 0x6b3   :  { %2341 = vmatmul.msk.f32.vlgmr.msrb.gmra.mxu3 %vm334_vm9, %v545_v39 }
 0x6b4   :  { %2350 = vmatpush.xpose.msk.msrb.mxu3 %vm334_vm9, %v753_v28 }
 0x6bb   :  { %2345 = vmatmul.msk.f32.vlgmr.msra.gmra.mxu3 %vm334_vm9, %v634_v41 }
 0x6bc   :  { %2355 = vmatpush.xpose.msk.msra.mxu3 %vm334_vm9, %v864_v15 }
 0x6c3   :  { %2351 = vmatmul.msk.f32.vlgmr.msrb.gmra.mxu3 %vm334_vm9, %v751_v14 }
 0x6cb   :  { %2356 = vmatmul.msk.f32.vlgmr.msra.gmra.mxu3 %vm334_vm9, %v862_v31 }
 0x72c   :  { %v747_v44 = vpop.f32.mrf.mxu0 }
 0x72d   :  { %2354 = vmatmul.msk.f32.vlgmr.msrb.gmra.mxu0 %vm334_vm9, %v747_v44 }
 0x72e   :  { %v481_v45 = vpop.f32.mrf.mxu3 }
 0x72f   :  { %v505_v60 = vadd.f32 %v504_v55, %v481_v45  ;;  %v1103_v55 = vld [vmem:[%s3519_s12] sm:$0xff] }
 0x735   :  { %2360 = vmatmul.msk.f32.vlgmr.msra.gmra.mxu0 %vm334_vm9, %v951_v46 }
 0x736   :  { %v569_v47 = vpop.f32.mrf.mxu3 }
 0x737   :  { %2342 = vmatmul.msk.f32.vlgmr.msrb.gmra.mxu2 %vm334_vm9, %v569_v47 }
 0x73e   :  { %v658_v48 = vpop.f32.mrf.mxu3 }
 0x73f   :  { %2346 = vmatmul.msk.f32.vlgmr.msra.gmra.mxu2 %vm334_vm9, %v658_v48 }
 0x746   :  { %v775_v49 = vpop.f32.mrf.mxu3 }
 0x747   :  { %v776_v50 = vadd.f32 %v775_v49, %v3080_v2 }
 0x749   :  { %v778_v51 = vsel %vm334_vm9, %v776_v50, -inf }
 0x74a   :  { %779 = vmax.xlane.f32.xlu1 %v778_v51 }
 0x74e   :  { %v886_v52 = vpop.f32.mrf.mxu3 }
 0x74f   :  { %v887_v53 = vadd.f32 %v886_v52, %v3080_v2  ;;  %v1105_v52 = vld [vmem:[%s3519_s12 + $0x10] sm:$0xff] }
 0x751   :  { %v889_v54 = vsel %vm334_vm9, %v887_v53, -inf }
 0x752   :  { %890 = vmax.xlane.f32.xlu0 %v889_v54 }
 0x763   :  { %900 = vrot.lane.b32.xlu1 %v3042_v32, %s2780_s20 }
 0x76b   :  { %989 = vrot.lane.b32.xlu1 %v3042_v32, %s2781_s5 }
 0x7aa   :  { %v3132_v62 = vpop.f32.mrf.mxu0 }
 0x7b2   :  { %v975_v14 = vpop.f32.mrf.mxu0 }
 0x7b3   :  { %v976_v15 = vadd.f32 %v975_v14, %v3080_v2 }
 0x7b5   :  { %v978_v18 = vsel %vm334_vm9, %v976_v15, -inf }
 0x7ba   :  { %v592_v56 = vpop.f32.mrf.mxu2 }
 0x7bb   :  { %v595_v0 = vadd.f32 %v592_v56, %v505_v60  ;;  %v3172_v56 = vld [vmem:[%s3517_s10] ss:$0 sm:$0xff] }
 0x7bd   :  { %v780_v58 = vpop.xlane.xlu1 %779 }
 0x7be   :  { %v781_v59 = vsub.f32 %v776_v50, %v780_v58 }
 0x7c0   :  { %v782_v63 = vmul.f32 1.442695, %v781_v59 }
 0x7c2   :  { %2510 = vpow2.f32 %v782_v63  ;;  %v681_v3 = vpop.f32.mrf.mxu2  ;;  %v3179_v63 = vld [vmem:[%s3518_s11] ss:$0 sm:$0xff] }
 0x7c3   :  { %v684_v4 = vadd.f32 %v681_v3, %v595_v0  ;;  %v1165_v3 = vld [vmem:[%s3521_s14 + $0x38] sm:$0xff] }
 0x7c4   :  { %1185 = vmatpush.msrb.mxu0 %v1165_v3 }
 0x7c5   :  { %v1043_v5 = vadd.f32 %v3137_v1, %v684_v4  ;;  %v891_v8 = vpop.xlane.xlu0 %890  ;;  %v1164_v4 = vld [vmem:[%s3521_s14 + $0x30] sm:$0xff] }
 0x7c6   :  { %v892_v9 = vsub.f32 %v887_v53, %v891_v8  ;;  %v1104_v53 = vld [vmem:[%s3519_s12 + $0x8] sm:$0xff]  ;;  %1186 = vmatpush.msrb.mxu0 %v1164_v4  ;;  %v2367_v4 = vld [vmem:[%s3545_s22 + $0x20] sm:$0xff] }
 0x7c7   :  { %v1045_v10 = vadd.f32 %v1043_v5, %v2990_v57  ;;  %v1163_v5 = vld [vmem:[%s3521_s14 + $0x28] sm:$0xff] }
 0x7c8   :  { %v2511_v11 = vpop.eup %2510  ;;  %v893_v12 = vmul.f32 1.442695, %v892_v9  ;;  %1187 = vmatpush.msrb.mxu0 %v1163_v5  ;;  %v1162_v9 = vld [vmem:[%s3521_s14 + $0x20] sm:$0xff] }
 0x7c9   :  { %v784_v13 = vsel %vm334_vm9, %v2511_v11, 0.0  ;;  %v1049_v6 = vsel %vm226_vm3, %v1045_v10, 0.0 }
 0x7ca   :  { %2512 = vpow2.f32 %v893_v12  ;;  %785 = vadd.xlane.f32.xlu2 %v784_v13  ;;  %1050 = vadd.xlane.f32.xlu0 %v1049_v6  ;;  %v1160_v12 = vld [vmem:[%s3521_s14 + $0x10] sm:$0xff]  ;;  %v1159_v6 = vld [vmem:[%s3521_s14 + $0x8] sm:$0xff] }
 0x7cb   :  { %1188 = vmatpush.msrb.mxu0 %v1162_v9 }
 0x7d0   :  { %v2513_v16 = vpop.eup %2512 }
 0x7d1   :  { %v895_v17 = vsel %vm334_vm9, %v2513_v16, 0.0 }
 0x7d2   :  { %896 = vadd.xlane.f32.xlu2 %v895_v17  ;;  %979 = vmax.xlane.f32.xlu0 %v978_v18  ;;  %v3212_v17 = vld [vmem:[%s3520_s13] ss:$0 sm:$0xff] }
 0x7d5   :  { %v901_v57 = vpop.permute.xlu1 %900 }
 0x7dd   :  { %v990_v61 = vpop.permute.xlu1 %989 }
 0x7de   :  { %1010 = vmatpush.msrb.mxu3 %v990_v61 }
 0x7ea   :  { %789 = vrot.lane.b32.xlu2 %v3042_v32, %s2779_s16 }
 0x83d   :  { %v1051_v19 = vpop.xlane.xlu0 %1050  ;;  %v786_v20 = vpop.xlane.xlu2 %785 }
 0x83e   :  { %v1055_v21 = vmul.f32 %v1051_v19, %v2966_v30  ;;  %2514 = vrcp.f32 %v786_v20 }
 0x840   :  { %v1057_v22 = vsub.f32 %v1045_v10, %v1055_v21 }
 0x842   :  { %v1059_v23 = vmul.f32 %v1057_v22, %v1057_v22 }
 0x844   :  { %v1061_v25 = vsel %vm226_vm3, %v1059_v23, 0.0  ;;  %v2515_v31 = vpop.eup %2514 }
 0x845   :  { %1062 = vadd.xlane.f32.xlu2 %v1061_v25  ;;  %v980_v26 = vpop.xlane.xlu0 %979  ;;  %v897_v27 = vpop.xlane.xlu2 %896  ;;  %v788_v33 = vmul.f32 %v2515_v31, %v2511_v11  ;;  %v1161_v11 = vld [vmem:[%s3521_s14 + $0x18] sm:$0xff] }
 0x846   :  { %v981_v28 = vsub.f32 %v976_v15, %v980_v26  ;;  %1189 = vmatpush.msrb.mxu0 %v1161_v11  ;;  %v1158_v15 = vld [vmem:[%s3521_s14] sm:$0xff] }
 0x848   :  { %v982_v29 = vmul.f32 1.442695, %v981_v28  ;;  %1190 = vmatpush.msrb.mxu0 %v1160_v12 }
 0x84a   :  { %2516 = vpow2.f32 %v982_v29  ;;  %1191 = vmatpush.msrb.mxu0 %v1159_v6 }
 0x84b   :  { %2518 = vrcp.f32 %v897_v27 }
 0x84c   :  { %1192 = vmatpush.msrb.mxu0 %v1158_v15  ;;  %v3247_v15 = vld [vmem:[#allocation5] ss:$0 sm:$0xff] }
 0x84d   :  { %v790_v34 = vpop.permute.xlu2 %789 }
 0x84e   :  { %810 = vmatpush.msrb.mxu2 %v790_v34  ;;  %v3222_v34 = vld [vmem:[%s3522_s15] ss:$0 sm:$0xff] }
 0x84f   :  { %2352 = vmatmul.msk.f32.vlgmr.msrb.gmra.mxu2 %vm334_vm9, %v788_v33 }
 0x850   :  { %v2517_v32 = vpop.eup %2516  ;;  %921 = vmatpush.msra.mxu2 %v901_v57 }
 0x851   :  { %v984_v35 = vsel %vm334_vm9, %v2517_v32, 0.0  ;;  %v2519_v36 = vpop.eup %2518 }
 0x852   :  { %1033 = vmatpush.msrb.mxu2 %v3117_v43  ;;  %985 = vadd.xlane.f32.xlu0 %v984_v35  ;;  %v899_v37 = vmul.f32 %v2519_v36, %v2513_v16  ;;  %v1106_v43 = vld [vmem:[%s3519_s12 + $0x18] sm:$0xff] }
 0x857   :  { %2357 = vmatmul.msk.f32.vlgmr.msra.gmra.mxu2 %vm334_vm9, %v899_v37 }
 0x8b8   :  { %v1063_v38 = vpop.xlane.xlu2 %1062 }
 0x8b9   :  { %v1067_v39 = vmul.f32 %v1063_v38, %v2966_v30 }
 0x8bb   :  { %v1069_v40 = vadd.f32 1e-12, %v1067_v39 }
 0x8bd   :  { %2520 = vrsqrt.f32 %v1069_v40  ;;  %vm1077_vm14 = vweird.f32 %v1069_v40 }
 0x8c3   :  { %v2521_v41 = vpop.eup %2520 }
 0x8c4   :  { %v1072_v42 = vmul.f32 %v2521_v41, %v1069_v40  ;;  %vm1078_vm13 = vweird.f32 %v2521_v41 }
 0x8c5   :  { %v986_v44 = vpop.xlane.xlu0 %985  ;;  %vm1079_vm15 = vmor %vm1077_vm14, %vm1078_vm13 }
 0x8c6   :  { %v1073_v45 = vmul.f32 %v2521_v41, %v1072_v42  ;;  %2522 = vrcp.f32 %v986_v44 }
 0x8c8   :  { %v1074_v46 = vmul.f32 0.5, %v1073_v45 }
 0x8ca   :  { %v1075_v49 = vsub.f32 1.5, %v1074_v46 }
 0x8cc   :  { %v2523_v47 = vpop.eup %2522  ;;  %v1076_v50 = vmul.f32 %v2521_v41, %v1075_v49 }
 0x8cd   :  { %v988_v48 = vmul.f32 %v2523_v47, %v2517_v32 }
 0x8ce   :  { %v1080_v54 = vsel %vm1079_vm15, %v2521_v41, %v1076_v50 }
 0x8cf   :  { %2361 = vmatmul.msk.f32.vlgmr.msrb.gmra.mxu3 %vm334_vm9, %v988_v48  ;;  %v1091_v58 = vmul.f32 %v1080_v54, %v1057_v22 }
 0x8d1   :  { %v1096_v60 = vmul.f32 %v3172_v56, %v1091_v58 }
 0x8d2   :  { %v812_v51 = vpop.f32.mrf.mxu2 }
 0x8d3   :  { %2353 = vmatmul.msk.f32.vlgmr.msra.gmra.mxu1 %vm334_vm9, %v812_v51  ;;  %v1101_v0 = vadd.f32 %v3179_v63, %v1096_v60  ;;  %v2369_v60 = vld [vmem:[%s3545_s22 + $0x30] sm:$0xff] }
 0x8d4   :  { %1129 = vmatpush.msra.mxu1 %v1106_v43 }
 0x8d6   :  { %1130 = vmatpush.msra.mxu1 %v1105_v52 }
 0x8d8   :  { %1131 = vmatpush.msra.mxu1 %v1104_v53 }
 0x8da   :  { %v923_v59 = vpop.f32.mrf.mxu2  ;;  %1132 = vmatpush.msra.mxu1 %v1103_v55  ;;  %v2370_v55 = vld [vmem:[%s3545_s22 + $0x38] sm:$0xff] }
 0x8db   :  { %2358 = vmatmul.msk.f32.vlgmr.msrb.gmra.mxu1 %vm334_vm9, %v923_v59  ;;  %1286 = vmatpush.msra.mxu3 %v2370_v55 }
 0x8dd   :  { %1287 = vmatpush.msra.mxu3 %v2369_v60 }
 0x8e3   :  { %2363 = vmatmul.msk.f32.vlgmr.msra.gmra.mxu1 %vm226_vm3, %v1101_v0 }
 0x950   :  { %v835_v8 = vpop.f32.mrf.mxu1 }
 0x951   :  { %v859_v13 = vadd.f32 %v3132_v62, %v835_v8 }
 0x952   :  { %v1012_v10 = vpop.f32.mrf.mxu3 }
 0x953   :  { %2362 = vmatmul.msk.f32.vlgmr.msrb.gmra.mxu2 %vm334_vm9, %v1012_v10 }
 0x958   :  { %v946_v14 = vpop.f32.mrf.mxu1 }
 0x959   :  { %v949_v16 = vadd.f32 %v946_v14, %v859_v13 }
 0x960   :  { %v1134_v18 = vpop.f32.mrf.mxu1 }
 0x961   :  { %v1135_v62 = vadd.f32 %v3212_v17, %v1134_v18  ;;  %v3249_v18 = vld [vmem:[#allocation7] ss:$0 sm:$0xff] }
 0x963   :  { %v1140_v57 = vmul.f32 %v1135_v62, %v1135_v62 }
 0x965   :  { %v1142_v61 = vmul.f32 %v1140_v57, %v1135_v62 }
 0x967   :  { %v1144_v19 = vmul.f32 0.044715, %v1142_v61 }
 0x969   :  { %v1146_v20 = vadd.f32 %v1144_v19, %v1135_v62 }
 0x96b   :  { %v1148_v21 = vmul.f32 0.7978846, %v1146_v20 }
 0x96d   :  { %2524 = vtanh.f32 %v1148_v21 }
 0x973   :  { %v2525_v22 = vpop.eup %2524 }
 0x974   :  { %v1152_v23 = vadd.f32 1.0, %v2525_v22 }
 0x976   :  { %v1154_v25 = vmul.f32 0.5, %v1152_v23 }
 0x978   :  { %v1156_v26 = vmul.f32 %v1154_v25, %v1135_v62 }
 0x97a   :  { %2365 = vmatmul.msk.f32.vlgmr.msrb.gmra.mxu0 %vm1170_vm0, %v1156_v26 }
 0x9d6   :  { %v1035_v27 = vpop.f32.mrf.mxu2 }
 0x9d7   :  { %v1038_v28 = vadd.f32 %v1035_v27, %v949_v16 }
 0x9d9   :  { %v1044_v29 = vadd.f32 %v3137_v1, %v1038_v28 }
 0x9db   :  { %v1046_v31 = vadd.f32 %v1044_v29, %v3030_v24 }
 0x9dd   :  { %v1052_v33 = vsel %vm226_vm3, %v1046_v31, 0.0 }
 0x9de   :  { %1053 = vadd.xlane.f32.xlu0 %v1052_v33 }
 0x9f7   :  { %v1194_v32 = vpop.f32.mrf.mxu0 }
 0x9f8   :  { %v1195_v35 = vadd.f32 %v3222_v34, %v1194_v32 }
 0x9fa   :  { %v1200_v36 = vadd.f32 %v1195_v35, %v1101_v0  ;;  %v2368_v0 = vld [vmem:[%s3545_s22 + $0x28] sm:$0xff] }
 0x9fb   :  { %1288 = vmatpush.msra.mxu3 %v2368_v0 }
 0x9fc   :  { %v1204_v37 = vsel %vm226_vm3, %v1200_v36, 0.0 }
 0x9fd   :  { %1205 = vadd.xlane.f32.xlu1 %v1204_v37  ;;  %1289 = vmatpush.msra.mxu3 %v2367_v4 }
 0xa51   :  { %v1054_v38 = vpop.xlane.xlu0 %1053 }
 0xa52   :  { %v1056_v1 = vmul.f32 %v1054_v38, %v2966_v30 }
 0xa54   :  { %v1058_v39 = vsub.f32 %v1046_v31, %v1056_v1  ;;  %v3262_v31 = vld [vmem:[%s3514_s7 + $0x1] ss:$0 sm:$0xff] }
 0xa56   :  { %v1060_v24 = vmul.f32 %v1058_v39, %v1058_v39 }
 0xa58   :  { %v1064_v40 = vsel %vm226_vm3, %v1060_v24, 0.0 }
 0xa59   :  { %1065 = vadd.xlane.f32.xlu0 %v1064_v40 }
 0xa70   :  { %v1206_v41 = vpop.xlane.xlu1 %1205 }
 0xa71   :  { %v1210_v42 = vmul.f32 %v1206_v41, %v2966_v30 }
 0xa73   :  { %v1212_v44 = vsub.f32 %v1200_v36, %v1210_v42 }
 0xa75   :  { %v1214_v45 = vmul.f32 %v1212_v44, %v1212_v44 }
 0xa77   :  { %v1216_v46 = vsel %vm226_vm3, %v1214_v45, 0.0 }
 0xa78   :  { %1217 = vadd.xlane.f32.xlu0 %v1216_v46 }
 0xacc   :  { %v1066_v47 = vpop.xlane.xlu0 %1065 }
 0xacd   :  { %v1068_v48 = vmul.f32 %v1066_v47, %v2966_v30 }
 0xacf   :  { %v1070_v49 = vadd.f32 1e-12, %v1068_v48 }
 0xad1   :  { %2526 = vrsqrt.f32 %v1070_v49  ;;  %vm1087_vm2 = vweird.f32 %v1070_v49 }
 0xad7   :  { %v2527_v43 = vpop.eup %2526 }
 0xad8   :  { %v1082_v50 = vmul.f32 %v2527_v43, %v1070_v49  ;;  %vm1088_vm1 = vweird.f32 %v2527_v43 }
 0xad9   :  { %vm1089_vm4 = vmor %vm1087_vm2, %vm1088_vm1 }
 0xada   :  { %v1083_v51 = vmul.f32 %v2527_v43, %v1082_v50 }
 0xadc   :  { %v1084_v52 = vmul.f32 0.5, %v1083_v51 }
 0xade   :  { %v1085_v53 = vsub.f32 1.5, %v1084_v52 }
 0xae0   :  { %v1086_v54 = vmul.f32 %v2527_v43, %v1085_v53 }
 0xae2   :  { %v1090_v58 = vsel %vm1089_vm4, %v2527_v43, %v1086_v54 }
 0xae3   :  { %v1092_v59 = vmul.f32 %v1090_v58, %v1058_v39 }
 0xae5   :  { %v1097_v3 = vmul.f32 %v3172_v56, %v1092_v59 }
 0xae7   :  { %v1102_v5 = vadd.f32 %v3179_v63, %v1097_v3 }
 0xae9   :  { %2364 = vmatmul.msk.f32.gmra.mxu1 %vm226_vm3, %v1102_v5 }
 0xaeb   :  { %v1218_v8 = vpop.xlane.xlu0 %1217 }
 0xaec   :  { %v1222_v9 = vmul.f32 %v1218_v8, %v2966_v30 }
 0xaee   :  { %v1224_v10 = vadd.f32 1e-12, %v1222_v9 }
 0xaf0   :  { %2528 = vrsqrt.f32 %v1224_v10  ;;  %vm1232_vm6 = vweird.f32 %v1224_v10 }
 0xaf6   :  { %v2529_v11 = vpop.eup %2528 }
 0xaf7   :  { %v1227_v12 = vmul.f32 %v2529_v11, %v1224_v10  ;;  %vm1233_vm5 = vweird.f32 %v2529_v11 }
 0xaf8   :  { %vm1234_vm7 = vmor %vm1232_vm6, %vm1233_vm5 }
 0xaf9   :  { %v1228_v13 = vmul.f32 %v2529_v11, %v1227_v12 }
 0xafb   :  { %v1229_v6 = vmul.f32 0.5, %v1228_v13 }
 0xafd   :  { %v1230_v56 = vsub.f32 1.5, %v1229_v6 }
 0xaff   :  { %v1231_v14 = vmul.f32 %v2529_v11, %v1230_v56 }
 0xb01   :  { %v1235_v63 = vsel %vm1234_vm7, %v2529_v11, %v1231_v14 }
 0xb02   :  { %v1246_v16 = vmul.f32 %v1235_v63, %v1212_v44 }
 0xb04   :  { %v1251_v62 = vmul.f32 %v3247_v15, %v1246_v16 }
 0xb06   :  { %v3253_v57 = vadd.f32 %v3249_v18, %v1251_v62 }
 0xb08   :  { %2372 = vmatmul.msk.f32.vlgmr.msra.gmra.mxu3 %vm226_vm3, %v3253_v57 }
 0xb66   :  { %v1137_v61 = vpop.f32.mrf.mxu1 }
 0xb67   :  { %v1138_v19 = vadd.f32 %v3212_v17, %v1137_v61 }
 0xb69   :  { %v1141_v20 = vmul.f32 %v1138_v19, %v1138_v19 }
 0xb6b   :  { %v1143_v21 = vmul.f32 %v1141_v20, %v1138_v19 }
 0xb6d   :  { %v1145_v22 = vmul.f32 0.044715, %v1143_v21 }
 0xb6f   :  { %v1147_v23 = vadd.f32 %v1145_v22, %v1138_v19 }
 0xb71   :  { %v1149_v25 = vmul.f32 0.7978846, %v1147_v23 }
 0xb73   :  { %2530 = vtanh.f32 %v1149_v25 }
 0xb79   :  { %v2531_v26 = vpop.eup %2530 }
 0xb7a   :  { %v1153_v27 = vadd.f32 1.0, %v2531_v26 }
 0xb7c   :  { %v1155_v28 = vmul.f32 0.5, %v1153_v27 }
 0xb7e   :  { %v1157_v29 = vmul.f32 %v1155_v28, %v1138_v19 }
 0xb80   :  { %2366 = vmatmul.msk.f32.gmra.mxu0 %vm1170_vm0, %v1157_v29 }
 0xb8b   :  { %v1291_v33 = vpop.f32.mrf.mxu3 }
 0xb8c   :  { %v3265_v17 = vadd.f32 %v3262_v31, %v1291_v33 }
 0xb8e   :  { %1477 = vrot.lane.b32.xlu1 %v3265_v17, %s2773_s6  ;;  %1366 = vrot.lane.b32.xlu2 %v3265_v17, %s2775_s2 }
 0xb8f   :  { %1368 = vrot.lane.b32.xlu0 %v3265_v17, %s2776_s17 }
 0xb97   :  { %1479 = vrot.lane.b32.xlu0 %v3265_v17, %s2777_s27 }
 0xb9f   :  { %1303 = vrot.lane.b32.xlu0 %v3265_v17, %s2771_s4 }
 0xbe8   :  { %v1367_v1 = vpop.permute.xlu2 %1366 }
 0xbfd   :  { %v1197_v32 = vpop.f32.mrf.mxu0 }
 0xbfe   :  { %v1198_v35 = vadd.f32 %v3222_v34, %v1197_v32 }
 0xc00   :  { %v1201_v36 = vadd.f32 %v1198_v35, %v1102_v5  ;;  %v1478_v24 = vpop.permute.xlu1 %1477 }
 0xc01   :  { %v1369_v37 = vpop.permute.xlu0 %1368 }
 0xc02   :  { %2381 = vmatpush.xpose.msk.msrb.mxu1 %vm334_vm9, %v1369_v37  ;;  %v1207_v38 = vsel %vm226_vm3, %v1201_v36, 0.0 }
 0xc03   :  { %1208 = vadd.xlane.f32.xlu2 %v1207_v38 }
 0xc05   :  { %2382 = vmatmul.msk.f32.vlgmr.msrb.gmra.mxu1 %vm334_vm9, %v1367_v1 }
 0xc09   :  { %v1480_v39 = vpop.permute.xlu0 %1479 }
 0xc0a   :  { %2386 = vmatpush.xpose.msk.msra.mxu0 %vm334_vm9, %v1480_v39 }
 0xc0d   :  { %2387 = vmatmul.msk.f32.vlgmr.msra.gmra.mxu0 %vm334_vm9, %v1478_v24 }
 0xc11   :  { %v1304_v40 = vpop.permute.xlu0 %1303 }
 0xc12   :  { %2378 = vmatpush.xpose.msk.msra.mxu2 %vm334_vm9, %v1304_v40  ;;  %v2375_v40 = vld [vmem:[%s3515_s8 + $0x28] sm:$0xff] }
 0xc15   :  { %2379 = vmatmul.msk.f32.vlgmr.msra.gmra.mxu2 %vm334_vm9, %v3265_v17 }
 0xc76   :  { %v1209_v34 = vpop.xlane.xlu2 %1208 }
 0xc77   :  { %v1211_v41 = vmul.f32 %v1209_v34, %v2966_v30  ;;  %v2376_v34 = vld [vmem:[%s3515_s8 + $0x30] sm:$0xff] }
 0xc79   :  { %v1213_v42 = vsub.f32 %v1201_v36, %v1211_v41 }
 0xc7b   :  { %v1215_v44 = vmul.f32 %v1213_v42, %v1213_v42 }
 0xc7d   :  { %v1219_v45 = vsel %vm226_vm3, %v1215_v44, 0.0 }
 0xc7e   :  { %1220 = vadd.xlane.f32.xlu1 %v1219_v45 }
 0xc82   :  { %v1391_v46 = vpop.f32.mrf.mxu1 }
 0xc83   :  { %v1392_v47 = vadd.f32 %v1391_v46, %v3023_v7 }
 0xc85   :  { %v1394_v48 = vsel %vm334_vm9, %v1392_v47, -inf }
 0xc86   :  { %1395 = vmax.xlane.f32.xlu0 %v1394_v48 }
 0xc8a   :  { %v1502_v49 = vpop.f32.mrf.mxu0 }
 0xc8b   :  { %v1503_v43 = vadd.f32 %v1502_v49, %v3023_v7 }
 0xc8d   :  { %v1505_v50 = vsel %vm334_vm9, %v1503_v43, -inf }
 0xc8e   :  { %1506 = vmax.xlane.f32.xlu2 %v1505_v50 }
 0xc98   :  { %v1326_v51 = vpop.f32.mrf.mxu2 }
 0xc99   :  { %v1327_v52 = vadd.f32 %v1326_v51, %v3023_v7 }
 0xc9b   :  { %v1329_v53 = vsel %vm334_vm9, %v1327_v52, -inf }
 0xc9c   :  { %1330 = vmax.xlane.f32.xlu1 %v1329_v53 }
 0xcf1   :  { %v1221_v54 = vpop.xlane.xlu1 %1220 }
 0xcf2   :  { %v1223_v55 = vmul.f32 %v1221_v54, %v2966_v30 }
 0xcf4   :  { %v1225_v58 = vadd.f32 1e-12, %v1223_v55 }
 0xcf6   :  { %2532 = vrsqrt.f32 %v1225_v58  ;;  %vm1242_vm10 = vweird.f32 %v1225_v58 }
 0xcf9   :  { %v1396_v59 = vpop.xlane.xlu0 %1395 }
 0xcfa   :  { %v1397_v60 = vsub.f32 %v1392_v47, %v1396_v59 }
 0xcfc   :  { %v2533_v0 = vpop.eup %2532  ;;  %v1398_v3 = vmul.f32 1.442695, %v1397_v60 }
 0xcfd   :  { %v1237_v4 = vmul.f32 %v2533_v0, %v1225_v58  ;;  %vm1243_vm8 = vweird.f32 %v2533_v0 }
 0xcfe   :  { %2534 = vpow2.f32 %v1398_v3  ;;  %vm1244_vm11 = vmor %vm1242_vm10, %vm1243_vm8  ;;  %vm2238_vm8 = vcmask 1040384  }
 0xcff   :  { %v1238_v5 = vmul.f32 %v2533_v0, %v1237_v4 }
 0xd01   :  { %v1239_v8 = vmul.f32 0.5, %v1238_v5  ;;  %v1507_v9 = vpop.xlane.xlu2 %1506 }
 0xd02   :  { %v1508_v10 = vsub.f32 %v1503_v43, %v1507_v9 }
 0xd03   :  { %v1240_v11 = vsub.f32 1.5, %v1239_v8 }
 0xd04   :  { %v2535_v12 = vpop.eup %2534  ;;  %v1509_v13 = vmul.f32 1.442695, %v1508_v10 }
 0xd05   :  { %v1241_v6 = vmul.f32 %v2533_v0, %v1240_v11  ;;  %v1400_v56 = vsel %vm334_vm9, %v2535_v12, 0.0 }
 0xd06   :  { %2536 = vpow2.f32 %v1509_v13  ;;  %1401 = vadd.xlane.f32.xlu0 %v1400_v56 }
 0xd07   :  { %v1245_v14 = vsel %vm1244_vm11, %v2533_v0, %v1241_v6 }
 0xd08   :  { %v1247_v63 = vmul.f32 %v1245_v14, %v1213_v42 }
 0xd0a   :  { %v1252_v16 = vmul.f32 %v3247_v15, %v1247_v63 }
 0xd0c   :  { %v2537_v62 = vpop.eup %2536  ;;  %v3298_v61 = vadd.f32 %v3249_v18, %v1252_v16  ;;  %v2374_v18 = vld [vmem:[%s3515_s8 + $0x20] sm:$0xff] }
 0xd0d   :  { %v1511_v19 = vsel %vm334_vm9, %v2537_v62, 0.0  ;;  %1472 = vmatpush.msra.mxu1 %v2374_v18 }
 0xd0e   :  { %1512 = vadd.xlane.f32.xlu2 %v1511_v19  ;;  %2373 = vmatmul.msk.f32.gmra.mxu3 %vm226_vm3, %v3298_v61 }
 0xd0f   :  { %v1331_v20 = vpop.xlane.xlu1 %1330 }
 0xd10   :  { %v1332_v21 = vsub.f32 %v1327_v52, %v1331_v20 }
 0xd12   :  { %v1333_v22 = vmul.f32 1.442695, %v1332_v21 }
 0xd14   :  { %2538 = vpow2.f32 %v1333_v22  ;;  %v3373_v22 = vld [vmem:[%s3515_s8 + $0x38] sm:$0xff] }
 0xd1a   :  { %v2539_v23 = vpop.eup %2538  ;;  %1405 = vrot.lane.b32.xlu0 %v3265_v17, %s2779_s16 }
 0xd1b   :  { %v1335_v15 = vsel %vm334_vm9, %v2539_v23, 0.0 }
 0xd1c   :  { %1336 = vadd.xlane.f32.xlu1 %v1335_v15 }
 0xd26   :  { %1516 = vrot.lane.b32.xlu2 %v3265_v17, %s2780_s20 }
 0xd2e   :  { %1568 = vrot.lane.b32.xlu2 %v3265_v17, %s2778_s3 }
 0xd35   :  { %1340 = vrot.lane.b32.xlu1 %v3265_v17, %s2772_s23 }
 0xd79   :  { %v1402_v25 = vpop.xlane.xlu0 %1401 }
 0xd7a   :  { %2540 = vrcp.f32 %v1402_v25 }
 0xd80   :  { %v2541_v27 = vpop.eup %2540 }
 0xd81   :  { %v1513_v26 = vpop.xlane.xlu2 %1512  ;;  %v1404_v29 = vmul.f32 %v2541_v27, %v2535_v12 }
 0xd82   :  { %2542 = vrcp.f32 %v1513_v26 }
 0xd88   :  { %v2543_v32 = vpop.eup %2542 }
 0xd89   :  { %v1517_v28 = vpop.permute.xlu2 %1516  ;;  %v1515_v38 = vmul.f32 %v2543_v32, %v2537_v62 }
 0xd8c   :  { %v1406_v33 = vpop.permute.xlu0 %1405 }
 0xd8d   :  { %1426 = vmatpush.msrb.mxu3 %v1406_v33 }
 0xd8e   :  { %2383 = vmatmul.msk.f32.vlgmr.msrb.gmra.mxu3 %vm334_vm9, %v1404_v29 }
 0xd8f   :  { %1537 = vmatpush.msra.mxu3 %v1517_v28  ;;  %v1337_v1 = vpop.xlane.xlu1 %1336 }
 0xd90   :  { %2544 = vrcp.f32 %v1337_v1 }
 0xd91   :  { %v1569_v35 = vpop.permute.xlu2 %1568  ;;  %v1294_v36 = vpop.f32.mrf.mxu3  ;;  %1649 = vmatpush.msrb.mxu3 %v3373_v22 }
 0xd92   :  { %v3317_v37 = vadd.f32 %v3262_v31, %v1294_v36  ;;  %2390 = vmatpush.xpose.msk.msrb.mxu1 %vm334_vm9, %v1569_v35 }
 0xd94   :  { %1693 = vrot.lane.b32.xlu1 %v3317_v37, %s2772_s23  ;;  %1656 = vrot.lane.b32.xlu0 %v3317_v37, %s2771_s4 }
 0xd96   :  { %2388 = vmatmul.msk.f32.vlgmr.msra.gmra.mxu3 %vm334_vm9, %v1515_v38  ;;  %v2545_v39 = vpop.eup %2544 }
 0xd97   :  { %v1339_v24 = vmul.f32 %v2545_v39, %v2539_v23 }
 0xd9c   :  { %1566 = vrot.lane.b32.xlu0 %v3265_v17, %s2774_s26 }
 0xda7   :  { %v1341_v31 = vpop.permute.xlu1 %1340 }
 0xda8   :  { %1361 = vmatpush.msrb.mxu2 %v1341_v31 }
 0xda9   :  { %2380 = vmatmul.msk.f32.vlgmr.msrb.gmra.mxu2 %vm334_vm9, %v1339_v24 }
 0xdaa   :  { %1449 = vmatpush.msra.mxu2 %v2375_v40 }
 0xdac   :  { %1560 = vmatpush.msrb.mxu2 %v2376_v34 }
 0xe06   :  { %v1657_v42 = vpop.permute.xlu0 %1656  ;;  %v1694_v46 = vpop.permute.xlu1 %1693 }
 0xe0e   :  { %v1567_v47 = vpop.permute.xlu0 %1566 }
 0xe11   :  { %v1428_v41 = vpop.f32.mrf.mxu3 }
 0xe12   :  { %2384 = vmatmul.msk.f32.vlgmr.msra.gmra.mxu2 %vm334_vm9, %v1428_v41 }
 0xe13   :  { %2394 = vmatpush.xpose.msk.msra.mxu2 %vm334_vm9, %v1657_v42 }
 0xe19   :  { %v1539_v44 = vpop.f32.mrf.mxu3 }
 0xe1a   :  { %2389 = vmatmul.msk.f32.vlgmr.msrb.gmra.mxu2 %vm334_vm9, %v1539_v44 }
 0xe1b   :  { %1802 = vmatpush.msrb.mxu2 %v2375_v40 }
 0xe22   :  { %2395 = vmatmul.msk.f32.vlgmr.msra.gmra.mxu2 %vm334_vm9, %v3317_v37 }
 0xe23   :  { %1913 = vmatpush.msra.mxu2 %v2376_v34 }
 0xe2c   :  { %v1363_v45 = vpop.f32.mrf.mxu2 }
 0xe2d   :  { %2385 = vmatmul.msk.f32.vlgmr.msra.gmra.mxu1 %vm334_vm9, %v1363_v45 }
 0xe2e   :  { %1714 = vmatpush.msra.mxu1 %v1694_v46 }
 0xe35   :  { %2391 = vmatmul.msk.f32.vlgmr.msrb.gmra.mxu1 %vm334_vm9, %v1567_v47  ;;  %v3397_v47 = vld [vmem:[%s3516_s9 + $0x1] ss:$0 sm:$0xff] }
 0xe36   :  { %1825 = vmatpush.msrb.mxu1 %v2374_v18 }
 0xe95   :  { %v1451_v48 = vpop.f32.mrf.mxu2 }
 0xe9d   :  { %v1562_v49 = vpop.f32.mrf.mxu2 }
 0xea5   :  { %v1679_v43 = vpop.f32.mrf.mxu2 }
 0xea6   :  { %v1680_v50 = vadd.f32 %v1679_v43, %v3080_v2 }
 0xea8   :  { %v1682_v51 = vsel %vm334_vm9, %v1680_v50, -inf }
 0xea9   :  { %1683 = vmax.xlane.f32.xlu2 %v1682_v51 }
 0xeaa   :  { %v1474_v52 = vpop.f32.mrf.mxu1 }
 0xeab   :  { %v1475_v53 = vadd.f32 %v1474_v52, %v1451_v48 }
 0xead   :  { %v3343_v54 = vadd.f32 %v1562_v49, %v1475_v53 }
 0xeb2   :  { %v1591_v55 = vpop.f32.mrf.mxu1 }
 0xeb3   :  { %v1592_v58 = vadd.f32 %v1591_v55, %v3023_v7 }
 0xeb5   :  { %v1594_v59 = vsel %vm334_vm9, %v1592_v58, -inf }
 0xeb6   :  { %1595 = vmax.xlane.f32.xlu1 %v1594_v59 }
 0xecf   :  { %1719 = vrot.lane.b32.xlu1 %v3317_v37, %s2775_s2 }
 0xf1c   :  { %v1684_v60 = vpop.xlane.xlu2 %1683 }
 0xf1d   :  { %v1685_v0 = vsub.f32 %v1680_v50, %v1684_v60 }
 0xf1f   :  { %v1686_v3 = vmul.f32 1.442695, %v1685_v0 }
 0xf21   :  { %2546 = vpow2.f32 %v1686_v3 }
 0xf27   :  { %v2547_v4 = vpop.eup %2546 }
 0xf28   :  { %v1688_v5 = vsel %vm334_vm9, %v2547_v4, 0.0 }
 0xf29   :  { %1689 = vadd.xlane.f32.xlu0 %v1688_v5  ;;  %v1596_v8 = vpop.xlane.xlu1 %1595 }
 0xf2a   :  { %v1597_v9 = vsub.f32 %v1592_v58, %v1596_v8 }
 0xf2c   :  { %v1598_v10 = vmul.f32 1.442695, %v1597_v9 }
 0xf2e   :  { %2548 = vpow2.f32 %v1598_v10 }
 0xf34   :  { %v2549_v11 = vpop.eup %2548 }
 0xf35   :  { %v1600_v7 = vsel %vm334_vm9, %v2549_v11, 0.0 }
 0xf36   :  { %1601 = vadd.xlane.f32.xlu2 %v1600_v7 }
 0xf3d   :  { %1605 = vrot.lane.b32.xlu0 %v3265_v17, %s2781_s5 }
 0xf41   :  { %v1720_v20 = vpop.permute.xlu1 %1719 }
 0xf45   :  { %1832 = vrot.lane.b32.xlu0 %v3317_v37, %s2777_s27 }
 0xf4d   :  { %1830 = vrot.lane.b32.xlu0 %v3317_v37, %s2773_s6 }
 0xf4e   :  { %1721 = vrot.lane.b32.xlu2 %v3317_v37, %s2776_s17 }
 0xf55   :  { %1919 = vrot.lane.b32.xlu0 %v3317_v37, %s2774_s26 }
 0xf56   :  { %1921 = vrot.lane.b32.xlu2 %v3317_v37, %s2778_s3 }
 0xf9c   :  { %v1690_v12 = vpop.xlane.xlu0 %1689 }
 0xf9d   :  { %2550 = vrcp.f32 %v1690_v12 }
 0xfa3   :  { %v2551_v13 = vpop.eup %2550 }
 0xfa4   :  { %v1692_v6 = vmul.f32 %v2551_v13, %v2547_v4 }
 0xfa6   :  { %2396 = vmatmul.msk.f32.vlgmr.msra.gmra.mxu1 %vm334_vm9, %v1692_v6 }
 0xfa9   :  { %v1602_v17 = vpop.xlane.xlu2 %1601 }
 0xfaa   :  { %2552 = vrcp.f32 %v1602_v17 }
 0xfaf   :  { %v1606_v56 = vpop.permute.xlu0 %1605 }
 0xfb0   :  { %v2553_v14 = vpop.eup %2552  ;;  %1626 = vmatpush.msrb.mxu0 %v1606_v56  ;;  %v2416_v56 = vld [vmem:[%s3519_s12 + $0x38] sm:$0xff] }
 0xfb1   :  { %v1604_v63 = vmul.f32 %v2553_v14, %v2549_v11  ;;  %v1722_v16 = vpop.permute.xlu2 %1721  ;;  %v2415_v14 = vld [vmem:[%s3519_s12 + $0x30] sm:$0xff] }
 0xfb2   :  { %2397 = vmatpush.xpose.msk.msra.mxu0 %vm334_vm9, %v1722_v16  ;;  %v2413_v16 = vld [vmem:[%s3519_s12 + $0x20] sm:$0xff] }
 0xfb3   :  { %2392 = vmatmul.msk.f32.vlgmr.msrb.gmra.mxu0 %vm334_vm9, %v1604_v63  ;;  %v2414_v63 = vld [vmem:[%s3519_s12 + $0x28] sm:$0xff] }
 0xfb7   :  { %v1833_v62 = vpop.permute.xlu0 %1832 }
 0xfb8   :  { %2402 = vmatpush.xpose.msk.msrb.mxu0 %vm334_vm9, %v1833_v62 }
 0xfb9   :  { %v1922_v19 = vpop.permute.xlu2 %1921 }
 0xfba   :  { %2406 = vmatpush.xpose.msk.msra.mxu1 %vm334_vm9, %v1922_v19 }
 0xfbb   :  { %2398 = vmatmul.msk.f32.vlgmr.msra.gmra.mxu0 %vm334_vm9, %v1720_v20 }
 0xfbf   :  { %v1831_v21 = vpop.permute.xlu0 %1830 }
 0xfc3   :  { %2403 = vmatmul.msk.f32.vlgmr.msrb.gmra.mxu0 %vm334_vm9, %v1831_v21 }
 0xfc7   :  { %v1920_v15 = vpop.permute.xlu0 %1919 }
0x1023   :  { %v1716_v23 = vpop.f32.mrf.mxu1 }
0x1024   :  { %2401 = vmatmul.msk.f32.vlgmr.msrb.gmra.mxu1 %vm334_vm9, %v1716_v23 }
0x102c   :  { %2407 = vmatmul.msk.f32.vlgmr.msra.gmra.mxu1 %vm334_vm9, %v1920_v15 }
0x1030   :  { %v1628_v18 = vpop.f32.mrf.mxu0 }
0x1031   :  { %2393 = vmatmul.msk.f32.vlgmr.msrb.gmra.mxu3 %vm334_vm9, %v1628_v18 }
0x1038   :  { %v1744_v25 = vpop.f32.mrf.mxu0 }
0x1039   :  { %v1745_v26 = vadd.f32 %v1744_v25, %v3080_v2 }
0x103b   :  { %v1747_v27 = vsel %vm334_vm9, %v1745_v26, -inf }
0x103c   :  { %1748 = vmax.xlane.f32.xlu2 %v1747_v27 }
0x1040   :  { %v1855_v28 = vpop.f32.mrf.mxu0 }
0x1041   :  { %v1856_v29 = vadd.f32 %v1855_v28, %v3080_v2 }
0x1043   :  { %v1858_v33 = vsel %vm334_vm9, %v1856_v29, -inf }
0x1044   :  { %1859 = vmax.xlane.f32.xlu1 %v1858_v33 }
0x10a1   :  { %v3383_v32 = vpop.f32.mrf.mxu1 }
0x10a9   :  { %v1944_v35 = vpop.f32.mrf.mxu1 }
0x10aa   :  { %v1945_v36 = vadd.f32 %v1944_v35, %v3080_v2 }
0x10ac   :  { %v1947_v38 = vsel %vm334_vm9, %v1945_v36, -inf }
0x10ad   :  { %1948 = vmax.xlane.f32.xlu0 %v1947_v38  ;;  %v2427_v38 = vld [vmem:[%s3521_s14 + $0x78] sm:$0xff] }
0x10ae   :  { %2160 = vmatpush.msrb.mxu1 %v2427_v38 }
0x10af   :  { %v1749_v1 = vpop.xlane.xlu2 %1748 }
0x10b0   :  { %v1750_v39 = vsub.f32 %v1745_v26, %v1749_v1  ;;  %v3429_v26 = vld [vmem:[%s3517_s10 + $0x1] ss:$0 sm:$0xff]  ;;  %v2426_v1 = vld [vmem:[%s3521_s14 + $0x70] sm:$0xff]  ;;  %s3548_s10 = sld [smem:[#allocation26_spill]] }
0x10b1   :  { %2161 = vmatpush.msrb.mxu1 %v2426_v1 }
0x10b2   :  { %v1751_v24 = vmul.f32 1.442695, %v1750_v39  ;;  %v2425_v39 = vld [vmem:[%s3521_s14 + $0x68] sm:$0xff] }
0x10b3   :  { %2162 = vmatpush.msrb.mxu1 %v2425_v39 }
0x10b4   :  { %2554 = vpow2.f32 %v1751_v24  ;;  %v1651_v2 = vpop.f32.mrf.mxu3 }
0x10b5   :  { %v1654_v46 = vadd.f32 %v1651_v2, %v3343_v54 }
0x10b6   :  { %s2311_s22 = sshll.u32 %s3548_s10, 4  ;;  %s2312_s22 = int_to_ptr.hbm [resolvable:$true] %s2311_s22 }
0x10b7   :  { %v1860_v31 = vpop.xlane.xlu1 %1859  ;;  %v2013_v48 = vadd.f32 %v3397_v47, %v1654_v46 }
0x10b8   :  { %v1861_v40 = vsub.f32 %v1856_v29, %v1860_v31  ;;  %v3434_v29 = vld [vmem:[%s3518_s11 + $0x1] ss:$0 sm:$0xff] }
0x10b9   :  { %v2015_v49 = vadd.f32 %v2013_v48, %v3253_v57  ;;  %v2424_v31 = vld [vmem:[%s3521_s14 + $0x60] sm:$0xff] }
0x10ba   :  { %v2555_v34 = vpop.eup %2554  ;;  %v1862_v41 = vmul.f32 1.442695, %v1861_v40  ;;  %2163 = vmatpush.msrb.mxu1 %v2424_v31  ;;  %v2423_v40 = vld [vmem:[%s3521_s14 + $0x58] sm:$0xff] }
0x10bb   :  { %v1753_v42 = vsel %vm334_vm9, %v2555_v34, 0.0  ;;  %v2021_v43 = vsel %vm226_vm3, %v2015_v49, 0.0 }
0x10bc   :  { %2556 = vpow2.f32 %v1862_v41  ;;  %1754 = vadd.xlane.f32.xlu2 %v1753_v42  ;;  %2164 = vmatpush.msrb.mxu1 %v2423_v40  ;;  %v2421_v41 = vld [vmem:[%s3521_s14 + $0x48] sm:$0xff] }
0x10c2   :  { %v2557_v44 = vpop.eup %2556 }
0x10c3   :  { %v1864_v45 = vsel %vm334_vm9, %v2557_v44, 0.0 }
0x10c4   :  { %1865 = vadd.xlane.f32.xlu1 %v1864_v45  ;;  %v2478_v45 = vld [vmem:[%s3520_s13 + $0x1] ss:$0 sm:$0xff] }
0x10d4   :  { %1758 = vrot.lane.b32.xlu2 %v3317_v37, %s2779_s16 }
0x10dd   :  { %1869 = vrot.lane.b32.xlu1 %v3317_v37, %s2780_s20 }
0x10fd   :  { %2022 = vadd.xlane.f32.xlu2 %v2021_v43 }
0x1120   :  { %v1949_v50 = vpop.xlane.xlu0 %1948 }
0x1121   :  { %v1950_v51 = vsub.f32 %v1945_v36, %v1949_v50 }
0x1123   :  { %v1951_v52 = vmul.f32 1.442695, %v1950_v51 }
0x1125   :  { %2558 = vpow2.f32 %v1951_v52 }
0x112b   :  { %v2559_v53 = vpop.eup %2558 }
0x112c   :  { %v1953_v55 = vsel %vm334_vm9, %v2559_v53, 0.0 }
0x112d   :  { %1954 = vadd.xlane.f32.xlu0 %v1953_v55 }
0x112f   :  { %v1755_v54 = vpop.xlane.xlu2 %1754 }
0x1130   :  { %2560 = vrcp.f32 %v1755_v54 }
0x1136   :  { %v2561_v58 = vpop.eup %2560 }
0x1137   :  { %v1757_v59 = vmul.f32 %v2561_v58, %v2555_v34  ;;  %v1759_v60 = vpop.permute.xlu2 %1758  ;;  %v1866_v57 = vpop.xlane.xlu1 %1865  ;;  %v2422_v34 = vld [vmem:[%s3521_s14 + $0x50] sm:$0xff] }
0x1138   :  { %1779 = vmatpush.msra.mxu3 %v1759_v60  ;;  %2562 = vrcp.f32 %v1866_v57  ;;  %2165 = vmatpush.msrb.mxu1 %v2422_v34 }
0x1139   :  { %2399 = vmatmul.msk.f32.vlgmr.msra.gmra.mxu3 %vm334_vm9, %v1757_v59 }
0x113a   :  { %2166 = vmatpush.msrb.mxu1 %v2421_v41 }
0x113e   :  { %v2563_v0 = vpop.eup %2562 }
0x113f   :  { %v1868_v3 = vmul.f32 %v2563_v0, %v2557_v44  ;;  %v2420_v44 = vld [vmem:[%s3521_s14 + $0x40] sm:$0xff] }
0x1140   :  { %2167 = vmatpush.msrb.mxu1 %v2420_v44 }
0x1141   :  { %1958 = vrot.lane.b32.xlu0 %v3317_v37, %s2781_s5 }
0x114f   :  { %v1870_v4 = vpop.permute.xlu1 %1869 }
0x1150   :  { %1890 = vmatpush.msrb.mxu3 %v1870_v4 }
0x1151   :  { %2404 = vmatmul.msk.f32.vlgmr.msrb.gmra.mxu3 %vm334_vm9, %v1868_v3 }
0x1152   :  { %2002 = vmatpush.msra.mxu3 %v3373_v22 }
0x1170   :  { %v2023_v5 = vpop.xlane.xlu2 %2022 }
0x1171   :  { %v2027_v8 = vmul.f32 %v2023_v5, %v2966_v30  ;;  %v2479_v5 = vld [vmem:[%s3522_s15 + $0x1] ss:$0 sm:$0xff] }
0x1173   :  { %v2029_v9 = vsub.f32 %v2015_v49, %v2027_v8 }
0x1175   :  { %v2031_v10 = vmul.f32 %v2029_v9, %v2029_v9 }
0x1177   :  { %v2033_v11 = vsel %vm226_vm3, %v2031_v10, 0.0 }
0x1178   :  { %2034 = vadd.xlane.f32.xlu1 %v2033_v11 }
0x11a0   :  { %v1955_v7 = vpop.xlane.xlu0 %1954 }
0x11a1   :  { %2564 = vrcp.f32 %v1955_v7 }
0x11a7   :  { %v2565_v37 = vpop.eup %2564 }
0x11a8   :  { %v1957_v12 = vmul.f32 %v2565_v37, %v2559_v53 }
0x11b3   :  { %v1959_v13 = vpop.permute.xlu0 %1958 }
0x11b4   :  { %1979 = vmatpush.msra.mxu0 %v1959_v13 }
0x11b5   :  { %2408 = vmatmul.msk.f32.vlgmr.msra.gmra.mxu0 %vm334_vm9, %v1957_v12 }
0x11bc   :  { %v1781_v6 = vpop.f32.mrf.mxu3 }
0x11bd   :  { %2400 = vmatmul.msk.f32.vlgmr.msrb.gmra.mxu2 %vm334_vm9, %v1781_v6 }
0x11be   :  { %2103 = vmatpush.msrb.mxu2 %v2416_v56 }
0x11c0   :  { %2104 = vmatpush.msrb.mxu2 %v2415_v14 }
0x11c2   :  { %2105 = vmatpush.msrb.mxu2 %v2414_v63 }
0x11c4   :  { %2106 = vmatpush.msrb.mxu2 %v2413_v16 }
0x11d4   :  { %v1892_v17 = vpop.f32.mrf.mxu3 }
0x11d5   :  { %2405 = vmatmul.msk.f32.vlgmr.msra.gmra.mxu2 %vm334_vm9, %v1892_v17 }
0x11eb   :  { %v2035_v62 = vpop.xlane.xlu1 %2034 }
0x11ec   :  { %v2039_v19 = vmul.f32 %v2035_v62, %v2966_v30 }
0x11ee   :  { %v2041_v20 = vadd.f32 1e-12, %v2039_v19 }
0x11f0   :  { %2566 = vrsqrt.f32 %v2041_v20  ;;  %vm2049_vm13 = vweird.f32 %v2041_v20 }
0x11f6   :  { %v2567_v21 = vpop.eup %2566 }
0x11f7   :  { %v2044_v22 = vmul.f32 %v2567_v21, %v2041_v20  ;;  %vm2050_vm12 = vweird.f32 %v2567_v21 }
0x11f8   :  { %vm2051_vm14 = vmor %vm2049_vm13, %vm2050_vm12 }
0x11f9   :  { %v2045_v23 = vmul.f32 %v2567_v21, %v2044_v22 }
0x11fb   :  { %v2046_v15 = vmul.f32 0.5, %v2045_v23 }
0x11fd   :  { %v2047_v18 = vsub.f32 1.5, %v2046_v15 }
0x11ff   :  { %v2048_v25 = vmul.f32 %v2567_v21, %v2047_v18 }
0x1201   :  { %v2052_v27 = vsel %vm2051_vm14, %v2567_v21, %v2048_v25 }
0x1202   :  { %v2063_v28 = vmul.f32 %v2052_v27, %v2029_v9 }
0x1204   :  { %v2068_v33 = vmul.f32 %v3429_v26, %v2063_v28 }
0x1206   :  { %v2073_v35 = vadd.f32 %v3434_v29, %v2068_v33 }
0x1208   :  { %2418 = vmatmul.msk.f32.vlgmr.msrb.gmra.mxu2 %vm226_vm3, %v2073_v35 }
0x1232   :  { %v1981_v36 = vpop.f32.mrf.mxu0 }
0x1233   :  { %2409 = vmatmul.msk.f32.vlgmr.msra.gmra.mxu3 %vm334_vm9, %v1981_v36 }
0x1240   :  { %v1804_v24 = vpop.f32.mrf.mxu2 }
0x1241   :  { %v1828_v58 = vadd.f32 %v3383_v32, %v1804_v24 }
0x1258   :  { %v1915_v42 = vpop.f32.mrf.mxu2 }
0x1259   :  { %v1918_v59 = vadd.f32 %v1915_v42, %v1828_v58 }
0x128b   :  { %v2108_v2 = vpop.f32.mrf.mxu2 }
0x128c   :  { %v2109_v46 = vadd.f32 %v2478_v45, %v2108_v2 }
0x128e   :  { %v2114_v48 = vmul.f32 %v2109_v46, %v2109_v46 }
0x1290   :  { %v2116_v49 = vmul.f32 %v2114_v48, %v2109_v46 }
0x1292   :  { %v2118_v43 = vmul.f32 0.044715, %v2116_v49 }
0x1294   :  { %v2120_v50 = vadd.f32 %v2118_v43, %v2109_v46 }
0x1296   :  { %v2122_v51 = vmul.f32 0.7978846, %v2120_v50 }
0x1298   :  { %2568 = vtanh.f32 %v2122_v51  ;;  %v2243_v51 = vld [vmem:[%s3525_s18 + $0x18] sm:$0xff] }
0x1299   :  { %2263 = vmatpush.msrb.mxu0 %v2243_v51 }
0x129e   :  { %v2569_v52 = vpop.eup %2568 }
0x129f   :  { %v2126_v53 = vadd.f32 1.0, %v2569_v52  ;;  %v2242_v52 = vld [vmem:[%s3525_s18 + $0x10] sm:$0xff] }
0x12a0   :  { %2264 = vmatpush.msrb.mxu0 %v2242_v52 }
0x12a1   :  { %v2128_v55 = vmul.f32 0.5, %v2126_v53 }
0x12a3   :  { %v2130_v54 = vmul.f32 %v2128_v55, %v2109_v46  ;;  %v2241_v55 = vld [vmem:[%s3525_s18 + $0x8] sm:$0xff] }
0x12a4   :  { %2265 = vmatpush.msrb.mxu0 %v2241_v55 }
0x12a5   :  { %2429 = vmatmul.msk.f32.vlgmr.msrb.gmra.mxu1 %vm1170_vm0, %v2130_v54  ;;  %v2240_v54 = vld [vmem:[%s3525_s18] sm:$0xff]  ;;  %s2782_s18 = smov [#allocation13]  }
0x12a6   :  { %2266 = vmatpush.msrb.mxu0 %v2240_v54  ;;  %s2309_s12 = sshll.u32 %s2782_s18, 4  ;;  %s2310_s12 = int_to_ptr.vmem [resolvable:$true] %s2309_s12 }
0x12b6   :  { %v2004_v60 = vpop.f32.mrf.mxu3 }
0x12b7   :  { %v2007_v57 = vadd.f32 %v2004_v60, %v1918_v59 }
0x12b9   :  { %v2014_v0 = vadd.f32 %v3397_v47, %v2007_v57 }
0x12bb   :  { %v2016_v3 = vadd.f32 %v2014_v0, %v3298_v61 }
0x12bd   :  { %v2024_v4 = vsel %vm226_vm3, %v2016_v3, 0.0 }
0x12be   :  { %2025 = vadd.xlane.f32.xlu0 %v2024_v4 }
0x1322   :  { %v2169_v8 = vpop.f32.mrf.mxu1 }
0x1323   :  { %v2170_v9 = vadd.f32 %v2479_v5, %v2169_v8 }
0x1325   :  { %v2175_v10 = vadd.f32 %v2170_v9, %v2073_v35 }
0x1327   :  { %v2181_v11 = vsel %vm226_vm3, %v2175_v10, 0.0 }
0x1328   :  { %2182 = vadd.xlane.f32.xlu1 %v2181_v11 }
0x1331   :  { %v2026_v32 = vpop.xlane.xlu0 %2025 }
0x1332   :  { %v2028_v7 = vmul.f32 %v2026_v32, %v2966_v30 }
0x1334   :  { %v2030_v37 = vsub.f32 %v2016_v3, %v2028_v7 }
0x1336   :  { %v2032_v47 = vmul.f32 %v2030_v37, %v2030_v37 }
0x1338   :  { %v2036_v61 = vsel %vm226_vm3, %v2032_v47, 0.0  ;;  %v2480_v47 = vld [vmem:[#allocation5 + $0x1] ss:$0 sm:$0xff] }
0x1339   :  { %2037 = vadd.xlane.f32.xlu2 %v2036_v61 }
0x139b   :  { %v2183_v39 = vpop.xlane.xlu1 %2182 }
0x13ac   :  { %v2038_v12 = vpop.xlane.xlu2 %2037 }
0x13ad   :  { %v2040_v13 = vmul.f32 %v2038_v12, %v2966_v30 }
0x13af   :  { %v2042_v6 = vadd.f32 1e-12, %v2040_v13 }
0x13b1   :  { %2570 = vrsqrt.f32 %v2042_v6  ;;  %vm2059_vm15 = vweird.f32 %v2042_v6 }
0x13b7   :  { %v2571_v17 = vpop.eup %2570 }
0x13b8   :  { %v2054_v56 = vmul.f32 %v2571_v17, %v2042_v6  ;;  %vm2060_vm9 = vweird.f32 %v2571_v17 }
0x13b9   :  { %vm2061_vm1 = vmor %vm2059_vm15, %vm2060_vm9 }
0x13ba   :  { %v2055_v14 = vmul.f32 %v2571_v17, %v2054_v56 }
0x13bc   :  { %v2056_v63 = vmul.f32 0.5, %v2055_v14 }
0x13be   :  { %v2057_v16 = vsub.f32 1.5, %v2056_v63 }
0x13c0   :  { %v2058_v62 = vmul.f32 %v2571_v17, %v2057_v16 }
0x13c2   :  { %v2062_v19 = vsel %vm2061_vm1, %v2571_v17, %v2058_v62  ;;  %v2481_v17 = vld [vmem:[#allocation7 + $0x1] ss:$0 sm:$0xff] }
0x13c3   :  { %v2064_v20 = vmul.f32 %v2062_v19, %v2030_v37  ;;  %v2275_v62 = vld [vmem:[#allocation10 + $0x18] sm:$0xff]  ;;  %v2274_v19 = vld [vmem:[#allocation10 + $0x10] sm:$0xff] }
0x13c4   :  { %2295 = vmatpush.msrb.mxu3 %v2275_v62 }
0x13c5   :  { %v2069_v21 = vmul.f32 %v3429_v26, %v2064_v20  ;;  %v2273_v20 = vld [vmem:[#allocation10 + $0x8] sm:$0xff] }
0x13c6   :  { %2296 = vmatpush.msrb.mxu3 %v2274_v19 }
0x13c7   :  { %v2074_v22 = vadd.f32 %v3434_v29, %v2069_v21  ;;  %v2187_v29 = vmul.f32 %v2183_v39, %v2966_v30  ;;  %v2272_v21 = vld [vmem:[#allocation10] sm:$0xff] }
0x13c8   :  { %2297 = vmatpush.msrb.mxu3 %v2273_v20 }
0x13c9   :  { %2419 = vmatmul.msk.f32.gmra.mxu2 %vm226_vm3, %v2074_v22  ;;  %v2189_v40 = vsub.f32 %v2175_v10, %v2187_v29 }
0x13ca   :  { %2298 = vmatpush.msrb.mxu3 %v2272_v21 }
0x13cb   :  { %v2191_v41 = vmul.f32 %v2189_v40, %v2189_v40 }
0x13cd   :  { %v2193_v42 = vsel %vm226_vm3, %v2191_v41, 0.0 }
0x144c   :  { %v2111_v23 = vpop.f32.mrf.mxu2 }
0x144d   :  { %v2112_v15 = vadd.f32 %v2478_v45, %v2111_v23 }
0x144f   :  { %v2115_v18 = vmul.f32 %v2112_v15, %v2112_v15 }
0x1451   :  { %v2117_v25 = vmul.f32 %v2115_v18, %v2112_v15 }
0x1453   :  { %v2119_v27 = vmul.f32 0.044715, %v2117_v25  ;;  %v2483_v25 = vld [vmem:[#allocation11] ss:$0 sm:$0xff] }
0x1455   :  { %v2121_v28 = vadd.f32 %v2119_v27, %v2112_v15 }
0x1457   :  { %v2123_v33 = vmul.f32 0.7978846, %v2121_v28 }
0x1459   :  { %2572 = vtanh.f32 %v2123_v33 }
0x145f   :  { %v2573_v35 = vpop.eup %2572 }
0x1460   :  { %v2127_v36 = vadd.f32 1.0, %v2573_v35 }
0x1462   :  { %v2129_v38 = vmul.f32 0.5, %v2127_v36 }
0x1464   :  { %v2131_v1 = vmul.f32 %v2129_v38, %v2112_v15 }
0x1466   :  { %2430 = vmatmul.msk.f32.gmra.mxu1 %vm1170_vm0, %v2131_v1 }
0x14e3   :  { %v2172_v26 = vpop.f32.mrf.mxu1 }
0x14e4   :  { %v2173_v24 = vadd.f32 %v2479_v5, %v2172_v26 }
0x14e6   :  { %v2176_v31 = vadd.f32 %v2173_v24, %v2074_v22  ;;  %v2482_v22 = vld [vmem:[#allocation8] ss:$0 sm:$0xff] }
0x14e8   :  { %v2184_v34 = vsel %vm226_vm3, %v2176_v31, 0.0 }
0x14e9   :  { %2185 = vadd.xlane.f32.xlu0 %v2184_v34 }
0x14f1   :  { %2194 = vadd.xlane.f32.xlu0 %v2193_v42 }
0x155c   :  { %v2186_v44 = vpop.xlane.xlu0 %2185 }
0x155d   :  { %v2188_v45 = vmul.f32 %v2186_v44, %v2966_v30 }
0x155f   :  { %v2190_v2 = vsub.f32 %v2176_v31, %v2188_v45 }
0x1561   :  { %v2192_v46 = vmul.f32 %v2190_v2, %v2190_v2 }
0x1563   :  { %v2196_v48 = vsel %vm226_vm3, %v2192_v46, 0.0 }
0x1564   :  { %2197 = vadd.xlane.f32.xlu2 %v2196_v48  ;;  %v2195_v49 = vpop.xlane.xlu0 %2194 }
0x1565   :  { %v2199_v43 = vmul.f32 %v2195_v49, %v2966_v30 }
0x1567   :  { %v2201_v50 = vadd.f32 1e-12, %v2199_v43 }
0x1569   :  { %2574 = vrsqrt.f32 %v2201_v50  ;;  %vm2209_vm2 = vweird.f32 %v2201_v50 }
0x156f   :  { %v2575_v53 = vpop.eup %2574 }
0x1570   :  { %v2204_v58 = vmul.f32 %v2575_v53, %v2201_v50  ;;  %vm2210_vm0 = vweird.f32 %v2575_v53 }
0x1571   :  { %vm2211_vm4 = vmor %vm2209_vm2, %vm2210_vm0 }
0x1572   :  { %v2205_v57 = vmul.f32 %v2575_v53, %v2204_v58 }
0x1574   :  { %v2206_v3 = vmul.f32 0.5, %v2205_v57 }
0x1576   :  { %v2207_v4 = vsub.f32 1.5, %v2206_v3 }
0x1578   :  { %v2208_v9 = vmul.f32 %v2575_v53, %v2207_v4 }
0x157a   :  { %v2212_v32 = vsel %vm2211_vm4, %v2575_v53, %v2208_v9 }
0x15d7   :  { %v2198_v59 = vpop.xlane.xlu2 %2197 }
0x15d8   :  { %v2200_v60 = vmul.f32 %v2198_v59, %v2966_v30  ;;  %v2223_v30 = vmul.f32 %v2212_v32, %v2189_v40 }
0x15da   :  { %v2202_v0 = vadd.f32 1e-12, %v2200_v60  ;;  %v2228_v13 = vmul.f32 %v2480_v47, %v2223_v30 }
0x15dc   :  { %2576 = vrsqrt.f32 %v2202_v0  ;;  %vm2219_vm6 = vweird.f32 %v2202_v0  ;;  %v2233_v14 = vadd.f32 %v2481_v17, %v2228_v13 }
0x15e2   :  { %v2577_v5 = vpop.eup %2576 }
0x15e3   :  { %v2214_v8 = vmul.f32 %v2577_v5, %v2202_v0  ;;  %vm2220_vm5 = vweird.f32 %v2577_v5 }
0x15e4   :  { %vm2221_vm7 = vmor %vm2219_vm6, %vm2220_vm5 }
0x15e5   :  { %v2215_v10 = vmul.f32 %v2577_v5, %v2214_v8 }
0x15e7   :  { %v2216_v11 = vmul.f32 0.5, %v2215_v10 }
0x15e9   :  { %v2217_v7 = vsub.f32 1.5, %v2216_v11 }
0x15eb   :  { %v2218_v37 = vmul.f32 %v2577_v5, %v2217_v7 }
0x15ed   :  { %v2222_v61 = vsel %vm2221_vm7, %v2577_v5, %v2218_v37 }
0x15ee   :  { %v2224_v12 = vmul.f32 %v2222_v61, %v2190_v2 }
0x15f0   :  { %v2229_v6 = vmul.f32 %v2480_v47, %v2224_v12 }
0x15f2   :  { %v2234_v56 = vadd.f32 %v2481_v17, %v2229_v6 }
0x15f4   :  { %v2236_v63 = vrot.slane %v2234_v56, 7 }
0x15f6   :  { %v2239_v16 = vsel %vm2238_vm8, %v2233_v14, %v2236_v63 }
0x15f7   :  { %2431 = vmatmul.msk.f32.vlgmr.msrb.gmra.mxu0 %vm226_vm3, %v2239_v16 }
0x1674   :  { %v2268_v23 = vpop.f32.mrf.mxu0 }
0x1675   :  { %v2269_v15 = vadd.f32 %v2482_v22, %v2268_v23 }
0x1677   :  { %2578 = vtanh.f32 %v2269_v15 }
0x167d   :  { %v2579_v18 = vpop.eup %2578 }
0x167e   :  { %2432 = vmatmul.msk.f32.vlgmr.msrb.gmra.mxu3 %vm226_vm3, %v2579_v18 }
0x1701   :  { %v2300_v27 = vpop.f32.mrf.mxu3 }
0x1702   :  { %v2301_v28 = vadd.f32 %v2483_v25, %v2300_v27 }
0x1704   :  { %2303 = vst [vmem:[#allocation13] sm:$0x3] %v2301_v28 }
0x1705   :  { %2314 = dma.vmem_to_hbm [thread:$0]  %s2310_s12, 32, %s2312_s22, [#allocation4]  }
0x1706   :  { %2756 = dma.done.wait [#allocation4], 32  }
0x1707   :  { %2757 = vsyncadd [#allocation4], 4294967264 }
0x1708   :  { %2319 = vsyncpa [#allocation3], 1 }
0x1709   :  { %2320 = vsyncpa [#allocation6], 1 }
0x170a   :  { %2321 = vsyncpa [#allocation9], 1 }
0x170b   :  { %2322 = vsyncpa [#allocation12], 1 }
0x170c   :  { %2323 = vsyncpa [#allocation4], 1 }

</bundles_post_ra>
